<compile_context>
chip_gen: v6e
topology: v6e:2x2x1
jax: 0.10.0
libtpu: 0.0.40
codegen_flags: <defaults>
</compile_context>

<pallas_src>
import functools

import jax
import jax.numpy as jnp
from jax import lax
from jax.experimental import pallas as pl
from jax.experimental.pallas import tpu as pltpu

LN_EPS = 1e-5

# Set to jnp.bfloat16 on v6e/v7x for single-pass MXU matmuls (loosen tolerances accordingly).
MATMUL_DTYPE = jnp.float32


def _layernorm(x, gamma, beta):
    mu = jnp.mean(x, axis=-1, keepdims=True)
    xc = x - mu
    var = jnp.mean(xc * xc, axis=-1, keepdims=True)
    return xc * lax.rsqrt(var + LN_EPS) * gamma + beta


def _mm(a, b):
    """a @ b with f32 accumulation (operands optionally cast to MATMUL_DTYPE)."""
    return jnp.dot(a.astype(MATMUL_DTYPE), b.astype(MATMUL_DTYPE),
                   preferred_element_type=jnp.float32)


def _mm_bt(a, b):
    """a @ b^T with f32 accumulation."""
    return lax.dot_general(a.astype(MATMUL_DTYPE), b.astype(MATMUL_DTYPE),
                           (((1,), (1,)), ((), ())),
                           preferred_element_type=jnp.float32)


def encoder_layer_kernel(nhead, seq_len,
                         x_ref, g2_ref, b2_ref,
                         wq_ref, bq_ref, wk_ref, bk_ref, wv_ref, bv_ref,
                         wo_ref, bo_ref,
                         g1_ref, b1_ref,
                         w1_ref, bl1_ref, w2_ref, bl2_ref,
                         out_ref):
    # x_ref / out_ref: (B*L, E) with per-batch row blocks [b*L:(b+1)*L].
    # All weight refs are pre-transposed to "x @ W" layout; scale is folded into wq/bq.
    N, E = x_ref.shape
    L = seq_len
    B = N // L
    hd = E // nhead

    x = x_ref[...]

    # --- pre-norm (norm2), whole (B*L, E) slab at once ---
    xn = _layernorm(x, g2_ref[...], b2_ref[...])

    # --- QKV projections: three (E,E) matmuls, results at lane offset 0 ---
    q = _mm(xn, wq_ref[...]) + bq_ref[...]      # scale already folded into wq/bq
    k = _mm(xn, wk_ref[...]) + bk_ref[...]
    v = _mm(xn, wv_ref[...]) + bv_ref[...]

    wo = wo_ref[...]                            # (E, E), Wo^T

    # --- per-batch multi-head attention (only stage that needs per-batch slicing) ---
    # TODO(synk): attn_mask / src_key_padding_mask and training-mode dropout are not implemented;
    # this is the eval-mode forward with both masks = None (dropout layers are identity).
    attn_blocks = []
    for b in range(B):                          # B tiny & static -> unrolled at trace time
        r0 = b * L                              # 8-sublane-aligned row block
        qb = q[r0:r0 + L]
        kb = k[r0:r0 + L]
        vb = v[r0:r0 + L]
        acc = None
        for h in range(nhead):                  # static unroll over heads
            lo = h * hd
            qh = qb[:, lo:lo + hd]
            kh = kb[:, lo:lo + hd]
            vh = vb[:, lo:lo + hd]
            s = _mm_bt(qh, kh)                                  # (L, L) = q @ k^T (scaled)
            s = s - jnp.max(s, axis=-1, keepdims=True)
            p = jnp.exp(s)
            p = p * pl.reciprocal(jnp.sum(p, axis=-1, keepdims=True), approx=True)
            oh = _mm(p, vh)                                     # (L, hd)
            # out_proj fused per head: concat(heads) @ Wo^T == sum_h oh @ Wo^T[rows_h]
            contrib = _mm(oh, wo[lo:lo + hd, :])                # 8-aligned sublane slice of Wo^T
            acc = contrib if acc is None else acc + contrib
        attn_blocks.append(acc)
    attn = jnp.concatenate(attn_blocks, axis=0) + bo_ref[...]   # (B*L, E)

    # --- residual 1 (adds to the *normed* src, exactly as in the reference module) ---
    y = xn + attn

    # --- norm1 ---
    z = _layernorm(y, g1_ref[...], b1_ref[...])

    # --- feed-forward (relu) + residual 2 (again from the normed value) ---
    hid = jnp.maximum(_mm(z, w1_ref[...]) + bl1_ref[...], 0.0)
    ffn = _mm(hid, w2_ref[...]) + bl2_ref[...]
    out_ref[...] = (z + ffn).astype(out_ref.dtype)


def prepare_params(params, nhead):
    """One-time parameter preparation (outside the hot path): split/transpose weights and
    fold the 1/sqrt(head_dim) attention scale into Wq and bq."""
    E = params["norm1_w"].shape[0]
    FF = params["linear1_w"].shape[0]
    hd = E // nhead
    scale = float(hd) ** -0.5

    wq, wk, wv = jnp.split(params["in_proj_w"], 3, axis=0)      # each (E, E), torch (out, in)
    bq, bk, bv = jnp.split(params["in_proj_b"], 3, axis=0)      # each (E,)

    return dict(
        g2=params["norm2_w"].reshape(1, E), b2=params["norm2_b"].reshape(1, E),
        wq=(wq * scale).T, bq=(bq * scale).reshape(1, E),
        wk=wk.T,           bk=bk.reshape(1, E),
        wv=wv.T,           bv=bv.reshape(1, E),
        wo=params["out_proj_w"].T, bo=params["out_proj_b"].reshape(1, E),
        g1=params["norm1_w"].reshape(1, E), b1=params["norm1_b"].reshape(1, E),
        w1=params["linear1_w"].T, bl1=params["linear1_b"].reshape(1, FF),
        w2=params["linear2_w"].T, bl2=params["linear2_b"].reshape(1, E),
    )


def transformer_encoder_layer(src, prepared, nhead):
    """src: (L, B, E) float32 (seq-first, like torch). `prepared` from prepare_params().
    Returns (L, B, E)."""
    L, B, E = src.shape

    # Fold batch into the row/sublane axis; E stays in lanes throughout.
    x = jnp.transpose(src, (1, 0, 2)).reshape(B * L, E)

    args = (
        x,
        prepared["g2"], prepared["b2"],
        prepared["wq"], prepared["bq"],
        prepared["wk"], prepared["bk"],
        prepared["wv"], prepared["bv"],
        prepared["wo"], prepared["bo"],
        prepared["g1"], prepared["b1"],
        prepared["w1"], prepared["bl1"],
        prepared["w2"], prepared["bl2"],
    )
    out2d = pl.pallas_call(
        functools.partial(encoder_layer_kernel, nhead, L),
        out_shape=jax.ShapeDtypeStruct((B * L, E), jnp.float32),
        in_specs=[pl.BlockSpec(memory_space=pltpu.MemorySpace.VMEM)] * len(args),
        out_specs=pl.BlockSpec(memory_space=pltpu.MemorySpace.VMEM),
    )(*args)
    return out2d.reshape(B, L, E).transpose(1, 0, 2)            # back to (L, B, E)


def encoder_layer_ref(src, params, nhead):
    """Pure-JAX reference of the same eval-mode forward (torch-layout params)."""
    L, B, E = src.shape
    hd = E // nhead

    def ln(x, w, b):
        mu = x.mean(-1, keepdims=True)
        var = ((x - mu) ** 2).mean(-1, keepdims=True)
        return (x - mu) / jnp.sqrt(var + LN_EPS) * w + b

    xn = ln(src, params["norm2_w"], params["norm2_b"])                    # (L,B,E)
    qkv = xn @ params["in_proj_w"].T + params["in_proj_b"]                # (L,B,3E)
    q, k, v = jnp.split(qkv, 3, axis=-1)

    def heads(t):                                                         # (L,B,E)->(B,H,L,hd)
        return t.reshape(L, B, nhead, hd).transpose(1, 2, 0, 3)

    q, k, v = heads(q) * (float(hd) ** -0.5), heads(k), heads(v)
    s = jnp.einsum("bhld,bhmd->bhlm", q, k)
    p = jax.nn.softmax(s, axis=-1)
    o = jnp.einsum("bhlm,bhmd->bhld", p, v)                               # (B,H,L,hd)
    o = o.transpose(2, 0, 1, 3).reshape(L, B, E)
    attn = o @ params["out_proj_w"].T + params["out_proj_b"]
    y = xn + attn
    z = ln(y, params["norm1_w"], params["norm1_b"])
    f = (jax.nn.relu(z @ params["linear1_w"].T + params["linear1_b"])
         @ params["linear2_w"].T + params["linear2_b"])
    return z + f


if __name__ == "__main__":
    jax.config.update("jax_default_matmul_precision", "highest")

    L, B, E, H, FF = 8, 2, 32, 4, 64        # seq, batch, d_model, nhead, dim_feedforward

    keys = jax.random.split(jax.random.PRNGKey(0), 13)
    nrm = lambda k, s, sc: sc * jax.random.normal(k, s, dtype=jnp.float32)
    params = {
        "in_proj_w":  nrm(keys[0], (3 * E, E), 0.1),
        "in_proj_b":  nrm(keys[1], (3 * E,), 0.05),
        "out_proj_w": nrm(keys[2], (E, E), 0.1),
        "out_proj_b": nrm(keys[3], (E,), 0.05),
        "linear1_w":  nrm(keys[4], (FF, E), 0.1),
        "linear1_b":  nrm(keys[5], (FF,), 0.05),
        "linear2_w":  nrm(keys[6], (E, FF), 0.1),
        "linear2_b":  nrm(keys[7], (E,), 0.05),
        "norm1_w":    1.0 + nrm(keys[8], (E,), 0.05),
        "norm1_b":    nrm(keys[9], (E,), 0.05),
        "norm2_w":    1.0 + nrm(keys[10], (E,), 0.05),
        "norm2_b":    nrm(keys[11], (E,), 0.05),
    }
    src = jax.random.normal(keys[12], (L, B, E), dtype=jnp.float32)

    prepared = prepare_params(params, nhead=H)   # one-time weight split/transpose/scale-fold

    out = transformer_encoder_layer(src, prepared, nhead=H)
    out = jax.block_until_ready(out)

    ref = encoder_layer_ref(src, params, nhead=H)
    assert out.shape == (L, B, E), out.shape
    # Tolerance accounts for the EUP approximate reciprocal in the softmax denominator.
    assert jnp.allclose(out, ref, atol=2e-3, rtol=2e-3), float(jnp.max(jnp.abs(out - ref)))

    print("KERNEL_OK")
</pallas_src>

<mosaic_0001>
module attributes {stable_mosaic.version = 11 : i64} {
  func.func @encoder_layer_kernel(%arg0: memref<16x32xf32, #tpu.memory_space<vmem>>, %arg1: memref<1x32xf32, #tpu.memory_space<vmem>>, %arg2: memref<1x32xf32, #tpu.memory_space<vmem>>, %arg3: memref<32x32xf32, #tpu.memory_space<vmem>>, %arg4: memref<1x32xf32, #tpu.memory_space<vmem>>, %arg5: memref<32x32xf32, #tpu.memory_space<vmem>>, %arg6: memref<1x32xf32, #tpu.memory_space<vmem>>, %arg7: memref<32x32xf32, #tpu.memory_space<vmem>>, %arg8: memref<1x32xf32, #tpu.memory_space<vmem>>, %arg9: memref<32x32xf32, #tpu.memory_space<vmem>>, %arg10: memref<1x32xf32, #tpu.memory_space<vmem>>, %arg11: memref<1x32xf32, #tpu.memory_space<vmem>>, %arg12: memref<1x32xf32, #tpu.memory_space<vmem>>, %arg13: memref<32x64xf32, #tpu.memory_space<vmem>>, %arg14: memref<1x64xf32, #tpu.memory_space<vmem>>, %arg15: memref<64x32xf32, #tpu.memory_space<vmem>>, %arg16: memref<1x32xf32, #tpu.memory_space<vmem>>, %arg17: memref<16x32xf32, #tpu.memory_space<vmem>>) attributes {dimension_semantics = [], scalar_prefetch = 0 : i64, scratch_operands = 0 : i64, tpu.core_type = #tpu.core_type<tc>} {
    %c0 = arith.constant 0 : index
    %c0_0 = arith.constant 0 : index
    %0 = vector.load %arg0[%c0, %c0_0] : memref<16x32xf32, #tpu.memory_space<vmem>>, vector<16x32xf32>
    %c0_1 = arith.constant 0 : index
    %c0_2 = arith.constant 0 : index
    %1 = vector.load %arg1[%c0_1, %c0_2] : memref<1x32xf32, #tpu.memory_space<vmem>>, vector<1x32xf32>
    %c0_3 = arith.constant 0 : index
    %c0_4 = arith.constant 0 : index
    %2 = vector.load %arg2[%c0_3, %c0_4] : memref<1x32xf32, #tpu.memory_space<vmem>>, vector<1x32xf32>
    %cst = arith.constant dense<0.000000e+00> : vector<16xf32>
    %3 = vector.multi_reduction <add>, %0, %cst [1] : vector<16x32xf32> to vector<16xf32>
    %4 = vector.shape_cast %3 : vector<16xf32> to vector<16x1xf32>
    %cst_5 = arith.constant 3.200000e+01 : f32
    %5 = vector.broadcast %cst_5 : f32 to vector<16x1xf32>
    %6 = arith.divf %4, %5 : vector<16x1xf32>
    %7 = vector.broadcast %6 : vector<16x1xf32> to vector<16x32xf32>
    %8 = arith.subf %0, %7 : vector<16x32xf32>
    %9 = arith.mulf %8, %8 : vector<16x32xf32>
    %cst_6 = arith.constant dense<0.000000e+00> : vector<16xf32>
    %10 = vector.multi_reduction <add>, %9, %cst_6 [1] : vector<16x32xf32> to vector<16xf32>
    %11 = vector.shape_cast %10 : vector<16xf32> to vector<16x1xf32>
    %cst_7 = arith.constant 3.200000e+01 : f32
    %12 = vector.broadcast %cst_7 : f32 to vector<16x1xf32>
    %13 = arith.divf %11, %12 : vector<16x1xf32>
    %cst_8 = arith.constant 9.99999974E-6 : f32
    %14 = vector.broadcast %cst_8 : f32 to vector<16x1xf32>
    %15 = arith.addf %13, %14 : vector<16x1xf32>
    %16 = math.rsqrt %15 : vector<16x1xf32>
    %17 = vector.broadcast %16 : vector<16x1xf32> to vector<16x32xf32>
    %18 = arith.mulf %8, %17 : vector<16x32xf32>
    %19 = vector.broadcast %1 : vector<1x32xf32> to vector<16x32xf32>
    %20 = arith.mulf %18, %19 : vector<16x32xf32>
    %21 = vector.broadcast %2 : vector<1x32xf32> to vector<16x32xf32>
    %22 = arith.addf %20, %21 : vector<16x32xf32>
    %c0_9 = arith.constant 0 : index
    %c0_10 = arith.constant 0 : index
    %23 = vector.load %arg3[%c0_9, %c0_10] : memref<32x32xf32, #tpu.memory_space<vmem>>, vector<32x32xf32>
    %cst_11 = arith.constant dense<0.000000e+00> : vector<16x32xf32>
    %24 = tpu.matmul %22, %23, %cst_11 {dimension_numbers = #tpu.dot_dimension_numbers<[1], [0], [0], [1], [0, 0, 1, 1], [], []>, precision = #tpu.contract_precision<fp32>} : vector<16x32xf32>, vector<32x32xf32>, vector<16x32xf32> -> vector<16x32xf32>
    %c0_12 = arith.constant 0 : index
    %c0_13 = arith.constant 0 : index
    %25 = vector.load %arg4[%c0_12, %c0_13] : memref<1x32xf32, #tpu.memory_space<vmem>>, vector<1x32xf32>
    %26 = vector.broadcast %25 : vector<1x32xf32> to vector<16x32xf32>
    %27 = arith.addf %24, %26 : vector<16x32xf32>
    %c0_14 = arith.constant 0 : index
    %c0_15 = arith.constant 0 : index
    %28 = vector.load %arg5[%c0_14, %c0_15] : memref<32x32xf32, #tpu.memory_space<vmem>>, vector<32x32xf32>
    %cst_16 = arith.constant dense<0.000000e+00> : vector<16x32xf32>
    %29 = tpu.matmul %22, %28, %cst_16 {dimension_numbers = #tpu.dot_dimension_numbers<[1], [0], [0], [1], [0, 0, 1, 1], [], []>, precision = #tpu.contract_precision<fp32>} : vector<16x32xf32>, vector<32x32xf32>, vector<16x32xf32> -> vector<16x32xf32>
    %c0_17 = arith.constant 0 : index
    %c0_18 = arith.constant 0 : index
    %30 = vector.load %arg6[%c0_17, %c0_18] : memref<1x32xf32, #tpu.memory_space<vmem>>, vector<1x32xf32>
    %31 = vector.broadcast %30 : vector<1x32xf32> to vector<16x32xf32>
    %32 = arith.addf %29, %31 : vector<16x32xf32>
    %c0_19 = arith.constant 0 : index
    %c0_20 = arith.constant 0 : index
    %33 = vector.load %arg7[%c0_19, %c0_20] : memref<32x32xf32, #tpu.memory_space<vmem>>, vector<32x32xf32>
    %cst_21 = arith.constant dense<0.000000e+00> : vector<16x32xf32>
    %34 = tpu.matmul %22, %33, %cst_21 {dimension_numbers = #tpu.dot_dimension_numbers<[1], [0], [0], [1], [0, 0, 1, 1], [], []>, precision = #tpu.contract_precision<fp32>} : vector<16x32xf32>, vector<32x32xf32>, vector<16x32xf32> -> vector<16x32xf32>
    %c0_22 = arith.constant 0 : index
    %c0_23 = arith.constant 0 : index
    %35 = vector.load %arg8[%c0_22, %c0_23] : memref<1x32xf32, #tpu.memory_space<vmem>>, vector<1x32xf32>
    %36 = vector.broadcast %35 : vector<1x32xf32> to vector<16x32xf32>
    %37 = arith.addf %34, %36 : vector<16x32xf32>
    %c0_24 = arith.constant 0 : index
    %c0_25 = arith.constant 0 : index
    %38 = vector.load %arg9[%c0_24, %c0_25] : memref<32x32xf32, #tpu.memory_space<vmem>>, vector<32x32xf32>
    %39 = vector.extract_strided_slice %27 {offsets = [0, 0], sizes = [8, 32], strides = [1, 1]} : vector<16x32xf32> to vector<8x32xf32>
    %40 = vector.extract_strided_slice %32 {offsets = [0, 0], sizes = [8, 32], strides = [1, 1]} : vector<16x32xf32> to vector<8x32xf32>
    %41 = vector.extract_strided_slice %37 {offsets = [0, 0], sizes = [8, 32], strides = [1, 1]} : vector<16x32xf32> to vector<8x32xf32>
    %42 = vector.extract_strided_slice %39 {offsets = [0, 0], sizes = [8, 8], strides = [1, 1]} : vector<8x32xf32> to vector<8x8xf32>
    %43 = vector.extract_strided_slice %40 {offsets = [0, 0], sizes = [8, 8], strides = [1, 1]} : vector<8x32xf32> to vector<8x8xf32>
    %44 = vector.extract_strided_slice %41 {offsets = [0, 0], sizes = [8, 8], strides = [1, 1]} : vector<8x32xf32> to vector<8x8xf32>
    %cst_26 = arith.constant dense<0.000000e+00> : vector<8x8xf32>
    %45 = tpu.matmul %42, %43, %cst_26 {dimension_numbers = #tpu.dot_dimension_numbers<[1], [1], [0], [0], [0, 0, 1, 0], [], []>, precision = #tpu.contract_precision<fp32>} : vector<8x8xf32>, vector<8x8xf32>, vector<8x8xf32> -> vector<8x8xf32>
    %cst_27 = arith.constant dense<0xFF800000> : vector<8xf32>
    %46 = vector.multi_reduction <maximumf>, %45, %cst_27 [1] : vector<8x8xf32> to vector<8xf32>
    %47 = vector.shape_cast %46 : vector<8xf32> to vector<8x1xf32>
    %48 = vector.broadcast %47 : vector<8x1xf32> to vector<8x8xf32>
    %49 = arith.subf %45, %48 : vector<8x8xf32>
    %50 = math.exp %49 : vector<8x8xf32>
    %cst_28 = arith.constant dense<0.000000e+00> : vector<8xf32>
    %51 = vector.multi_reduction <add>, %50, %cst_28 [1] : vector<8x8xf32> to vector<8xf32>
    %52 = vector.shape_cast %51 : vector<8xf32> to vector<8x1xf32>
    %53 = tpu.reciprocal %52 {approx = true} : vector<8x1xf32> -> vector<8x1xf32>
    %54 = vector.broadcast %53 : vector<8x1xf32> to vector<8x8xf32>
    %55 = arith.mulf %50, %54 : vector<8x8xf32>
    %cst_29 = arith.constant dense<0.000000e+00> : vector<8x8xf32>
    %56 = tpu.matmul %55, %44, %cst_29 {dimension_numbers = #tpu.dot_dimension_numbers<[1], [0], [0], [1], [0, 0, 1, 1], [], []>, precision = #tpu.contract_precision<fp32>} : vector<8x8xf32>, vector<8x8xf32>, vector<8x8xf32> -> vector<8x8xf32>
    %57 = vector.extract_strided_slice %38 {offsets = [0, 0], sizes = [8, 32], strides = [1, 1]} : vector<32x32xf32> to vector<8x32xf32>
    %cst_30 = arith.constant dense<0.000000e+00> : vector<8x32xf32>
    %58 = tpu.matmul %56, %57, %cst_30 {dimension_numbers = #tpu.dot_dimension_numbers<[1], [0], [0], [1], [0, 0, 1, 1], [], []>, precision = #tpu.contract_precision<fp32>} : vector<8x8xf32>, vector<8x32xf32>, vector<8x32xf32> -> vector<8x32xf32>
    %59 = vector.extract_strided_slice %39 {offsets = [0, 8], sizes = [8, 8], strides = [1, 1]} : vector<8x32xf32> to vector<8x8xf32>
    %60 = vector.extract_strided_slice %40 {offsets = [0, 8], sizes = [8, 8], strides = [1, 1]} : vector<8x32xf32> to vector<8x8xf32>
    %61 = vector.extract_strided_slice %41 {offsets = [0, 8], sizes = [8, 8], strides = [1, 1]} : vector<8x32xf32> to vector<8x8xf32>
    %cst_31 = arith.constant dense<0.000000e+00> : vector<8x8xf32>
    %62 = tpu.matmul %59, %60, %cst_31 {dimension_numbers = #tpu.dot_dimension_numbers<[1], [1], [0], [0], [0, 0, 1, 0], [], []>, precision = #tpu.contract_precision<fp32>} : vector<8x8xf32>, vector<8x8xf32>, vector<8x8xf32> -> vector<8x8xf32>
    %cst_32 = arith.constant dense<0xFF800000> : vector<8xf32>
    %63 = vector.multi_reduction <maximumf>, %62, %cst_32 [1] : vector<8x8xf32> to vector<8xf32>
    %64 = vector.shape_cast %63 : vector<8xf32> to vector<8x1xf32>
    %65 = vector.broadcast %64 : vector<8x1xf32> to vector<8x8xf32>
    %66 = arith.subf %62, %65 : vector<8x8xf32>
    %67 = math.exp %66 : vector<8x8xf32>
    %cst_33 = arith.constant dense<0.000000e+00> : vector<8xf32>
    %68 = vector.multi_reduction <add>, %67, %cst_33 [1] : vector<8x8xf32> to vector<8xf32>
    %69 = vector.shape_cast %68 : vector<8xf32> to vector<8x1xf32>
    %70 = tpu.reciprocal %69 {approx = true} : vector<8x1xf32> -> vector<8x1xf32>
    %71 = vector.broadcast %70 : vector<8x1xf32> to vector<8x8xf32>
    %72 = arith.mulf %67, %71 : vector<8x8xf32>
    %cst_34 = arith.constant dense<0.000000e+00> : vector<8x8xf32>
    %73 = tpu.matmul %72, %61, %cst_34 {dimension_numbers = #tpu.dot_dimension_numbers<[1], [0], [0], [1], [0, 0, 1, 1], [], []>, precision = #tpu.contract_precision<fp32>} : vector<8x8xf32>, vector<8x8xf32>, vector<8x8xf32> -> vector<8x8xf32>
    %74 = vector.extract_strided_slice %38 {offsets = [8, 0], sizes = [8, 32], strides = [1, 1]} : vector<32x32xf32> to vector<8x32xf32>
    %cst_35 = arith.constant dense<0.000000e+00> : vector<8x32xf32>
    %75 = tpu.matmul %73, %74, %cst_35 {dimension_numbers = #tpu.dot_dimension_numbers<[1], [0], [0], [1], [0, 0, 1, 1], [], []>, precision = #tpu.contract_precision<fp32>} : vector<8x8xf32>, vector<8x32xf32>, vector<8x32xf32> -> vector<8x32xf32>
    %76 = arith.addf %58, %75 : vector<8x32xf32>
    %77 = vector.extract_strided_slice %39 {offsets = [0, 16], sizes = [8, 8], strides = [1, 1]} : vector<8x32xf32> to vector<8x8xf32>
    %78 = vector.extract_strided_slice %40 {offsets = [0, 16], sizes = [8, 8], strides = [1, 1]} : vector<8x32xf32> to vector<8x8xf32>
    %79 = vector.extract_strided_slice %41 {offsets = [0, 16], sizes = [8, 8], strides = [1, 1]} : vector<8x32xf32> to vector<8x8xf32>
    %cst_36 = arith.constant dense<0.000000e+00> : vector<8x8xf32>
    %80 = tpu.matmul %77, %78, %cst_36 {dimension_numbers = #tpu.dot_dimension_numbers<[1], [1], [0], [0], [0, 0, 1, 0], [], []>, precision = #tpu.contract_precision<fp32>} : vector<8x8xf32>, vector<8x8xf32>, vector<8x8xf32> -> vector<8x8xf32>
    %cst_37 = arith.constant dense<0xFF800000> : vector<8xf32>
    %81 = vector.multi_reduction <maximumf>, %80, %cst_37 [1] : vector<8x8xf32> to vector<8xf32>
    %82 = vector.shape_cast %81 : vector<8xf32> to vector<8x1xf32>
    %83 = vector.broadcast %82 : vector<8x1xf32> to vector<8x8xf32>
    %84 = arith.subf %80, %83 : vector<8x8xf32>
    %85 = math.exp %84 : vector<8x8xf32>
    %cst_38 = arith.constant dense<0.000000e+00> : vector<8xf32>
    %86 = vector.multi_reduction <add>, %85, %cst_38 [1] : vector<8x8xf32> to vector<8xf32>
    %87 = vector.shape_cast %86 : vector<8xf32> to vector<8x1xf32>
    %88 = tpu.reciprocal %87 {approx = true} : vector<8x1xf32> -> vector<8x1xf32>
    %89 = vector.broadcast %88 : vector<8x1xf32> to vector<8x8xf32>
    %90 = arith.mulf %85, %89 : vector<8x8xf32>
    %cst_39 = arith.constant dense<0.000000e+00> : vector<8x8xf32>
    %91 = tpu.matmul %90, %79, %cst_39 {dimension_numbers = #tpu.dot_dimension_numbers<[1], [0], [0], [1], [0, 0, 1, 1], [], []>, precision = #tpu.contract_precision<fp32>} : vector<8x8xf32>, vector<8x8xf32>, vector<8x8xf32> -> vector<8x8xf32>
    %92 = vector.extract_strided_slice %38 {offsets = [16, 0], sizes = [8, 32], strides = [1, 1]} : vector<32x32xf32> to vector<8x32xf32>
    %cst_40 = arith.constant dense<0.000000e+00> : vector<8x32xf32>
    %93 = tpu.matmul %91, %92, %cst_40 {dimension_numbers = #tpu.dot_dimension_numbers<[1], [0], [0], [1], [0, 0, 1, 1], [], []>, precision = #tpu.contract_precision<fp32>} : vector<8x8xf32>, vector<8x32xf32>, vector<8x32xf32> -> vector<8x32xf32>
    %94 = arith.addf %76, %93 : vector<8x32xf32>
    %95 = vector.extract_strided_slice %39 {offsets = [0, 24], sizes = [8, 8], strides = [1, 1]} : vector<8x32xf32> to vector<8x8xf32>
    %96 = vector.extract_strided_slice %40 {offsets = [0, 24], sizes = [8, 8], strides = [1, 1]} : vector<8x32xf32> to vector<8x8xf32>
    %97 = vector.extract_strided_slice %41 {offsets = [0, 24], sizes = [8, 8], strides = [1, 1]} : vector<8x32xf32> to vector<8x8xf32>
    %cst_41 = arith.constant dense<0.000000e+00> : vector<8x8xf32>
    %98 = tpu.matmul %95, %96, %cst_41 {dimension_numbers = #tpu.dot_dimension_numbers<[1], [1], [0], [0], [0, 0, 1, 0], [], []>, precision = #tpu.contract_precision<fp32>} : vector<8x8xf32>, vector<8x8xf32>, vector<8x8xf32> -> vector<8x8xf32>
    %cst_42 = arith.constant dense<0xFF800000> : vector<8xf32>
    %99 = vector.multi_reduction <maximumf>, %98, %cst_42 [1] : vector<8x8xf32> to vector<8xf32>
    %100 = vector.shape_cast %99 : vector<8xf32> to vector<8x1xf32>
    %101 = vector.broadcast %100 : vector<8x1xf32> to vector<8x8xf32>
    %102 = arith.subf %98, %101 : vector<8x8xf32>
    %103 = math.exp %102 : vector<8x8xf32>
    %cst_43 = arith.constant dense<0.000000e+00> : vector<8xf32>
    %104 = vector.multi_reduction <add>, %103, %cst_43 [1] : vector<8x8xf32> to vector<8xf32>
    %105 = vector.shape_cast %104 : vector<8xf32> to vector<8x1xf32>
    %106 = tpu.reciprocal %105 {approx = true} : vector<8x1xf32> -> vector<8x1xf32>
    %107 = vector.broadcast %106 : vector<8x1xf32> to vector<8x8xf32>
    %108 = arith.mulf %103, %107 : vector<8x8xf32>
    %cst_44 = arith.constant dense<0.000000e+00> : vector<8x8xf32>
    %109 = tpu.matmul %108, %97, %cst_44 {dimension_numbers = #tpu.dot_dimension_numbers<[1], [0], [0], [1], [0, 0, 1, 1], [], []>, precision = #tpu.contract_precision<fp32>} : vector<8x8xf32>, vector<8x8xf32>, vector<8x8xf32> -> vector<8x8xf32>
    %110 = vector.extract_strided_slice %38 {offsets = [24, 0], sizes = [8, 32], strides = [1, 1]} : vector<32x32xf32> to vector<8x32xf32>
    %cst_45 = arith.constant dense<0.000000e+00> : vector<8x32xf32>
    %111 = tpu.matmul %109, %110, %cst_45 {dimension_numbers = #tpu.dot_dimension_numbers<[1], [0], [0], [1], [0, 0, 1, 1], [], []>, precision = #tpu.contract_precision<fp32>} : vector<8x8xf32>, vector<8x32xf32>, vector<8x32xf32> -> vector<8x32xf32>
    %112 = arith.addf %94, %111 : vector<8x32xf32>
    %113 = vector.extract_strided_slice %27 {offsets = [8, 0], sizes = [8, 32], strides = [1, 1]} : vector<16x32xf32> to vector<8x32xf32>
    %114 = vector.extract_strided_slice %32 {offsets = [8, 0], sizes = [8, 32], strides = [1, 1]} : vector<16x32xf32> to vector<8x32xf32>
    %115 = vector.extract_strided_slice %37 {offsets = [8, 0], sizes = [8, 32], strides = [1, 1]} : vector<16x32xf32> to vector<8x32xf32>
    %116 = vector.extract_strided_slice %113 {offsets = [0, 0], sizes = [8, 8], strides = [1, 1]} : vector<8x32xf32> to vector<8x8xf32>
    %117 = vector.extract_strided_slice %114 {offsets = [0, 0], sizes = [8, 8], strides = [1, 1]} : vector<8x32xf32> to vector<8x8xf32>
    %118 = vector.extract_strided_slice %115 {offsets = [0, 0], sizes = [8, 8], strides = [1, 1]} : vector<8x32xf32> to vector<8x8xf32>
    %cst_46 = arith.constant dense<0.000000e+00> : vector<8x8xf32>
    %119 = tpu.matmul %116, %117, %cst_46 {dimension_numbers = #tpu.dot_dimension_numbers<[1], [1], [0], [0], [0, 0, 1, 0], [], []>, precision = #tpu.contract_precision<fp32>} : vector<8x8xf32>, vector<8x8xf32>, vector<8x8xf32> -> vector<8x8xf32>
    %cst_47 = arith.constant dense<0xFF800000> : vector<8xf32>
    %120 = vector.multi_reduction <maximumf>, %119, %cst_47 [1] : vector<8x8xf32> to vector<8xf32>
    %121 = vector.shape_cast %120 : vector<8xf32> to vector<8x1xf32>
    %122 = vector.broadcast %121 : vector<8x1xf32> to vector<8x8xf32>
    %123 = arith.subf %119, %122 : vector<8x8xf32>
    %124 = math.exp %123 : vector<8x8xf32>
    %cst_48 = arith.constant dense<0.000000e+00> : vector<8xf32>
    %125 = vector.multi_reduction <add>, %124, %cst_48 [1] : vector<8x8xf32> to vector<8xf32>
    %126 = vector.shape_cast %125 : vector<8xf32> to vector<8x1xf32>
    %127 = tpu.reciprocal %126 {approx = true} : vector<8x1xf32> -> vector<8x1xf32>
    %128 = vector.broadcast %127 : vector<8x1xf32> to vector<8x8xf32>
    %129 = arith.mulf %124, %128 : vector<8x8xf32>
    %cst_49 = arith.constant dense<0.000000e+00> : vector<8x8xf32>
    %130 = tpu.matmul %129, %118, %cst_49 {dimension_numbers = #tpu.dot_dimension_numbers<[1], [0], [0], [1], [0, 0, 1, 1], [], []>, precision = #tpu.contract_precision<fp32>} : vector<8x8xf32>, vector<8x8xf32>, vector<8x8xf32> -> vector<8x8xf32>
    %131 = vector.extract_strided_slice %38 {offsets = [0, 0], sizes = [8, 32], strides = [1, 1]} : vector<32x32xf32> to vector<8x32xf32>
    %cst_50 = arith.constant dense<0.000000e+00> : vector<8x32xf32>
    %132 = tpu.matmul %130, %131, %cst_50 {dimension_numbers = #tpu.dot_dimension_numbers<[1], [0], [0], [1], [0, 0, 1, 1], [], []>, precision = #tpu.contract_precision<fp32>} : vector<8x8xf32>, vector<8x32xf32>, vector<8x32xf32> -> vector<8x32xf32>
    %133 = vector.extract_strided_slice %113 {offsets = [0, 8], sizes = [8, 8], strides = [1, 1]} : vector<8x32xf32> to vector<8x8xf32>
    %134 = vector.extract_strided_slice %114 {offsets = [0, 8], sizes = [8, 8], strides = [1, 1]} : vector<8x32xf32> to vector<8x8xf32>
    %135 = vector.extract_strided_slice %115 {offsets = [0, 8], sizes = [8, 8], strides = [1, 1]} : vector<8x32xf32> to vector<8x8xf32>
    %cst_51 = arith.constant dense<0.000000e+00> : vector<8x8xf32>
    %136 = tpu.matmul %133, %134, %cst_51 {dimension_numbers = #tpu.dot_dimension_numbers<[1], [1], [0], [0], [0, 0, 1, 0], [], []>, precision = #tpu.contract_precision<fp32>} : vector<8x8xf32>, vector<8x8xf32>, vector<8x8xf32> -> vector<8x8xf32>
    %cst_52 = arith.constant dense<0xFF800000> : vector<8xf32>
    %137 = vector.multi_reduction <maximumf>, %136, %cst_52 [1] : vector<8x8xf32> to vector<8xf32>
    %138 = vector.shape_cast %137 : vector<8xf32> to vector<8x1xf32>
    %139 = vector.broadcast %138 : vector<8x1xf32> to vector<8x8xf32>
    %140 = arith.subf %136, %139 : vector<8x8xf32>
    %141 = math.exp %140 : vector<8x8xf32>
    %cst_53 = arith.constant dense<0.000000e+00> : vector<8xf32>
    %142 = vector.multi_reduction <add>, %141, %cst_53 [1] : vector<8x8xf32> to vector<8xf32>
    %143 = vector.shape_cast %142 : vector<8xf32> to vector<8x1xf32>
    %144 = tpu.reciprocal %143 {approx = true} : vector<8x1xf32> -> vector<8x1xf32>
    %145 = vector.broadcast %144 : vector<8x1xf32> to vector<8x8xf32>
    %146 = arith.mulf %141, %145 : vector<8x8xf32>
    %cst_54 = arith.constant dense<0.000000e+00> : vector<8x8xf32>
    %147 = tpu.matmul %146, %135, %cst_54 {dimension_numbers = #tpu.dot_dimension_numbers<[1], [0], [0], [1], [0, 0, 1, 1], [], []>, precision = #tpu.contract_precision<fp32>} : vector<8x8xf32>, vector<8x8xf32>, vector<8x8xf32> -> vector<8x8xf32>
    %148 = vector.extract_strided_slice %38 {offsets = [8, 0], sizes = [8, 32], strides = [1, 1]} : vector<32x32xf32> to vector<8x32xf32>
    %cst_55 = arith.constant dense<0.000000e+00> : vector<8x32xf32>
    %149 = tpu.matmul %147, %148, %cst_55 {dimension_numbers = #tpu.dot_dimension_numbers<[1], [0], [0], [1], [0, 0, 1, 1], [], []>, precision = #tpu.contract_precision<fp32>} : vector<8x8xf32>, vector<8x32xf32>, vector<8x32xf32> -> vector<8x32xf32>
    %150 = arith.addf %132, %149 : vector<8x32xf32>
    %151 = vector.extract_strided_slice %113 {offsets = [0, 16], sizes = [8, 8], strides = [1, 1]} : vector<8x32xf32> to vector<8x8xf32>
    %152 = vector.extract_strided_slice %114 {offsets = [0, 16], sizes = [8, 8], strides = [1, 1]} : vector<8x32xf32> to vector<8x8xf32>
    %153 = vector.extract_strided_slice %115 {offsets = [0, 16], sizes = [8, 8], strides = [1, 1]} : vector<8x32xf32> to vector<8x8xf32>
    %cst_56 = arith.constant dense<0.000000e+00> : vector<8x8xf32>
    %154 = tpu.matmul %151, %152, %cst_56 {dimension_numbers = #tpu.dot_dimension_numbers<[1], [1], [0], [0], [0, 0, 1, 0], [], []>, precision = #tpu.contract_precision<fp32>} : vector<8x8xf32>, vector<8x8xf32>, vector<8x8xf32> -> vector<8x8xf32>
    %cst_57 = arith.constant dense<0xFF800000> : vector<8xf32>
    %155 = vector.multi_reduction <maximumf>, %154, %cst_57 [1] : vector<8x8xf32> to vector<8xf32>
    %156 = vector.shape_cast %155 : vector<8xf32> to vector<8x1xf32>
    %157 = vector.broadcast %156 : vector<8x1xf32> to vector<8x8xf32>
    %158 = arith.subf %154, %157 : vector<8x8xf32>
    %159 = math.exp %158 : vector<8x8xf32>
    %cst_58 = arith.constant dense<0.000000e+00> : vector<8xf32>
    %160 = vector.multi_reduction <add>, %159, %cst_58 [1] : vector<8x8xf32> to vector<8xf32>
    %161 = vector.shape_cast %160 : vector<8xf32> to vector<8x1xf32>
    %162 = tpu.reciprocal %161 {approx = true} : vector<8x1xf32> -> vector<8x1xf32>
    %163 = vector.broadcast %162 : vector<8x1xf32> to vector<8x8xf32>
    %164 = arith.mulf %159, %163 : vector<8x8xf32>
    %cst_59 = arith.constant dense<0.000000e+00> : vector<8x8xf32>
    %165 = tpu.matmul %164, %153, %cst_59 {dimension_numbers = #tpu.dot_dimension_numbers<[1], [0], [0], [1], [0, 0, 1, 1], [], []>, precision = #tpu.contract_precision<fp32>} : vector<8x8xf32>, vector<8x8xf32>, vector<8x8xf32> -> vector<8x8xf32>
    %166 = vector.extract_strided_slice %38 {offsets = [16, 0], sizes = [8, 32], strides = [1, 1]} : vector<32x32xf32> to vector<8x32xf32>
    %cst_60 = arith.constant dense<0.000000e+00> : vector<8x32xf32>
    %167 = tpu.matmul %165, %166, %cst_60 {dimension_numbers = #tpu.dot_dimension_numbers<[1], [0], [0], [1], [0, 0, 1, 1], [], []>, precision = #tpu.contract_precision<fp32>} : vector<8x8xf32>, vector<8x32xf32>, vector<8x32xf32> -> vector<8x32xf32>
    %168 = arith.addf %150, %167 : vector<8x32xf32>
    %169 = vector.extract_strided_slice %113 {offsets = [0, 24], sizes = [8, 8], strides = [1, 1]} : vector<8x32xf32> to vector<8x8xf32>
    %170 = vector.extract_strided_slice %114 {offsets = [0, 24], sizes = [8, 8], strides = [1, 1]} : vector<8x32xf32> to vector<8x8xf32>
    %171 = vector.extract_strided_slice %115 {offsets = [0, 24], sizes = [8, 8], strides = [1, 1]} : vector<8x32xf32> to vector<8x8xf32>
    %cst_61 = arith.constant dense<0.000000e+00> : vector<8x8xf32>
    %172 = tpu.matmul %169, %170, %cst_61 {dimension_numbers = #tpu.dot_dimension_numbers<[1], [1], [0], [0], [0, 0, 1, 0], [], []>, precision = #tpu.contract_precision<fp32>} : vector<8x8xf32>, vector<8x8xf32>, vector<8x8xf32> -> vector<8x8xf32>
    %cst_62 = arith.constant dense<0xFF800000> : vector<8xf32>
    %173 = vector.multi_reduction <maximumf>, %172, %cst_62 [1] : vector<8x8xf32> to vector<8xf32>
    %174 = vector.shape_cast %173 : vector<8xf32> to vector<8x1xf32>
    %175 = vector.broadcast %174 : vector<8x1xf32> to vector<8x8xf32>
    %176 = arith.subf %172, %175 : vector<8x8xf32>
    %177 = math.exp %176 : vector<8x8xf32>
    %cst_63 = arith.constant dense<0.000000e+00> : vector<8xf32>
    %178 = vector.multi_reduction <add>, %177, %cst_63 [1] : vector<8x8xf32> to vector<8xf32>
    %179 = vector.shape_cast %178 : vector<8xf32> to vector<8x1xf32>
    %180 = tpu.reciprocal %179 {approx = true} : vector<8x1xf32> -> vector<8x1xf32>
    %181 = vector.broadcast %180 : vector<8x1xf32> to vector<8x8xf32>
    %182 = arith.mulf %177, %181 : vector<8x8xf32>
    %cst_64 = arith.constant dense<0.000000e+00> : vector<8x8xf32>
    %183 = tpu.matmul %182, %171, %cst_64 {dimension_numbers = #tpu.dot_dimension_numbers<[1], [0], [0], [1], [0, 0, 1, 1], [], []>, precision = #tpu.contract_precision<fp32>} : vector<8x8xf32>, vector<8x8xf32>, vector<8x8xf32> -> vector<8x8xf32>
    %184 = vector.extract_strided_slice %38 {offsets = [24, 0], sizes = [8, 32], strides = [1, 1]} : vector<32x32xf32> to vector<8x32xf32>
    %cst_65 = arith.constant dense<0.000000e+00> : vector<8x32xf32>
    %185 = tpu.matmul %183, %184, %cst_65 {dimension_numbers = #tpu.dot_dimension_numbers<[1], [0], [0], [1], [0, 0, 1, 1], [], []>, precision = #tpu.contract_precision<fp32>} : vector<8x8xf32>, vector<8x32xf32>, vector<8x32xf32> -> vector<8x32xf32>
    %186 = arith.addf %168, %185 : vector<8x32xf32>
    %187 = tpu.concatenate %112, %186 in 0 : vector<8x32xf32>, vector<8x32xf32> -> vector<16x32xf32>
    %c0_66 = arith.constant 0 : index
    %c0_67 = arith.constant 0 : index
    %188 = vector.load %arg10[%c0_66, %c0_67] : memref<1x32xf32, #tpu.memory_space<vmem>>, vector<1x32xf32>
    %189 = vector.broadcast %188 : vector<1x32xf32> to vector<16x32xf32>
    %190 = arith.addf %187, %189 : vector<16x32xf32>
    %191 = arith.addf %22, %190 : vector<16x32xf32>
    %c0_68 = arith.constant 0 : index
    %c0_69 = arith.constant 0 : index
    %192 = vector.load %arg11[%c0_68, %c0_69] : memref<1x32xf32, #tpu.memory_space<vmem>>, vector<1x32xf32>
    %c0_70 = arith.constant 0 : index
    %c0_71 = arith.constant 0 : index
    %193 = vector.load %arg12[%c0_70, %c0_71] : memref<1x32xf32, #tpu.memory_space<vmem>>, vector<1x32xf32>
    %cst_72 = arith.constant dense<0.000000e+00> : vector<16xf32>
    %194 = vector.multi_reduction <add>, %191, %cst_72 [1] : vector<16x32xf32> to vector<16xf32>
    %195 = vector.shape_cast %194 : vector<16xf32> to vector<16x1xf32>
    %cst_73 = arith.constant 3.200000e+01 : f32
    %196 = vector.broadcast %cst_73 : f32 to vector<16x1xf32>
    %197 = arith.divf %195, %196 : vector<16x1xf32>
    %198 = vector.broadcast %197 : vector<16x1xf32> to vector<16x32xf32>
    %199 = arith.subf %191, %198 : vector<16x32xf32>
    %200 = arith.mulf %199, %199 : vector<16x32xf32>
    %cst_74 = arith.constant dense<0.000000e+00> : vector<16xf32>
    %201 = vector.multi_reduction <add>, %200, %cst_74 [1] : vector<16x32xf32> to vector<16xf32>
    %202 = vector.shape_cast %201 : vector<16xf32> to vector<16x1xf32>
    %cst_75 = arith.constant 3.200000e+01 : f32
    %203 = vector.broadcast %cst_75 : f32 to vector<16x1xf32>
    %204 = arith.divf %202, %203 : vector<16x1xf32>
    %cst_76 = arith.constant 9.99999974E-6 : f32
    %205 = vector.broadcast %cst_76 : f32 to vector<16x1xf32>
    %206 = arith.addf %204, %205 : vector<16x1xf32>
    %207 = math.rsqrt %206 : vector<16x1xf32>
    %208 = vector.broadcast %207 : vector<16x1xf32> to vector<16x32xf32>
    %209 = arith.mulf %199, %208 : vector<16x32xf32>
    %210 = vector.broadcast %192 : vector<1x32xf32> to vector<16x32xf32>
    %211 = arith.mulf %209, %210 : vector<16x32xf32>
    %212 = vector.broadcast %193 : vector<1x32xf32> to vector<16x32xf32>
    %213 = arith.addf %211, %212 : vector<16x32xf32>
    %c0_77 = arith.constant 0 : index
    %c0_78 = arith.constant 0 : index
    %214 = vector.load %arg13[%c0_77, %c0_78] : memref<32x64xf32, #tpu.memory_space<vmem>>, vector<32x64xf32>
    %cst_79 = arith.constant dense<0.000000e+00> : vector<16x64xf32>
    %215 = tpu.matmul %213, %214, %cst_79 {dimension_numbers = #tpu.dot_dimension_numbers<[1], [0], [0], [1], [0, 0, 1, 1], [], []>, precision = #tpu.contract_precision<fp32>} : vector<16x32xf32>, vector<32x64xf32>, vector<16x64xf32> -> vector<16x64xf32>
    %c0_80 = arith.constant 0 : index
    %c0_81 = arith.constant 0 : index
    %216 = vector.load %arg14[%c0_80, %c0_81] : memref<1x64xf32, #tpu.memory_space<vmem>>, vector<1x64xf32>
    %217 = vector.broadcast %216 : vector<1x64xf32> to vector<16x64xf32>
    %218 = arith.addf %215, %217 : vector<16x64xf32>
    %cst_82 = arith.constant 0.000000e+00 : f32
    %219 = vector.broadcast %cst_82 : f32 to vector<16x64xf32>
    %220 = arith.maximumf %218, %219 : vector<16x64xf32>
    %c0_83 = arith.constant 0 : index
    %c0_84 = arith.constant 0 : index
    %221 = vector.load %arg15[%c0_83, %c0_84] : memref<64x32xf32, #tpu.memory_space<vmem>>, vector<64x32xf32>
    %cst_85 = arith.constant dense<0.000000e+00> : vector<16x32xf32>
    %222 = tpu.matmul %220, %221, %cst_85 {dimension_numbers = #tpu.dot_dimension_numbers<[1], [0], [0], [1], [0, 0, 1, 1], [], []>, precision = #tpu.contract_precision<fp32>} : vector<16x64xf32>, vector<64x32xf32>, vector<16x32xf32> -> vector<16x32xf32>
    %c0_86 = arith.constant 0 : index
    %c0_87 = arith.constant 0 : index
    %223 = vector.load %arg16[%c0_86, %c0_87] : memref<1x32xf32, #tpu.memory_space<vmem>>, vector<1x32xf32>
    %224 = vector.broadcast %223 : vector<1x32xf32> to vector<16x32xf32>
    %225 = arith.addf %222, %224 : vector<16x32xf32>
    %226 = arith.addf %213, %225 : vector<16x32xf32>
    %c0_88 = arith.constant 0 : index
    %c0_89 = arith.constant 0 : index
    %227 = vector.load %arg17[%c0_88, %c0_89] : memref<16x32xf32, #tpu.memory_space<vmem>>, vector<16x32xf32>
    tpu.vector_store %arg17[%c0_88, %c0_89], %226 {strides = array<i32>} : memref<16x32xf32, #tpu.memory_space<vmem>>, vector<16x32xf32>,
    return
  }
}

</mosaic_0001>

<bundles_post_ra>
// kernel: tpu_custom_call.1
= control target key start
LH: loop header
LB: loop body
LE: loop exit
PB: predicated region body
PF: predicated region fallthrough
CT: control target
= control target key end

     0   :  { %s17191_s0 = inlined_call_operand.hbm [shape: f32[16,32], index: 0, kind: input, shape index: {}]   ;;  %s17192_s1 = inlined_call_operand.vmem [shape: f32[1,32], index: 1, kind: input, shape index: {}]   ;;  %s17193_s2 = inlined_call_operand.vmem [shape: f32[1,32], index: 2, kind: input, shape index: {}]   ;;  %s17194_s3 = inlined_call_operand.vmem [shape: f32[32,32], index: 3, kind: input, shape index: {}]   ;;  %s17195_s4 = inlined_call_operand.vmem [shape: f32[1,32], index: 4, kind: input, shape index: {}]   ;;  %s17196_s5 = inlined_call_operand.vmem [shape: f32[32,32], index: 5, kind: input, shape index: {}]   ;;  %s17197_s6 = inlined_call_operand.vmem [shape: f32[1,32], index: 6, kind: input, shape index: {}]   ;;  %s17198_s7 = inlined_call_operand.vmem [shape: f32[32,32], index: 7, kind: input, shape index: {}]   ;;  %s17199_s8 = inlined_call_operand.vmem [shape: f32[1,32], index: 8, kind: input, shape index: {}]   ;;  %s17200_s9 = inlined_call_operand.hbm [shape: f32[32,32], index: 9, kind: input, shape index: {}]   ;;  %s17201_s10 = inlined_call_operand.vmem [shape: f32[1,32], index: 10, kind: input, shape index: {}]   ;;  %s17202_s11 = inlined_call_operand.vmem [shape: f32[1,32], index: 11, kind: input, shape index: {}]   ;;  %s17203_s12 = inlined_call_operand.vmem [shape: f32[1,32], index: 12, kind: input, shape index: {}]   ;;  %s17204_s13 = inlined_call_operand.hbm [shape: f32[32,64], index: 13, kind: input, shape index: {}]   ;;  %s17205_s14 = inlined_call_operand.vmem [shape: f32[1,64], index: 14, kind: input, shape index: {}]   ;;  %s17206_s15 = inlined_call_operand.vmem [shape: f32[64,32], index: 15, kind: input, shape index: {}]   ;;  %s17207_s16 = inlined_call_operand.vmem [shape: f32[1,32], index: 16, kind: input, shape index: {}]   ;;  %s17208_s17 = inlined_call_operand.hbm [shape: f32[16,32], index: 17, kind: output, shape index: {}]  }
   0x1   :  { %17209 = sst [smem:[#allocation12_spill]] %s17191_s0 }
   0x2   :  { %17210 = sst [smem:[#allocation13_spill]] %s17192_s1 }
   0x3   :  { %22 = vsyncpa [#allocation3], 0 }
   0x4   :  { %23 = vsyncpa [#allocation6], 0 }
   0x5   :  { %24 = vsyncpa [#allocation4], 0  ;;  %s15661_s24 = smov [#allocation5]   ;;  %s15662_s26 = smov [#allocation2]  }
   0x6   :  { %s58_s25 = sshll.u32 %s15661_s24, 4  ;;  %s30_s27 = sshll.u32 %s15662_s26, 4  ;;  %s59_s25 = int_to_ptr.vmem [resolvable:$true] %s58_s25  ;;  %s31_s27 = int_to_ptr.vmem [resolvable:$true] %s30_s27 }
   0x7   :  { %s15583_s28 = scalar_lea.vmem %s59_s25, 512  ;;  %p15588_p1 = scmp.lt.s32.totalorder %s59_s25, %s59_s25 }
   0x8   :  { %p15584_p0 = scmp.ne.s32.totalorder %s59_s25, %s15583_s28  ;;  %p15589_p2 = scmp.lt.s32.totalorder %s15583_s28, %s15583_s28 }
   0xa   :  { %p15590_p3 = por %p15589_p2, %p15588_p1 }
   0xc   :  { %p15591_p4 = pnand %p15590_p3, %p15584_p0 }
   0xe   :  { %15594 = shalt.err (!%p15591_p4)
}
   0xf   :  { %s15663_s29 = smov 128   ;;  %s15664_s0 = smov 8  }
  0x10   :  { %64 = dma.hbm_to_vmem [thread:$0]  %s17200_s9, 512, %s59_s25, [#allocation6], %s15663_s29, %s15663_s29, %s15664_s0  }
  0x11   :  { %s15603_s19 = scalar_lea.vmem %s31_s27, 256  ;;  %p15608_p6 = scmp.lt.s32.totalorder %s31_s27, %s31_s27 }
  0x12   :  { %p15604_p5 = scmp.ne.s32.totalorder %s31_s27, %s15603_s19  ;;  %p15609_p7 = scmp.lt.s32.totalorder %s15603_s19, %s15603_s19 }
  0x14   :  { %p15610_p8 = por %p15609_p7, %p15608_p6 }
  0x16   :  { %p15611_p9 = pnand %p15610_p8, %p15604_p5 }
  0x18   :  { %15614 = shalt.err (!%p15611_p9)
}
  0x19   :  { %s17211_s21 = sld [smem:[#allocation12_spill]]  ;;  %s15665_s22 = smov [#allocation7]  }
  0x1a   :  { %s76_s23 = sshll.u32 %s15665_s22, 4  ;;  %s77_s23 = int_to_ptr.vmem [resolvable:$true] %s76_s23 }
  0x1b   :  { %s15623_s24 = scalar_lea.vmem %s77_s23, 512  ;;  %p15628_p11 = scmp.lt.s32.totalorder %s77_s23, %s77_s23 }
  0x1c   :  { %p15624_p10 = scmp.ne.s32.totalorder %s77_s23, %s15623_s24  ;;  %p15629_p12 = scmp.lt.s32.totalorder %s15623_s24, %s15623_s24 }
  0x1e   :  { %p15630_p13 = por %p15629_p12, %p15628_p11 }
  0x1f   :  { %36 = dma.hbm_to_vmem [thread:$0]  %s17211_s21, 256, %s31_s27, [#allocation3], %s15663_s29, %s15663_s29, %s15664_s0  }
  0x20   :  { %p15631_p0 = pnand %p15630_p13, %p15624_p10 }
  0x22   :  { %15634 = shalt.err (!%p15631_p0)
}
  0x23   :  { %82 = dma.hbm_to_vmem [thread:$0]  %s17204_s13, 512, %s77_s23, [#allocation6], %s15663_s29, %s15663_s29, %s15664_s0  }
  0x24   :  { %15655 = dma.done.wait [#allocation3], 256  }
  0x25   :  { %15656 = vsyncadd [#allocation3], 4294967040 }
  0x26   :  { %15657 = dma.done.wait [#allocation6], 1024  }
  0x27   :  { %15658 = vsyncadd [#allocation6], 4294966272  ;;  %vm102_vm0 = vcmask 261120   ;;  %v98_v0 = vld [vmem:[#allocation2] sm:$0xff]  ;;  %v99_v1 = vld [vmem:[#allocation2 + $0x8] sm:$0xff]  ;;  %s17212_s21 = sld [smem:[#allocation13_spill]] }
  0x28   :  { %v103_v2 = vsel %vm102_vm0, %v98_v0, 0.0  ;;  %v106_v3 = vsel %vm102_vm0, %v99_v1, 0.0  ;;  %v149_v14 = vld [vmem:[%s17194_s3 + $0x18] sm:$0xff]  ;;  %v148_v16 = vld [vmem:[%s17194_s3 + $0x10] sm:$0xff]  ;;  %v147_v19 = vld [vmem:[%s17194_s3 + $0x8] sm:$0xff]  ;;  %vm15667_vm1 = vmmov 0  }
  0x29   :  { %104 = vadd.xlane.f32.xlu0 %v103_v2  ;;  %v15791_v15 = vand.u32 4294901760, %v149_v14  ;;  %v15799_v18 = vand.u32 4294901760, %v148_v16  ;;  %v15812_v22 = vand.u32 4294901760, %v147_v19  ;;  %v146_v23 = vld [vmem:[%s17194_s3] sm:$0xff]  ;;  %v694_v57 = vld [vmem:[%s17196_s5 + $0x18] sm:$0xff]  ;;  %v693_v62 = vld [vmem:[%s17196_s5 + $0x10] sm:$0xff] }
  0x2a   :  { %v15827_v27 = vand.u32 4294901760, %v146_v23  ;;  %v13925_v47 = vld [vmem:[%s17193_s2] ss:$0 sm:$0xff]  ;;  %v15879_v61 = vand.u32 4294901760, %v694_v57  ;;  %vm1773_vm2 = vcmask 64512   ;;  %s15669_s24 = smov 112  }
  0x2b   :  { %v15797_v17 = vsub.f32 %v149_v14, %v15791_v15  ;;  %14426 = vmatprep.subr.mxu0 %v15791_v15  ;;  %v15810_v21 = vsub.f32 %v148_v16, %v15799_v18  ;;  %v15825_v26 = vsub.f32 %v147_v19, %v15812_v22  ;;  %s15670_s9 = smov 104   ;;  %vm13315_vm3 = vcmask 523264  }
  0x2c   :  { %14427 = vmatpush3.msra.mxu0 %v15791_v15  ;;  %v15837_v31 = vsub.f32 %v146_v23, %v15827_v27 }
  0x2d   :  { %107 = vadd.xlane.f32.xlu0 %v106_v3  ;;  %v15807_v20 = vand.u32 4294901760, %v15797_v17  ;;  %14428 = vmatprep.subr.mxu0 %v15799_v18  ;;  %v15822_v25 = vand.u32 4294901760, %v15810_v21  ;;  %v15834_v30 = vand.u32 4294901760, %v15825_v26  ;;  %v13924_v45 = vld [vmem:[%s17212_s21] ss:$0 sm:$0xff] }
  0x2e   :  { %14429 = vmatpush3.msra.mxu0 %v15799_v18  ;;  %v15844_v34 = vand.u32 4294901760, %v15837_v31 }
  0x2f   :  { %v280_v24 = vsub.f32 %v15797_v17, %v15807_v20  ;;  %14430 = vmatprep.subr.mxu0 %v15812_v22  ;;  %v287_v29 = vsub.f32 %v15810_v21, %v15822_v25  ;;  %v294_v33 = vsub.f32 %v15825_v26, %v15834_v30 }
  0x30   :  { %14431 = vmatpush3.msra.mxu0 %v15812_v22  ;;  %v301_v36 = vsub.f32 %v15837_v31, %v15844_v34 }
  0x31   :  { %v281_v28 = vand.u32 4294901760, %v280_v24  ;;  %14432 = vmatprep.subr.mxu0 %v15827_v27  ;;  %v288_v32 = vand.u32 4294901760, %v287_v29  ;;  %v295_v35 = vand.u32 4294901760, %v294_v33  ;;  %v1231_v29 = vld [vmem:[%s17198_s7 + $0x8] sm:$0xff] }
  0x32   :  { %14433 = vmatpush3.msra.mxu0 %v15827_v27  ;;  %v302_v37 = vand.u32 4294901760, %v301_v36  ;;  %v16017_v33 = vand.u32 4294901760, %v1231_v29 }
  0x33   :  { %14437 = vmatprep.subr.mxu1 %v281_v28  ;;  %14448 = vmatprep.subr.mxu0 %v15797_v17 }
  0x34   :  { %14438 = vmatpush3.msra.mxu1 %v281_v28  ;;  %v1232_v28 = vld [vmem:[%s17198_s7 + $0x10] sm:$0xff] }
  0x35   :  { %14439 = vmatprep.subr.mxu1 %v288_v32 }
  0x36   :  { %14440 = vmatpush3.msra.mxu1 %v288_v32  ;;  %v1230_v32 = vld [vmem:[%s17198_s7] sm:$0xff] }
  0x37   :  { %14441 = vmatprep.subr.mxu1 %v295_v35 }
  0x38   :  { %14442 = vmatpush3.msra.mxu1 %v295_v35  ;;  %v16026_v35 = vand.u32 4294901760, %v1230_v32 }
  0x39   :  { %14443 = vmatprep.subr.mxu1 %v302_v37 }
  0x3a   :  { %14444 = vmatpush3.msra.mxu1 %v302_v37  ;;  %v16036_v37 = vsub.f32 %v1231_v29, %v16017_v33 }
  0x3b   :  { %14459 = vmatprep.subr.mxu1 %v15791_v15 }
  0xb2   :  { %v105_v4 = vpop.xlane.xlu0 %104 }
  0xb3   :  { %v110_v5 = vmul.f32 0.03125, %v105_v4  ;;  %v15901_v4 = vand.u32 4294901760, %v693_v62 }
  0xb5   :  { %v112_v6 = vsub.f32 %v98_v0, %v110_v5  ;;  %v15905_v5 = vsub.f32 %v694_v57, %v15879_v61 }
  0xb6   :  { %v108_v7 = vpop.xlane.xlu0 %107 }
  0xb7   :  { %v111_v8 = vmul.f32 0.03125, %v108_v7  ;;  %v114_v9 = vmul.f32 %v112_v6, %v112_v6 }
  0xb9   :  { %v15782_v10 = vsub.f32 %v99_v1, %v111_v8  ;;  %v116_v11 = vsel %vm102_vm0, %v114_v9, 0.0  ;;  %v692_v1 = vld [vmem:[%s17196_s5 + $0x8] sm:$0xff] }
  0xba   :  { %117 = vadd.xlane.f32.xlu1 %v116_v11  ;;  %v15914_v8 = vand.u32 4294901760, %v692_v1 }
  0xbb   :  { %v115_v12 = vmul.f32 %v15782_v10, %v15782_v10 }
  0xbd   :  { %v119_v13 = vsel %vm102_vm0, %v115_v12, 0.0  ;;  %v15927_v12 = vand.u32 4294901760, %v15905_v5 }
  0xbe   :  { %120 = vadd.xlane.f32.xlu1 %v119_v13  ;;  %v15932_v13 = vsub.f32 %v692_v1, %v15914_v8 }
  0xbf   :  { %v819_v19 = vsub.f32 %v15905_v5, %v15927_v12 }
 0x143   :  { %v118_v38 = vpop.xlane.xlu1 %117 }
 0x144   :  { %v122_v39 = vmul.f32 0.03125, %v118_v38 }
 0x146   :  { %v124_v40 = vadd.f32 1e-05, %v122_v39  ;;  %v16046_v39 = vsub.f32 %v1230_v32, %v16026_v35 }
 0x147   :  { %v121_v41 = vpop.xlane.xlu1 %120 }
 0x148   :  { %15535 = vrsqrt.f32 %v124_v40  ;;  %v123_v42 = vmul.f32 0.03125, %v121_v41  ;;  %v16055_v41 = vand.u32 4294901760, %v16036_v37 }
 0x14a   :  { %v125_v43 = vadd.f32 1e-05, %v123_v42 }
 0x14c   :  { %15537 = vrsqrt.f32 %v125_v43  ;;  %v16064_v43 = vand.u32 4294901760, %v16046_v39 }
 0x155   :  { %v15536_v44 = vpop.eup %15535 }
 0x156   :  { %v128_v46 = vmul.f32 %v15536_v44, %v112_v6  ;;  %v691_v6 = vld [vmem:[%s17196_s5] sm:$0xff] }
 0x157   :  { %v15923_v11 = vand.u32 4294901760, %v691_v6 }
 0x158   :  { %v136_v48 = vmul.f32 %v13924_v45, %v128_v46 }
 0x159   :  { %v15538_v49 = vpop.eup %15537  ;;  %v15942_v16 = vsub.f32 %v691_v6, %v15923_v11 }
 0x15a   :  { %v15856_v50 = vadd.f32 %v13925_v47, %v136_v48  ;;  %v129_v51 = vmul.f32 %v15538_v49, %v15782_v10  ;;  %v15921_v10 = vsub.f32 %v693_v62, %v15901_v4 }
 0x15b   :  { %v15960_v23 = vand.u32 4294901760, %v15942_v16 }
 0x15c   :  { %v158_v52 = vsel %vm102_vm0, %v15856_v50, 0  ;;  %v137_v53 = vmul.f32 %v13924_v45, %v129_v51  ;;  %v15939_v14 = vand.u32 4294901760, %v15921_v10  ;;  %v1372_v45 = vsub.f32 %v16036_v37, %v16055_v41 }
 0x15d   :  { %v15861_v54 = vand.u32 4294901760, %v158_v52  ;;  %v15666_v51 = vmov 0.0  }
 0x15e   :  { %v15863_v55 = vadd.f32 %v13925_v47, %v137_v53  ;;  %v1379_v47 = vsub.f32 %v16046_v39, %v16064_v43  ;;  %v1373_v48 = vand.u32 4294901760, %v1372_v45  ;;  %v13928_v45 = vld [vmem:[%s17199_s8] ss:$0 sm:$0xff]  ;;  %s15668_s8 = smov 120  }
 0x15f   :  { %14445 = vmatprep.mubr.f32.mxu1 %v15861_v54  ;;  %v15867_v56 = vsub.f32 %v158_v52, %v15861_v54  ;;  %v13926_v52 = vld [vmem:[%s17195_s4] ss:$0 sm:$0xff] }
 0x160   :  { %v161_v58 = vsel %vm102_vm0, %v15863_v55, 0  ;;  %v1380_v49 = vand.u32 4294901760, %v1379_v47 }
 0x161   :  { %v15874_v59 = vand.u32 4294901760, %v161_v58  ;;  %v15877_v60 = vand.u32 4294901760, %v15867_v56 }
 0x163   :  { %14446 = vmatmul.mubr.f32.vlgmr.msra.gmra.mxu1 %v15874_v59  ;;  %v235_v63 = vsub.f32 %v15867_v56, %v15877_v60  ;;  %v15888_v0 = vsub.f32 %v161_v58, %v15874_v59 }
 0x164   :  { %14460 = vmatpush3.msra.mxu1 %v15791_v15  ;;  %14467 = vmatprep.mubr.f32.mxu1 %v15877_v60 }
 0x165   :  { %14461 = vmatprep.subr.mxu1 %v15799_v18  ;;  %v15896_v2 = vand.u32 4294901760, %v235_v63  ;;  %v15899_v3 = vand.u32 4294901760, %v15888_v0 }
 0x166   :  { %14462 = vmatpush3.msra.mxu1 %v15799_v18 }
 0x167   :  { %14463 = vmatprep.subr.mxu1 %v15812_v22  ;;  %14434 = vmatprep.mubr.f32.mxu0 %v15896_v2  ;;  %v245_v7 = vsub.f32 %v15888_v0, %v15899_v3 }
 0x168   :  { %14464 = vmatpush3.msra.mxu1 %v15812_v22 }
 0x169   :  { %14465 = vmatprep.subr.mxu1 %v15827_v27  ;;  %v15918_v9 = vand.u32 4294901760, %v245_v7 }
 0x16a   :  { %14466 = vmatpush3.msra.mxu1 %v15827_v27 }
 0x16b   :  { %14468 = vmatmul.mubr.f32.vlgmr.msra.gmra.mxu1 %v15899_v3  ;;  %14481 = vmatprep.subr.mxu1 %v15791_v15 }
 0x16c   :  { %14435 = vmatmul.mubr.f32.vlgmr.msra.gmra.mxu0 %v15918_v9  ;;  %14482 = vmatpush3.msra.mxu1 %v15791_v15  ;;  %v15951_v15 = vand.u32 4294901760, %v15932_v13 }
 0x16d   :  { %14449 = vmatpush3.msra.mxu0 %v15797_v17  ;;  %14489 = vmatprep.mubr.f32.mxu1 %v15861_v54  ;;  %v826_v17 = vsub.f32 %v15921_v10, %v15939_v14 }
 0x16e   :  { %14450 = vmatprep.subr.mxu0 %v15810_v21  ;;  %14456 = vmatprep.mubr.f32.mxu0 %v15867_v56 }
 0x16f   :  { %14483 = vmatprep.subr.mxu1 %v15799_v18  ;;  %14451 = vmatpush3.msra.mxu0 %v15810_v21  ;;  %v820_v21 = vand.u32 4294901760, %v819_v19  ;;  %v827_v24 = vand.u32 4294901760, %v826_v17 }
 0x170   :  { %14484 = vmatpush3.msra.mxu1 %v15799_v18  ;;  %14452 = vmatprep.subr.mxu0 %v15825_v26  ;;  %v833_v18 = vsub.f32 %v15932_v13, %v15951_v15 }
 0x171   :  { %14485 = vmatprep.subr.mxu1 %v15812_v22  ;;  %14453 = vmatpush3.msra.mxu0 %v15825_v26 }
 0x172   :  { %14486 = vmatpush3.msra.mxu1 %v15812_v22  ;;  %14454 = vmatprep.subr.mxu0 %v15837_v31  ;;  %v840_v22 = vsub.f32 %v15942_v16, %v15960_v23  ;;  %v834_v26 = vand.u32 4294901760, %v833_v18 }
 0x173   :  { %14487 = vmatprep.subr.mxu1 %v15827_v27  ;;  %14455 = vmatpush3.msra.mxu0 %v15837_v31 }
 0x174   :  { %14488 = vmatpush3.msra.mxu1 %v15827_v27  ;;  %14457 = vmatmul.mubr.f32.vlgmr.msra.gmra.mxu0 %v15888_v0  ;;  %v841_v27 = vand.u32 4294901760, %v840_v22 }
 0x175   :  { %14470 = vmatprep.subr.mxu0 %v15807_v20  ;;  %14490 = vmatmul.mubr.f32.vlgmr.msra.gmra.mxu1 %v15874_v59 }
 0x176   :  { %14503 = vmatprep.subr.mxu1 %v820_v21  ;;  %14471 = vmatpush3.msra.mxu0 %v15807_v20  ;;  %v1233_v20 = vld [vmem:[%s17198_s7 + $0x18] sm:$0xff] }
 0x177   :  { %14478 = vmatprep.mubr.f32.mxu0 %v15861_v54  ;;  %14504 = vmatpush3.msra.mxu1 %v820_v21 }
 0x178   :  { %14511 = vmatprep.mubr.f32.mxu1 %v15861_v54  ;;  %14472 = vmatprep.subr.mxu0 %v15822_v25 }
 0x179   :  { %14505 = vmatprep.subr.mxu1 %v827_v24  ;;  %14473 = vmatpush3.msra.mxu0 %v15822_v25  ;;  %v15991_v25 = vand.u32 4294901760, %v1233_v20 }
 0x17a   :  { %14506 = vmatpush3.msra.mxu1 %v827_v24  ;;  %14474 = vmatprep.subr.mxu0 %v15834_v30 }
 0x17b   :  { %14507 = vmatprep.subr.mxu1 %v834_v26  ;;  %14475 = vmatpush3.msra.mxu0 %v15834_v30  ;;  %v16005_v30 = vand.u32 4294901760, %v1232_v28  ;;  %v16010_v31 = vsub.f32 %v1233_v20, %v15991_v25 }
 0x17c   :  { %14508 = vmatpush3.msra.mxu1 %v834_v26  ;;  %14476 = vmatprep.subr.mxu0 %v15844_v34 }
 0x17d   :  { %14509 = vmatprep.subr.mxu1 %v841_v27  ;;  %14477 = vmatpush3.msra.mxu0 %v15844_v34  ;;  %v16024_v34 = vsub.f32 %v1232_v28, %v16005_v30  ;;  %v16031_v36 = vand.u32 4294901760, %v16010_v31 }
 0x17e   :  { %14510 = vmatpush3.msra.mxu1 %v841_v27  ;;  %14479 = vmatmul.mubr.f32.vlgmr.msra.gmra.mxu0 %v15874_v59 }
 0x17f   :  { %14492 = vmatprep.subr.mxu0 %v15879_v61  ;;  %14512 = vmatmul.mubr.f32.vlgmr.msra.gmra.mxu1 %v15874_v59  ;;  %v16043_v38 = vand.u32 4294901760, %v16024_v34  ;;  %v1358_v40 = vsub.f32 %v16010_v31, %v16031_v36 }
 0x180   :  { %14525 = vmatprep.subr.mxu1 %v15879_v61  ;;  %14493 = vmatpush3.msra.mxu0 %v15879_v61 }
 0x181   :  { %14500 = vmatprep.mubr.f32.mxu0 %v15896_v2  ;;  %14526 = vmatpush3.msra.mxu1 %v15879_v61  ;;  %v1365_v42 = vsub.f32 %v16024_v34, %v16043_v38  ;;  %v1359_v44 = vand.u32 4294901760, %v1358_v40 }
 0x182   :  { %14533 = vmatprep.mubr.f32.mxu1 %v15877_v60  ;;  %14494 = vmatprep.subr.mxu0 %v15901_v4 }
 0x183   :  { %14527 = vmatprep.subr.mxu1 %v15901_v4  ;;  %14495 = vmatpush3.msra.mxu0 %v15901_v4  ;;  %v1366_v46 = vand.u32 4294901760, %v1365_v42 }
 0x184   :  { %14528 = vmatpush3.msra.mxu1 %v15901_v4  ;;  %14496 = vmatprep.subr.mxu0 %v15914_v8 }
 0x185   :  { %14529 = vmatprep.subr.mxu1 %v15914_v8  ;;  %14497 = vmatpush3.msra.mxu0 %v15914_v8 }
 0x186   :  { %14530 = vmatpush3.msra.mxu1 %v15914_v8  ;;  %14498 = vmatprep.subr.mxu0 %v15923_v11 }
 0x187   :  { %14531 = vmatprep.subr.mxu1 %v15923_v11  ;;  %14499 = vmatpush3.msra.mxu0 %v15923_v11 }
 0x188   :  { %14532 = vmatpush3.msra.mxu1 %v15923_v11  ;;  %14501 = vmatmul.mubr.f32.vlgmr.msra.gmra.mxu0 %v15918_v9 }
 0x189   :  { %14514 = vmatprep.subr.mxu0 %v15905_v5  ;;  %14534 = vmatmul.mubr.f32.vlgmr.msra.gmra.mxu1 %v15899_v3 }
 0x18a   :  { %14547 = vmatprep.subr.mxu1 %v15879_v61  ;;  %14515 = vmatpush3.msra.mxu0 %v15905_v5 }
 0x18b   :  { %14522 = vmatprep.mubr.f32.mxu0 %v15867_v56  ;;  %14548 = vmatpush3.msra.mxu1 %v15879_v61 }
 0x18c   :  { %14555 = vmatprep.mubr.f32.mxu1 %v15861_v54  ;;  %14516 = vmatprep.subr.mxu0 %v15921_v10 }
 0x18d   :  { %14549 = vmatprep.subr.mxu1 %v15901_v4  ;;  %14517 = vmatpush3.msra.mxu0 %v15921_v10  ;;  %v13927_v10 = vld [vmem:[%s17197_s6] ss:$0 sm:$0xff] }
 0x18e   :  { %14550 = vmatpush3.msra.mxu1 %v15901_v4  ;;  %14518 = vmatprep.subr.mxu0 %v15932_v13 }
 0x18f   :  { %14551 = vmatprep.subr.mxu1 %v15914_v8  ;;  %14519 = vmatpush3.msra.mxu0 %v15932_v13 }
 0x190   :  { %14552 = vmatpush3.msra.mxu1 %v15914_v8  ;;  %14520 = vmatprep.subr.mxu0 %v15942_v16 }
 0x191   :  { %14553 = vmatprep.subr.mxu1 %v15923_v11  ;;  %14521 = vmatpush3.msra.mxu0 %v15942_v16 }
 0x192   :  { %14554 = vmatpush3.msra.mxu1 %v15923_v11  ;;  %14523 = vmatmul.mubr.f32.vlgmr.msra.gmra.mxu0 %v15888_v0 }
 0x193   :  { %14536 = vmatprep.subr.mxu0 %v15927_v12  ;;  %14556 = vmatmul.mubr.f32.vlgmr.msra.gmra.mxu1 %v15874_v59 }
 0x194   :  { %14569 = vmatprep.subr.mxu1 %v1359_v44  ;;  %14537 = vmatpush3.msra.mxu0 %v15927_v12 }
 0x195   :  { %14544 = vmatprep.mubr.f32.mxu0 %v15861_v54  ;;  %14570 = vmatpush3.msra.mxu1 %v1359_v44 }
 0x196   :  { %14577 = vmatprep.mubr.f32.mxu1 %v15861_v54  ;;  %14538 = vmatprep.subr.mxu0 %v15939_v14 }
 0x197   :  { %14571 = vmatprep.subr.mxu1 %v1366_v46  ;;  %14539 = vmatpush3.msra.mxu0 %v15939_v14 }
 0x198   :  { %14572 = vmatpush3.msra.mxu1 %v1366_v46  ;;  %14540 = vmatprep.subr.mxu0 %v15951_v15 }
 0x199   :  { %14573 = vmatprep.subr.mxu1 %v1373_v48  ;;  %14541 = vmatpush3.msra.mxu0 %v15951_v15 }
 0x19a   :  { %14574 = vmatpush3.msra.mxu1 %v1373_v48  ;;  %14542 = vmatprep.subr.mxu0 %v15960_v23 }
 0x19b   :  { %14575 = vmatprep.subr.mxu1 %v1380_v49  ;;  %14543 = vmatpush3.msra.mxu0 %v15960_v23 }
 0x19c   :  { %14576 = vmatpush3.msra.mxu1 %v1380_v49  ;;  %14545 = vmatmul.mubr.f32.vlgmr.msra.gmra.mxu0 %v15874_v59 }
 0x19d   :  { %14558 = vmatprep.subr.mxu0 %v15991_v25  ;;  %14578 = vmatmul.mubr.f32.vlgmr.msra.gmra.mxu1 %v15874_v59 }
 0x19e   :  { %14591 = vmatprep.subr.mxu1 %v15991_v25  ;;  %14559 = vmatpush3.msra.mxu0 %v15991_v25 }
 0x19f   :  { %14566 = vmatprep.mubr.f32.mxu0 %v15896_v2  ;;  %14592 = vmatpush3.msra.mxu1 %v15991_v25 }
 0x1a0   :  { %14599 = vmatprep.mubr.f32.mxu1 %v15877_v60  ;;  %14560 = vmatprep.subr.mxu0 %v16005_v30 }
 0x1a1   :  { %14593 = vmatprep.subr.mxu1 %v16005_v30  ;;  %14561 = vmatpush3.msra.mxu0 %v16005_v30 }
 0x1a2   :  { %14594 = vmatpush3.msra.mxu1 %v16005_v30  ;;  %14562 = vmatprep.subr.mxu0 %v16017_v33 }
 0x1a3   :  { %14595 = vmatprep.subr.mxu1 %v16017_v33  ;;  %14563 = vmatpush3.msra.mxu0 %v16017_v33 }
 0x1a4   :  { %14596 = vmatpush3.msra.mxu1 %v16017_v33  ;;  %14564 = vmatprep.subr.mxu0 %v16026_v35 }
 0x1a5   :  { %14597 = vmatprep.subr.mxu1 %v16026_v35  ;;  %14565 = vmatpush3.msra.mxu0 %v16026_v35 }
 0x1a6   :  { %14598 = vmatpush3.msra.mxu1 %v16026_v35  ;;  %14567 = vmatmul.mubr.f32.vlgmr.msra.gmra.mxu0 %v15918_v9 }
 0x1a7   :  { %14580 = vmatprep.subr.mxu0 %v16010_v31  ;;  %14600 = vmatmul.mubr.f32.vlgmr.msra.gmra.mxu1 %v15899_v3 }
 0x1a8   :  { %14613 = vmatprep.subr.mxu1 %v15991_v25  ;;  %14581 = vmatpush3.msra.mxu0 %v16010_v31 }
 0x1a9   :  { %14588 = vmatprep.mubr.f32.mxu0 %v15867_v56  ;;  %14614 = vmatpush3.msra.mxu1 %v15991_v25 }
 0x1aa   :  { %14621 = vmatprep.mubr.f32.mxu1 %v15861_v54  ;;  %14582 = vmatprep.subr.mxu0 %v16024_v34 }
 0x1ab   :  { %14615 = vmatprep.subr.mxu1 %v16005_v30  ;;  %14583 = vmatpush3.msra.mxu0 %v16024_v34 }
 0x1ac   :  { %14616 = vmatpush3.msra.mxu1 %v16005_v30  ;;  %14584 = vmatprep.subr.mxu0 %v16036_v37 }
 0x1ad   :  { %14617 = vmatprep.subr.mxu1 %v16017_v33  ;;  %14585 = vmatpush3.msra.mxu0 %v16036_v37 }
 0x1ae   :  { %14618 = vmatpush3.msra.mxu1 %v16017_v33  ;;  %14586 = vmatprep.subr.mxu0 %v16046_v39 }
 0x1af   :  { %14619 = vmatprep.subr.mxu1 %v16026_v35  ;;  %14587 = vmatpush3.msra.mxu0 %v16046_v39 }
 0x1b0   :  { %14620 = vmatpush3.msra.mxu1 %v16026_v35  ;;  %14589 = vmatmul.mubr.f32.vlgmr.msra.gmra.mxu0 %v15888_v0 }
 0x1b1   :  { %14602 = vmatprep.subr.mxu0 %v16031_v36  ;;  %14622 = vmatmul.mubr.f32.vlgmr.msra.gmra.mxu1 %v15874_v59 }
 0x1b2   :  { %14603 = vmatpush3.msra.mxu0 %v16031_v36  ;;  %14610 = vmatprep.mubr.f32.mxu0 %v15861_v54 }
 0x1b3   :  { %14604 = vmatprep.subr.mxu0 %v16043_v38  ;;  %14629 = vmatprep.subr.mxu1 %v15666_v51 }
 0x1b4   :  { %14605 = vmatpush3.msra.mxu0 %v16043_v38  ;;  %14631 = vmatprep.mubr.msk.f32.mxu1 %vm15667_vm1, %v15666_v51 }
 0x1b5   :  { %14606 = vmatprep.subr.mxu0 %v16055_v41 }
 0x1b6   :  { %14607 = vmatpush3.msra.mxu0 %v16055_v41 }
 0x1b7   :  { %14608 = vmatprep.subr.mxu0 %v16064_v43 }
 0x1b8   :  { %14609 = vmatpush3.msra.mxu0 %v16064_v43 }
 0x1b9   :  { %14611 = vmatmul.mubr.f32.vlgmr.msra.gmra.mxu0 %v15874_v59  ;;  %14624 = vmatprep.subr.mxu0 %v15666_v51 }
 0x1ba   :  { %14626 = vmatprep.mubr.msk.f32.mxu0 %vm15667_vm1, %v15666_v51 }
 0x223   :  { %v14447_v56 = vpop.f32.mrf.mxu1 }
 0x225   :  { %v339_v59 = vpop.f32.mrf.mxu1 }
 0x22b   :  { %v14469_v62 = vpop.f32.mrf.mxu1 }
 0x22c   :  { %v14436_v53 = vpop.f32.mrf.mxu0 }
 0x22d   :  { %v249_v54 = vadd.f32 %v14436_v53, %v13926_v52  ;;  %v509_v1 = vpop.f32.mrf.mxu1 }
 0x22e   :  { %v238_v58 = vpop.f32.mrf.mxu0 }
 0x22f   :  { %v346_v57 = vadd.f32 %v14447_v56, %v249_v54  ;;  %v239_v4 = vadd.f32 %v13926_v52, %v238_v58 }
 0x231   :  { %v340_v7 = vadd.f32 %v339_v59, %v239_v4 }
 0x234   :  { %v14458_v60 = vpop.f32.mrf.mxu0 }
 0x235   :  { %v433_v61 = vadd.f32 %v14458_v60, %v346_v57  ;;  %v14491_v5 = vpop.f32.mrf.mxu1 }
 0x236   :  { %v425_v0 = vpop.f32.mrf.mxu0 }
 0x237   :  { %v518_v63 = vadd.f32 %v14469_v62, %v433_v61  ;;  %v426_v8 = vadd.f32 %v425_v0, %v340_v7  ;;  %v681_v11 = vpop.f32.mrf.mxu1 }
 0x239   :  { %v510_v16 = vadd.f32 %v509_v1, %v426_v8 }
 0x23e   :  { %v14480_v2 = vpop.f32.mrf.mxu0 }
 0x23f   :  { %v607_v3 = vadd.f32 %v14480_v2, %v518_v63  ;;  %v14513_v14 = vpop.f32.mrf.mxu1 }
 0x240   :  { %v600_v9 = vpop.f32.mrf.mxu0 }
 0x241   :  { %v16148_v6 = vadd.f32 %v14491_v5, %v607_v3  ;;  %v601_v15 = vadd.f32 %v600_v9, %v510_v16  ;;  %v878_v21 = vpop.f32.mrf.mxu1 }
 0x243   :  { %v16153_v17 = vadd.f32 %v681_v11, %v601_v15 }
 0x245   :  { %v1775_v26 = vsel %vm1773_vm2, %v16153_v17, 0 }
 0x246   :  { %v1846_v28 = vand.u32 4294901760, %v1775_v26 }
 0x248   :  { %v14502_v12 = vpop.f32.mrf.mxu0  ;;  %v1847_v32 = vsub.f32 %v1775_v26, %v1846_v28 }
 0x249   :  { %v788_v13 = vadd.f32 %v14502_v12, %v13927_v10  ;;  %v14535_v27 = vpop.f32.mrf.mxu1 }
 0x24a   :  { %v777_v23 = vpop.f32.mrf.mxu0  ;;  %v1848_v40 = vand.u32 4294901760, %v1847_v32 }
 0x24b   :  { %v885_v19 = vadd.f32 %v14513_v14, %v788_v13  ;;  %v778_v24 = vadd.f32 %v13927_v10, %v777_v23  ;;  %v1048_v31 = vpop.f32.mrf.mxu1 }
 0x24c   :  { %v1849_v44 = vsub.f32 %v1847_v32, %v1848_v40 }
 0x24d   :  { %v879_v29 = vadd.f32 %v878_v21, %v778_v24 }
 0x24e   :  { %v1850_v52 = vand.u32 4294901760, %v1849_v44 }
 0x252   :  { %v14524_v18 = vpop.f32.mrf.mxu0 }
 0x253   :  { %v972_v22 = vadd.f32 %v14524_v18, %v885_v19  ;;  %v14557_v33 = vpop.f32.mrf.mxu1 }
 0x254   :  { %v964_v25 = vpop.f32.mrf.mxu0 }
 0x255   :  { %v1057_v20 = vadd.f32 %v14535_v27, %v972_v22  ;;  %v965_v30 = vadd.f32 %v964_v25, %v879_v29  ;;  %v1220_v41 = vpop.f32.mrf.mxu1 }
 0x257   :  { %v1049_v36 = vadd.f32 %v1048_v31, %v965_v30 }
 0x25c   :  { %v14546_v34 = vpop.f32.mrf.mxu0 }
 0x25d   :  { %v1146_v35 = vadd.f32 %v14546_v34, %v1057_v20  ;;  %v14579_v53 = vpop.f32.mrf.mxu1 }
 0x25e   :  { %v1139_v37 = vpop.f32.mrf.mxu0 }
 0x25f   :  { %v16157_v38 = vadd.f32 %v14557_v33, %v1146_v35  ;;  %v1140_v39 = vadd.f32 %v1139_v37, %v1049_v36  ;;  %v1417_v60 = vpop.f32.mrf.mxu1 }
 0x261   :  { %v16159_v42 = vadd.f32 %v1220_v41, %v1140_v39 }
 0x263   :  { %v1778_v43 = vsel %vm1773_vm2, %v16159_v42, 0 }
 0x264   :  { %v1811_v46 = vand.u32 4294901760, %v1778_v43 }
 0x266   :  { %v14568_v47 = vpop.f32.mrf.mxu0  ;;  %14625 = vmatpush3.xpose.msra.mxu0 %v1811_v46  ;;  %v1888_v48 = vsub.f32 %v1778_v43, %v1811_v46 }
 0x267   :  { %v1327_v49 = vadd.f32 %v14568_v47, %v13928_v45  ;;  %14634 = vmatprep.subr.mxu0 %v15666_v51  ;;  %v14601_v0 = vpop.f32.mrf.mxu1 }
 0x268   :  { %v1889_v54 = vand.u32 4294901760, %v1888_v48  ;;  %v1316_v59 = vpop.f32.mrf.mxu0 }
 0x269   :  { %14627 = vmatmul.mubr.f32.vlgmr.msra.gmra.mxu0 %v1850_v52  ;;  %v1424_v56 = vadd.f32 %v14579_v53, %v1327_v49  ;;  %v1317_v61 = vadd.f32 %v13928_v45, %v1316_v59  ;;  %v1587_v5 = vpop.f32.mrf.mxu1 }
 0x26a   :  { %14635 = vmatpush3.xpose.msra.mxu0 %v1888_v48  ;;  %14636 = vmatprep.mubr.msk.f32.mxu0 %vm15667_vm1, %v15666_v51  ;;  %v1890_v57 = vsub.f32 %v1888_v48, %v1889_v54 }
 0x26b   :  { %14644 = vmatprep.subr.mxu0 %v15666_v51  ;;  %v1418_v3 = vadd.f32 %v1417_v60, %v1317_v61 }
 0x26c   :  { %v1891_v58 = vand.u32 4294901760, %v1890_v57 }
 0x26d   :  { %14637 = vmatmul.mubr.f32.vlgmr.msra.gmra.mxu0 %v1847_v32 }
 0x26e   :  { %14630 = vmatpush3.xpose.msra.mxu1 %v1891_v58  ;;  %14645 = vmatpush3.xpose.msra.mxu0 %v1889_v54 }
 0x26f   :  { %14646 = vmatprep.mubr.msk.f32.mxu0 %vm15667_vm1, %v15666_v51  ;;  %14639 = vmatprep.subr.mxu1 %v15666_v51 }
 0x270   :  { %v14590_v62 = vpop.f32.mrf.mxu0  ;;  %14654 = vmatprep.subr.mxu0 %v15666_v51 }
 0x271   :  { %v1511_v63 = vadd.f32 %v14590_v62, %v1424_v56  ;;  %14632 = vmatmul.mubr.f32.vlgmr.msra.gmra.mxu1 %v1846_v28  ;;  %14647 = vmatmul.mubr.f32.vlgmr.msra.gmra.mxu0 %v1846_v28  ;;  %v14623_v7 = vpop.f32.mrf.mxu1 }
 0x272   :  { %14640 = vmatpush3.xpose.msra.mxu1 %v1811_v46  ;;  %14641 = vmatprep.mubr.msk.f32.mxu1 %vm15667_vm1, %v15666_v51  ;;  %v1503_v1 = vpop.f32.mrf.mxu0 }
 0x273   :  { %v1596_v2 = vadd.f32 %v14601_v0, %v1511_v63  ;;  %14649 = vmatprep.subr.mxu1 %v15666_v51  ;;  %14656 = vmatprep.mubr.msk.f32.mxu0 %vm15667_vm1, %v15666_v51  ;;  %v1504_v4 = vadd.f32 %v1503_v1, %v1418_v3  ;;  %v1759_v14 = vpop.f32.mrf.mxu1 }
 0x275   :  { %14642 = vmatmul.mubr.f32.vlgmr.msra.gmra.mxu1 %v1848_v40  ;;  %v1588_v10 = vadd.f32 %v1587_v5, %v1504_v4 }
 0x276   :  { %14650 = vmatpush3.xpose.msra.mxu1 %v1811_v46  ;;  %14651 = vmatprep.mubr.msk.f32.mxu1 %vm15667_vm1, %v15666_v51 }
 0x277   :  { %14659 = vmatprep.subr.mxu1 %v15666_v51 }
 0x279   :  { %v14612_v8 = vpop.f32.mrf.mxu0  ;;  %14652 = vmatmul.mubr.f32.vlgmr.msra.gmra.mxu1 %v1846_v28 }
 0x27a   :  { %v1685_v9 = vadd.f32 %v14612_v8, %v1596_v2  ;;  %14661 = vmatprep.mubr.msk.f32.mxu1 %vm15667_vm1, %v15666_v51 }
 0x27b   :  { %v1678_v11 = vpop.f32.mrf.mxu0 }
 0x27c   :  { %v16184_v12 = vadd.f32 %v14623_v7, %v1685_v9  ;;  %v1679_v13 = vadd.f32 %v1678_v11, %v1588_v10 }
 0x27e   :  { %v16186_v16 = vadd.f32 %v1759_v14, %v1679_v13 }
 0x280   :  { %v2271_v19 = vand.u32 4294901760, %v16186_v16 }
 0x282   :  { %14655 = vmatpush3.msra.mxu0 %v2271_v19  ;;  %v16190_v15 = vsub.f32 %v16186_v16, %v2271_v19 }
 0x283   :  { %14664 = vmatprep.subr.mxu0 %v15666_v51 }
 0x284   :  { %v2349_v23 = vand.u32 4294901760, %v16190_v15 }
 0x286   :  { %v2350_v21 = vsub.f32 %v16190_v15, %v2349_v23 }
 0x288   :  { %v2351_v18 = vand.u32 4294901760, %v2350_v21 }
 0x28a   :  { %14660 = vmatpush3.msra.mxu1 %v2351_v18 }
 0x28b   :  { %14669 = vmatprep.subr.mxu1 %v15666_v51 }
 0x329   :  { %v1852_v24 = vpop.f32.mrf.mxu0 }
 0x32b   :  { %v14628_v22 = vpop.f32.mrf.mxu0 }
 0x32d   :  { %v2002_v26 = vpop.f32.mrf.mxu0 }
 0x32f   :  { %v14638_v27 = vpop.f32.mrf.mxu0 }
 0x331   :  { %v1928_v20 = vpop.f32.mrf.mxu1  ;;  %v2150_v25 = vpop.f32.mrf.mxu0 }
 0x332   :  { %v1929_v28 = vadd.f32 %v1928_v20, %v1852_v24 }
 0x333   :  { %v14633_v29 = vpop.f32.mrf.mxu1  ;;  %v14648_v30 = vpop.f32.mrf.mxu0 }
 0x334   :  { %v2003_v31 = vadd.f32 %v2002_v26, %v1929_v28 }
 0x335   :  { %v2076_v32 = vpop.f32.mrf.mxu1 }
 0x336   :  { %v2077_v33 = vadd.f32 %v2076_v32, %v2003_v31 }
 0x337   :  { %v14643_v34 = vpop.f32.mrf.mxu1 }
 0x338   :  { %v2151_v35 = vadd.f32 %v2150_v25, %v2077_v33 }
 0x339   :  { %v2222_v36 = vpop.f32.mrf.mxu1 }
 0x33a   :  { %v2223_v37 = vadd.f32 %v2222_v36, %v2151_v35 }
 0x33b   :  { %v14653_v39 = vpop.f32.mrf.mxu1 }
 0x33c   :  { %v2226_v40 = vsel %vm1773_vm2, %v2223_v37, -inf }
 0x33d   :  { %2227 = vmax.xlane.f32.xlu0 %v2226_v40 }
 0x353   :  { %2688 = vrot.lane.b32.xlu0 %v16159_v42, %s15668_s8 }
 0x3c6   :  { %v2228_v41 = vpop.xlane.xlu0 %2227 }
 0x3c7   :  { %v2229_v43 = vsub.f32 %v2223_v37, %v2228_v41 }
 0x3c9   :  { %v2230_v44 = vmul.f32 1.442695, %v2229_v43 }
 0x3ca   :  { %v2689_v48 = vpop.permute.xlu0 %2688 }
 0x3cb   :  { %15539 = vpow2.f32 %v2230_v44  ;;  %v2692_v49 = vsel %vm1773_vm2, %v2689_v48, 0 }
 0x3cc   :  { %v2725_v52 = vand.u32 4294901760, %v2692_v49 }
 0x3ce   :  { %v2802_v54 = vsub.f32 %v2692_v49, %v2725_v52 }
 0x3d0   :  { %v2803_v60 = vand.u32 4294901760, %v2802_v54 }
 0x3d2   :  { %v2804_v1 = vsub.f32 %v2802_v54, %v2803_v60 }
 0x3d4   :  { %v2805_v5 = vand.u32 4294901760, %v2804_v1 }
 0x3d8   :  { %v15540_v45 = vpop.eup %15539 }
 0x3d9   :  { %v2232_v46 = vsel %vm1773_vm2, %v15540_v45, 0.0 }
 0x3da   :  { %2233 = vadd.xlane.f32.xlu1 %v2232_v46 }
 0x3eb   :  { %2686 = vrot.lane.b32.xlu1 %v16153_v17, %s15668_s8 }
 0x463   :  { %v2234_v47 = vpop.xlane.xlu1 %2233 }
 0x464   :  { %15541 = vrcp.f32 %v2234_v47 }
 0x467   :  { %v2687_v57 = vpop.permute.xlu1 %2686 }
 0x468   :  { %v2690_v61 = vsel %vm1773_vm2, %v2687_v57, 0 }
 0x469   :  { %v2760_v63 = vand.u32 4294901760, %v2690_v61 }
 0x46b   :  { %v2761_v3 = vsub.f32 %v2690_v61, %v2760_v63 }
 0x46d   :  { %v2762_v7 = vand.u32 4294901760, %v2761_v3 }
 0x46f   :  { %v2763_v8 = vsub.f32 %v2761_v3, %v2762_v7 }
 0x471   :  { %v15542_v53 = vpop.eup %15541  ;;  %v2764_v9 = vand.u32 4294901760, %v2763_v8 }
 0x472   :  { %v2236_v56 = vmul.f32 %v15542_v53, %v15540_v45 }
 0x474   :  { %v2238_v58 = vsel %vm1773_vm2, %v2236_v56, 0 }
 0x475   :  { %v2306_v59 = vand.u32 4294901760, %v2238_v58 }
 0x477   :  { %v2307_v62 = vsub.f32 %v2238_v58, %v2306_v59  ;;  %14662 = vmatmul.mubr.f32.vlgmr.msra.gmra.mxu1 %v2306_v59 }
 0x478   :  { %14670 = vmatpush3.msra.mxu1 %v2271_v19  ;;  %14671 = vmatprep.mubr.msk.f32.mxu1 %vm15667_vm1, %v15666_v51 }
 0x479   :  { %14679 = vmatprep.subr.mxu1 %v15666_v51  ;;  %v2308_v0 = vand.u32 4294901760, %v2307_v62 }
 0x47b   :  { %14672 = vmatmul.mubr.f32.vlgmr.msra.gmra.mxu1 %v2308_v0  ;;  %v2309_v2 = vsub.f32 %v2307_v62, %v2308_v0 }
 0x47c   :  { %14680 = vmatpush3.msra.mxu1 %v2271_v19  ;;  %14681 = vmatprep.mubr.msk.f32.mxu1 %vm15667_vm1, %v15666_v51 }
 0x47d   :  { %14689 = vmatprep.subr.mxu1 %v15666_v51  ;;  %v2310_v4 = vand.u32 4294901760, %v2309_v2 }
 0x47f   :  { %14657 = vmatmul.mubr.f32.vlgmr.msra.gmra.mxu0 %v2310_v4  ;;  %14682 = vmatmul.mubr.f32.vlgmr.msra.gmra.mxu1 %v2306_v59 }
 0x480   :  { %14665 = vmatpush3.msra.mxu0 %v16190_v15  ;;  %14690 = vmatpush3.xpose.msra.mxu1 %v2805_v5 }
 0x481   :  { %14666 = vmatprep.mubr.msk.f32.mxu0 %vm15667_vm1, %v15666_v51  ;;  %14674 = vmatprep.subr.mxu0 %v15666_v51 }
 0x482   :  { %14691 = vmatprep.mubr.msk.f32.mxu1 %vm15667_vm1, %v15666_v51  ;;  %14699 = vmatprep.subr.mxu1 %v15666_v51 }
 0x483   :  { %14667 = vmatmul.mubr.f32.vlgmr.msra.gmra.mxu0 %v2307_v62  ;;  %14692 = vmatmul.mubr.f32.vlgmr.msra.gmra.mxu1 %v2760_v63 }
 0x484   :  { %14675 = vmatpush3.msra.mxu0 %v2349_v23  ;;  %14700 = vmatpush3.xpose.msra.mxu1 %v2725_v52 }
 0x485   :  { %14676 = vmatprep.mubr.msk.f32.mxu0 %vm15667_vm1, %v15666_v51  ;;  %14684 = vmatprep.subr.mxu0 %v15666_v51 }
 0x486   :  { %14701 = vmatprep.mubr.msk.f32.mxu1 %vm15667_vm1, %v15666_v51  ;;  %14709 = vmatprep.subr.mxu1 %v15666_v51 }
 0x487   :  { %14677 = vmatmul.mubr.f32.vlgmr.msra.gmra.mxu0 %v2306_v59  ;;  %14702 = vmatmul.mubr.f32.vlgmr.msra.gmra.mxu1 %v2762_v7 }
 0x488   :  { %14685 = vmatpush3.xpose.msra.mxu0 %v2725_v52  ;;  %14710 = vmatpush3.xpose.msra.mxu1 %v2725_v52 }
 0x489   :  { %14686 = vmatprep.mubr.msk.f32.mxu0 %vm15667_vm1, %v15666_v51  ;;  %14694 = vmatprep.subr.mxu0 %v15666_v51 }
 0x48a   :  { %14711 = vmatprep.mubr.msk.f32.mxu1 %vm15667_vm1, %v15666_v51  ;;  %14719 = vmatprep.subr.mxu1 %v15666_v51 }
 0x48b   :  { %14687 = vmatmul.mubr.f32.vlgmr.msra.gmra.mxu0 %v2764_v9  ;;  %14712 = vmatmul.mubr.f32.vlgmr.msra.gmra.mxu1 %v2760_v63 }
 0x48c   :  { %14695 = vmatpush3.xpose.msra.mxu0 %v2802_v54  ;;  %14696 = vmatprep.mubr.msk.f32.mxu0 %vm15667_vm1, %v15666_v51 }
 0x48d   :  { %14704 = vmatprep.subr.mxu0 %v15666_v51  ;;  %14721 = vmatprep.mubr.msk.f32.mxu1 %vm15667_vm1, %v15666_v51 }
 0x48f   :  { %14697 = vmatmul.mubr.f32.vlgmr.msra.gmra.mxu0 %v2761_v3 }
 0x490   :  { %14705 = vmatpush3.xpose.msra.mxu0 %v2803_v60  ;;  %14706 = vmatprep.mubr.msk.f32.mxu0 %vm15667_vm1, %v15666_v51 }
 0x491   :  { %14714 = vmatprep.subr.mxu0 %v15666_v51 }
 0x493   :  { %14707 = vmatmul.mubr.f32.vlgmr.msra.gmra.mxu0 %v2760_v63 }
 0x494   :  { %14716 = vmatprep.mubr.msk.f32.mxu0 %vm15667_vm1, %v15666_v51 }
 0x537   :  { %v2388_v10 = vpop.f32.mrf.mxu1 }
 0x539   :  { %v14663_v11 = vpop.f32.mrf.mxu1 }
 0x53b   :  { %v2536_v13 = vpop.f32.mrf.mxu1 }
 0x53d   :  { %v14673_v14 = vpop.f32.mrf.mxu1 }
 0x53f   :  { %v2312_v19 = vpop.f32.mrf.mxu0  ;;  %v2682_v15 = vpop.f32.mrf.mxu1 }
 0x540   :  { %v2389_v23 = vadd.f32 %v2388_v10, %v2312_v19  ;;  %v1770_v10 = vld [vmem:[#allocation5 + $0x8] sm:$0xff] }
 0x541   :  { %v14658_v21 = vpop.f32.mrf.mxu0  ;;  %v14683_v18 = vpop.f32.mrf.mxu1  ;;  %v16273_v11 = vand.u32 4294901760, %v1770_v10 }
 0x543   :  { %v2462_v24 = vpop.f32.mrf.mxu0  ;;  %v2842_v22 = vpop.f32.mrf.mxu1 }
 0x544   :  { %v2463_v26 = vadd.f32 %v2462_v24, %v2389_v23 }
 0x545   :  { %v14668_v27 = vpop.f32.mrf.mxu0  ;;  %v14693_v20 = vpop.f32.mrf.mxu1 }
 0x546   :  { %v2537_v25 = vadd.f32 %v2536_v13, %v2463_v26  ;;  %v16276_v13 = vsub.f32 %v1770_v10, %v16273_v11 }
 0x547   :  { %v2610_v28 = vpop.f32.mrf.mxu0  ;;  %v2990_v29 = vpop.f32.mrf.mxu1 }
 0x548   :  { %v2611_v30 = vadd.f32 %v2610_v28, %v2537_v25  ;;  %v16281_v14 = vand.u32 4294901760, %v16276_v13  ;;  %v1769_v28 = vld [vmem:[#allocation5] sm:$0xff] }
 0x549   :  { %v14678_v31 = vpop.f32.mrf.mxu0  ;;  %v14703_v32 = vpop.f32.mrf.mxu1 }
 0x54a   :  { %v16244_v33 = vadd.f32 %v2682_v15, %v2611_v30  ;;  %v3717_v19 = vsub.f32 %v16276_v13, %v16281_v14  ;;  %v16289_v32 = vand.u32 4294901760, %v1769_v28 }
 0x54b   :  { %v2766_v34 = vpop.f32.mrf.mxu0  ;;  %v3136_v35 = vpop.f32.mrf.mxu1 }
 0x54c   :  { %v2843_v39 = vadd.f32 %v2842_v22, %v2766_v34  ;;  %v16285_v15 = vand.u32 4294901760, %v3717_v19 }
 0x54d   :  { %v14688_v36 = vpop.f32.mrf.mxu0  ;;  %v14713_v37 = vpop.f32.mrf.mxu1 }
 0x54f   :  { %v2916_v40 = vpop.f32.mrf.mxu0 }
 0x550   :  { %v2917_v41 = vadd.f32 %v2916_v40, %v2843_v39  ;;  %v16292_v39 = vsub.f32 %v1769_v28, %v16289_v32 }
 0x551   :  { %v14698_v43 = vpop.f32.mrf.mxu0 }
 0x552   :  { %v2991_v44 = vadd.f32 %v2990_v29, %v2917_v41 }
 0x553   :  { %v3064_v45 = vpop.f32.mrf.mxu0 }
 0x554   :  { %v3065_v46 = vadd.f32 %v3064_v45, %v2991_v44  ;;  %v16296_v45 = vand.u32 4294901760, %v16292_v39 }
 0x555   :  { %v14708_v47 = vpop.f32.mrf.mxu0 }
 0x556   :  { %v3137_v48 = vadd.f32 %v3136_v35, %v3065_v46  ;;  %v4054_v46 = vsel %vm1773_vm2, %v16244_v33, 0 }
 0x558   :  { %v3140_v49 = vsel %vm1773_vm2, %v3137_v48, -inf }
 0x559   :  { %3141 = vmax.xlane.f32.xlu1 %v3140_v49  ;;  %v16304_v49 = vand.u32 4294901760, %v4054_v46 }
 0x56a   :  { %4504 = vrot.lane.b32.xlu1 %v16159_v42, %s15669_s24 }
 0x56e   :  { %4502 = vrot.lane.b32.xlu1 %v16153_v17, %s15669_s24 }
 0x5e2   :  { %v3142_v52 = vpop.xlane.xlu1 %3141 }
 0x5e3   :  { %v3143_v53 = vsub.f32 %v3137_v48, %v3142_v52 }
 0x5e5   :  { %v3144_v54 = vmul.f32 1.442695, %v3143_v53  ;;  %v4166_v53 = vsub.f32 %v16292_v39, %v16296_v45 }
 0x5e6   :  { %v4505_v41 = vpop.permute.xlu1 %4504 }
 0x5e7   :  { %15543 = vpow2.f32 %v3144_v54  ;;  %v4508_v47 = vsel %vm1773_vm2, %v4505_v41, 0 }
 0x5e8   :  { %v16309_v54 = vand.u32 4294901760, %v4508_v47 }
 0x5f4   :  { %v15544_v56 = vpop.eup %15543 }
 0x5f5   :  { %v3146_v57 = vsel %vm1773_vm2, %v15544_v56, 0.0 }
 0x5f6   :  { %3147 = vadd.xlane.f32.xlu0 %v3146_v57 }
 0x60c   :  { %3152 = vrot.lane.b32.xlu0 %v16186_v16, %s15668_s8 }
 0x67f   :  { %v3148_v58 = vpop.xlane.xlu0 %3147 }
 0x680   :  { %15545 = vrcp.f32 %v3148_v58  ;;  %v16316_v58 = vand.u32 4294901760, %v4166_v53 }
 0x683   :  { %v3153_v59 = vpop.permute.xlu0 %3152 }
 0x684   :  { %v3189_v60 = vand.u32 4294901760, %v3153_v59 }
 0x686   :  { %v3266_v61 = vsub.f32 %v3153_v59, %v3189_v60  ;;  %14715 = vmatpush3.msra.mxu0 %v3189_v60  ;;  %v16319_v59 = vsub.f32 %v4508_v47, %v16309_v54 }
 0x687   :  { %14724 = vmatprep.subr.mxu0 %v15666_v51 }
 0x688   :  { %v3267_v62 = vand.u32 4294901760, %v3266_v61 }
 0x68a   :  { %v3268_v63 = vsub.f32 %v3266_v61, %v3267_v62 }
 0x68c   :  { %v3269_v0 = vand.u32 4294901760, %v3268_v63 }
 0x68d   :  { %v15546_v1 = vpop.eup %15545 }
 0x68e   :  { %14720 = vmatpush3.msra.mxu1 %v3269_v0  ;;  %v3150_v2 = vmul.f32 %v15546_v1, %v15544_v56  ;;  %v4123_v56 = vsub.f32 %v4054_v46, %v16304_v49 }
 0x68f   :  { %14729 = vmatprep.subr.mxu1 %v15666_v51 }
 0x690   :  { %v3156_v3 = vsel %vm1773_vm2, %v3150_v2, 0 }
 0x691   :  { %v3224_v4 = vand.u32 4294901760, %v3156_v3 }
 0x693   :  { %v3225_v5 = vsub.f32 %v3156_v3, %v3224_v4  ;;  %14722 = vmatmul.mubr.f32.vlgmr.msra.gmra.mxu1 %v3224_v4 }
 0x694   :  { %14730 = vmatpush3.msra.mxu1 %v3189_v60  ;;  %14731 = vmatprep.mubr.msk.f32.mxu1 %vm15667_vm1, %v15666_v51 }
 0x695   :  { %14739 = vmatprep.subr.mxu1 %v15666_v51  ;;  %v3226_v7 = vand.u32 4294901760, %v3225_v5 }
 0x697   :  { %14732 = vmatmul.mubr.f32.vlgmr.msra.gmra.mxu1 %v3226_v7  ;;  %v3227_v8 = vsub.f32 %v3225_v5, %v3226_v7 }
 0x698   :  { %14740 = vmatpush3.msra.mxu1 %v3189_v60  ;;  %14741 = vmatprep.mubr.msk.f32.mxu1 %vm15667_vm1, %v15666_v51  ;;  %v4503_v60 = vpop.permute.xlu1 %4502 }
 0x699   :  { %v3228_v9 = vand.u32 4294901760, %v3227_v8  ;;  %14749 = vmatprep.subr.mxu1 %v15666_v51  ;;  %v4506_v63 = vsel %vm1773_vm2, %v4503_v60, 0 }
 0x69a   :  { %v4576_v0 = vand.u32 4294901760, %v4506_v63 }
 0x69b   :  { %14717 = vmatmul.mubr.f32.vlgmr.msra.gmra.mxu0 %v3228_v9  ;;  %14742 = vmatmul.mubr.f32.vlgmr.msra.gmra.mxu1 %v3224_v4 }
 0x69c   :  { %14725 = vmatpush3.msra.mxu0 %v3266_v61  ;;  %14726 = vmatprep.mubr.msk.f32.mxu0 %vm15667_vm1, %v15666_v51  ;;  %v4124_v61 = vand.u32 4294901760, %v4123_v56  ;;  %v4577_v3 = vsub.f32 %v4506_v63, %v4576_v0 }
 0x69d   :  { %14734 = vmatprep.subr.mxu0 %v15666_v51  ;;  %14751 = vmatprep.mubr.msk.f32.mxu1 %vm15667_vm1, %v15666_v51 }
 0x69e   :  { %14750 = vmatpush3.msra.mxu1 %v16285_v15  ;;  %v4125_v1 = vsub.f32 %v4123_v56, %v4124_v61  ;;  %v4578_v7 = vand.u32 4294901760, %v4577_v3 }
 0x69f   :  { %14727 = vmatmul.mubr.f32.vlgmr.msra.gmra.mxu0 %v3225_v5  ;;  %14759 = vmatprep.subr.mxu1 %v15666_v51 }
 0x6a0   :  { %14735 = vmatpush3.msra.mxu0 %v3267_v62  ;;  %14736 = vmatprep.mubr.msk.f32.mxu0 %vm15667_vm1, %v15666_v51  ;;  %v4619_v62 = vand.u32 4294901760, %v16319_v59  ;;  %v4579_v8 = vsub.f32 %v4577_v3, %v4578_v7 }
 0x6a1   :  { %14744 = vmatprep.subr.mxu0 %v15666_v51 }
 0x6a2   :  { %v4620_v2 = vsub.f32 %v16319_v59, %v4619_v62  ;;  %v4580_v9 = vand.u32 4294901760, %v4579_v8 }
 0x6a3   :  { %14737 = vmatmul.mubr.f32.vlgmr.msra.gmra.mxu0 %v3224_v4  ;;  %v4126_v4 = vand.u32 4294901760, %v4125_v1 }
 0x6a4   :  { %14746 = vmatprep.mubr.msk.f32.mxu0 %vm15667_vm1, %v15666_v51  ;;  %14745 = vmatpush3.msra.mxu0 %v16273_v11  ;;  %v4621_v5 = vand.u32 4294901760, %v4620_v2 }
 0x6a5   :  { %14754 = vmatprep.subr.mxu0 %v15666_v51 }
 0x753   :  { %v3306_v23 = vpop.f32.mrf.mxu1 }
 0x755   :  { %v14723_v21 = vpop.f32.mrf.mxu1 }
 0x757   :  { %v3454_v18 = vpop.f32.mrf.mxu1 }
 0x759   :  { %v14733_v24 = vpop.f32.mrf.mxu1 }
 0x75b   :  { %v3230_v22 = vpop.f32.mrf.mxu0  ;;  %v3600_v26 = vpop.f32.mrf.mxu1 }
 0x75c   :  { %v3307_v25 = vadd.f32 %v3306_v23, %v3230_v22 }
 0x75d   :  { %v14718_v27 = vpop.f32.mrf.mxu0  ;;  %v14743_v20 = vpop.f32.mrf.mxu1 }
 0x75f   :  { %v3380_v29 = vpop.f32.mrf.mxu0 }
 0x760   :  { %v3381_v30 = vadd.f32 %v3380_v29, %v3307_v25 }
 0x761   :  { %v14728_v31 = vpop.f32.mrf.mxu0 }
 0x762   :  { %v3455_v34 = vadd.f32 %v3454_v18, %v3381_v30 }
 0x763   :  { %v3528_v35 = vpop.f32.mrf.mxu0 }
 0x764   :  { %v3529_v36 = vadd.f32 %v3528_v35, %v3455_v34 }
 0x765   :  { %v14738_v37 = vpop.f32.mrf.mxu0 }
 0x766   :  { %v3601_v40 = vadd.f32 %v3600_v26, %v3529_v36 }
 0x768   :  { %v3605_v43 = vsel %vm1773_vm2, %v3601_v40, 0 }
 0x769   :  { %v3673_v44 = vand.u32 4294901760, %v3605_v43 }
 0x76b   :  { %v3674_v48 = vsub.f32 %v3605_v43, %v3673_v44  ;;  %14752 = vmatmul.mubr.f32.vlgmr.msra.gmra.mxu1 %v3673_v44 }
 0x76c   :  { %14760 = vmatpush3.msra.mxu1 %v16273_v11  ;;  %14761 = vmatprep.mubr.msk.f32.mxu1 %vm15667_vm1, %v15666_v51 }
 0x76d   :  { %v3675_v52 = vand.u32 4294901760, %v3674_v48  ;;  %14769 = vmatprep.subr.mxu1 %v15666_v51 }
 0x76f   :  { %14762 = vmatmul.mubr.f32.vlgmr.msra.gmra.mxu1 %v3675_v52  ;;  %v3676_v33 = vsub.f32 %v3674_v48, %v3675_v52 }
 0x770   :  { %14770 = vmatpush3.msra.mxu1 %v16273_v11  ;;  %14771 = vmatprep.mubr.msk.f32.mxu1 %vm15667_vm1, %v15666_v51 }
 0x771   :  { %v3677_v57 = vand.u32 4294901760, %v3676_v33  ;;  %14779 = vmatprep.subr.mxu1 %v15666_v51 }
 0x773   :  { %14747 = vmatmul.mubr.f32.vlgmr.msra.gmra.mxu0 %v3677_v57  ;;  %14772 = vmatmul.mubr.f32.vlgmr.msra.gmra.mxu1 %v3673_v44 }
 0x774   :  { %14755 = vmatpush3.msra.mxu0 %v16276_v13  ;;  %14756 = vmatprep.mubr.msk.f32.mxu0 %vm15667_vm1, %v15666_v51 }
 0x775   :  { %14780 = vmatpush3.msra.mxu1 %v16316_v58  ;;  %14781 = vmatprep.mubr.msk.f32.mxu1 %vm15667_vm1, %v15666_v51 }
 0x776   :  { %14764 = vmatprep.subr.mxu0 %v15666_v51  ;;  %14789 = vmatprep.subr.mxu1 %v15666_v51 }
 0x777   :  { %14757 = vmatmul.mubr.f32.vlgmr.msra.gmra.mxu0 %v3674_v48  ;;  %14782 = vmatmul.mubr.f32.vlgmr.msra.gmra.mxu1 %v16304_v49 }
 0x778   :  { %14765 = vmatpush3.msra.mxu0 %v16281_v14  ;;  %14766 = vmatprep.mubr.msk.f32.mxu0 %vm15667_vm1, %v15666_v51 }
 0x779   :  { %14790 = vmatpush3.msra.mxu1 %v16289_v32  ;;  %14791 = vmatprep.mubr.msk.f32.mxu1 %vm15667_vm1, %v15666_v51 }
 0x77a   :  { %14774 = vmatprep.subr.mxu0 %v15666_v51  ;;  %14799 = vmatprep.subr.mxu1 %v15666_v51 }
 0x77b   :  { %14767 = vmatmul.mubr.f32.vlgmr.msra.gmra.mxu0 %v3673_v44  ;;  %14792 = vmatmul.mubr.f32.vlgmr.msra.gmra.mxu1 %v4124_v61 }
 0x77c   :  { %14775 = vmatpush3.msra.mxu0 %v16289_v32  ;;  %14800 = vmatpush3.msra.mxu1 %v16289_v32 }
 0x77d   :  { %14776 = vmatprep.mubr.msk.f32.mxu0 %vm15667_vm1, %v15666_v51  ;;  %14801 = vmatprep.mubr.msk.f32.mxu1 %vm15667_vm1, %v15666_v51 }
 0x77e   :  { %14809 = vmatprep.subr.mxu1 %v15666_v51  ;;  %14784 = vmatprep.subr.mxu0 %v15666_v51 }
 0x77f   :  { %14777 = vmatmul.mubr.f32.vlgmr.msra.gmra.mxu0 %v4126_v4  ;;  %14802 = vmatmul.mubr.f32.vlgmr.msra.gmra.mxu1 %v16304_v49 }
 0x780   :  { %14810 = vmatpush3.xpose.msra.mxu1 %v4621_v5  ;;  %14785 = vmatpush3.msra.mxu0 %v16292_v39 }
 0x781   :  { %14786 = vmatprep.mubr.msk.f32.mxu0 %vm15667_vm1, %v15666_v51  ;;  %14811 = vmatprep.mubr.msk.f32.mxu1 %vm15667_vm1, %v15666_v51 }
 0x782   :  { %14819 = vmatprep.subr.mxu1 %v15666_v51  ;;  %14794 = vmatprep.subr.mxu0 %v15666_v51 }
 0x783   :  { %14787 = vmatmul.mubr.f32.vlgmr.msra.gmra.mxu0 %v4123_v56  ;;  %14812 = vmatmul.mubr.f32.vlgmr.msra.gmra.mxu1 %v4576_v0 }
 0x784   :  { %14820 = vmatpush3.xpose.msra.mxu1 %v16309_v54  ;;  %14795 = vmatpush3.msra.mxu0 %v16296_v45 }
 0x785   :  { %14796 = vmatprep.mubr.msk.f32.mxu0 %vm15667_vm1, %v15666_v51  ;;  %14804 = vmatprep.subr.mxu0 %v15666_v51 }
 0x786   :  { %14821 = vmatprep.mubr.msk.f32.mxu1 %vm15667_vm1, %v15666_v51  ;;  %14829 = vmatprep.subr.mxu1 %v15666_v51 }
 0x787   :  { %14797 = vmatmul.mubr.f32.vlgmr.msra.gmra.mxu0 %v16304_v49  ;;  %14822 = vmatmul.mubr.f32.vlgmr.msra.gmra.mxu1 %v4578_v7 }
 0x788   :  { %14805 = vmatpush3.xpose.msra.mxu0 %v16309_v54  ;;  %14830 = vmatpush3.xpose.msra.mxu1 %v16309_v54 }
 0x789   :  { %14806 = vmatprep.mubr.msk.f32.mxu0 %vm15667_vm1, %v15666_v51  ;;  %14814 = vmatprep.subr.mxu0 %v15666_v51 }
 0x78a   :  { %14831 = vmatprep.mubr.msk.f32.mxu1 %vm15667_vm1, %v15666_v51  ;;  %14839 = vmatprep.subr.mxu1 %v15666_v51 }
 0x78b   :  { %14807 = vmatmul.mubr.f32.vlgmr.msra.gmra.mxu0 %v4580_v9  ;;  %14832 = vmatmul.mubr.f32.vlgmr.msra.gmra.mxu1 %v4576_v0 }
 0x78c   :  { %14815 = vmatpush3.xpose.msra.mxu0 %v16319_v59  ;;  %14816 = vmatprep.mubr.msk.f32.mxu0 %vm15667_vm1, %v15666_v51 }
 0x78d   :  { %14824 = vmatprep.subr.mxu0 %v15666_v51  ;;  %14841 = vmatprep.mubr.msk.f32.mxu1 %vm15667_vm1, %v15666_v51 }
 0x78f   :  { %14817 = vmatmul.mubr.f32.vlgmr.msra.gmra.mxu0 %v4577_v3 }
 0x790   :  { %14825 = vmatpush3.xpose.msra.mxu0 %v4619_v62  ;;  %14826 = vmatprep.mubr.msk.f32.mxu0 %vm15667_vm1, %v15666_v51 }
 0x791   :  { %14834 = vmatprep.subr.mxu0 %v15666_v51 }
 0x793   :  { %14827 = vmatmul.mubr.f32.vlgmr.msra.gmra.mxu0 %v4576_v0 }
 0x794   :  { %14836 = vmatprep.mubr.msk.f32.mxu0 %vm15667_vm1, %v15666_v51 }
 0x82b   :  { %v3755_v10 = vpop.f32.mrf.mxu1 }
 0x82d   :  { %v14753_v19 = vpop.f32.mrf.mxu1 }
 0x82f   :  { %v3903_v23 = vpop.f32.mrf.mxu1 }
 0x831   :  { %v14763_v21 = vpop.f32.mrf.mxu1 }
 0x833   :  { %v3679_v18 = vpop.f32.mrf.mxu0  ;;  %v4049_v24 = vpop.f32.mrf.mxu1 }
 0x834   :  { %v3756_v22 = vadd.f32 %v3755_v10, %v3679_v18 }
 0x835   :  { %v14748_v26 = vpop.f32.mrf.mxu0  ;;  %v14773_v27 = vpop.f32.mrf.mxu1 }
 0x837   :  { %v3829_v20 = vpop.f32.mrf.mxu0  ;;  %v4204_v25 = vpop.f32.mrf.mxu1 }
 0x838   :  { %v3830_v28 = vadd.f32 %v3829_v20, %v3756_v22 }
 0x839   :  { %v14758_v29 = vpop.f32.mrf.mxu0  ;;  %v14783_v30 = vpop.f32.mrf.mxu1 }
 0x83a   :  { %v3904_v31 = vadd.f32 %v3903_v23, %v3830_v28 }
 0x83b   :  { %v3977_v34 = vpop.f32.mrf.mxu0  ;;  %v4352_v35 = vpop.f32.mrf.mxu1 }
 0x83c   :  { %v3978_v36 = vadd.f32 %v3977_v34, %v3904_v31 }
 0x83d   :  { %v14768_v37 = vpop.f32.mrf.mxu0  ;;  %v14793_v40 = vpop.f32.mrf.mxu1 }
 0x83e   :  { %v4050_v41 = vadd.f32 %v4049_v24, %v3978_v36 }
 0x83f   :  { %v4128_v43 = vpop.f32.mrf.mxu0  ;;  %v4498_v44 = vpop.f32.mrf.mxu1 }
 0x840   :  { %v4129_v46 = vadd.f32 %v4128_v43, %v4050_v41 }
 0x841   :  { %v14778_v47 = vpop.f32.mrf.mxu0  ;;  %v14803_v48 = vpop.f32.mrf.mxu1 }
 0x842   :  { %v4205_v49 = vadd.f32 %v4204_v25, %v4129_v46  ;;  %v1771_v47 = vld [vmem:[#allocation5 + $0x10] sm:$0xff] }
 0x843   :  { %v4278_v52 = vpop.f32.mrf.mxu0  ;;  %v4658_v53 = vpop.f32.mrf.mxu1  ;;  %v16414_v48 = vand.u32 4294901760, %v1771_v47 }
 0x844   :  { %v4279_v54 = vadd.f32 %v4278_v52, %v4205_v49 }
 0x845   :  { %v14788_v33 = vpop.f32.mrf.mxu0  ;;  %v14813_v56 = vpop.f32.mrf.mxu1  ;;  %v16417_v49 = vsub.f32 %v1771_v47, %v16414_v48 }
 0x846   :  { %v4353_v57 = vadd.f32 %v4352_v35, %v4279_v54 }
 0x847   :  { %v4426_v59 = vpop.f32.mrf.mxu0  ;;  %v4806_v60 = vpop.f32.mrf.mxu1  ;;  %v16422_v52 = vand.u32 4294901760, %v16417_v49 }
 0x848   :  { %v4427_v61 = vadd.f32 %v4426_v59, %v4353_v57 }
 0x849   :  { %v14798_v62 = vpop.f32.mrf.mxu0  ;;  %v14823_v63 = vpop.f32.mrf.mxu1 }
 0x84a   :  { %v16385_v0 = vadd.f32 %v4498_v44, %v4427_v61 }
 0x84b   :  { %v4582_v1 = vpop.f32.mrf.mxu0  ;;  %v4952_v2 = vpop.f32.mrf.mxu1 }
 0x84c   :  { %v4659_v5 = vadd.f32 %v4658_v53, %v4582_v1  ;;  %v5532_v53 = vsub.f32 %v16417_v49, %v16422_v52 }
 0x84d   :  { %v14808_v3 = vpop.f32.mrf.mxu0  ;;  %v14833_v4 = vpop.f32.mrf.mxu1 }
 0x84e   :  { %v16426_v54 = vand.u32 4294901760, %v5532_v53 }
 0x84f   :  { %v4732_v7 = vpop.f32.mrf.mxu0 }
 0x850   :  { %v4733_v8 = vadd.f32 %v4732_v7, %v4659_v5 }
 0x851   :  { %v14818_v9 = vpop.f32.mrf.mxu0 }
 0x852   :  { %v4807_v10 = vadd.f32 %v4806_v60, %v4733_v8 }
 0x853   :  { %v4880_v19 = vpop.f32.mrf.mxu0 }
 0x854   :  { %v4881_v23 = vadd.f32 %v4880_v19, %v4807_v10 }
 0x855   :  { %v14828_v21 = vpop.f32.mrf.mxu0 }
 0x856   :  { %v4953_v18 = vadd.f32 %v4952_v2, %v4881_v23 }
 0x858   :  { %v4956_v24 = vsel %vm1773_vm2, %v4953_v18, -inf }
 0x859   :  { %4957 = vmax.xlane.f32.xlu1 %v4956_v24 }
 0x86a   :  { %5871 = vrot.lane.b32.xlu1 %v16159_v42, %s15670_s9 }
 0x86e   :  { %5869 = vrot.lane.b32.xlu1 %v16153_v17, %s15670_s9 }
 0x8e2   :  { %v4958_v22 = vpop.xlane.xlu1 %4957 }
 0x8e3   :  { %v4959_v26 = vsub.f32 %v4953_v18, %v4958_v22 }
 0x8e5   :  { %v4960_v27 = vmul.f32 1.442695, %v4959_v26 }
 0x8e6   :  { %v5872_v62 = vpop.permute.xlu1 %5871 }
 0x8e7   :  { %15547 = vpow2.f32 %v4960_v27  ;;  %v5875_v3 = vsel %vm1773_vm2, %v5872_v62, 0 }
 0x8e8   :  { %v5908_v8 = vand.u32 4294901760, %v5875_v3 }
 0x8ea   :  { %v5985_v21 = vsub.f32 %v5875_v3, %v5908_v8  ;;  %v5870_v24 = vpop.permute.xlu1 %5869 }
 0x8ec   :  { %v5986_v27 = vand.u32 4294901760, %v5985_v21 }
 0x8f4   :  { %v15548_v20 = vpop.eup %15547 }
 0x8f5   :  { %v4962_v25 = vsel %vm1773_vm2, %v15548_v20, 0.0 }
 0x8f6   :  { %4963 = vadd.xlane.f32.xlu0 %v4962_v25 }
 0x90c   :  { %4967 = vrot.lane.b32.xlu0 %v16186_v16, %s15669_s24 }
 0x97f   :  { %v4964_v28 = vpop.xlane.xlu0 %4963 }
 0x980   :  { %15549 = vrcp.f32 %v4964_v28 }
 0x983   :  { %v4968_v29 = vpop.permute.xlu0 %4967 }
 0x984   :  { %v5004_v30 = vand.u32 4294901760, %v4968_v29 }
 0x986   :  { %v5081_v31 = vsub.f32 %v4968_v29, %v5004_v30  ;;  %14835 = vmatpush3.msra.mxu0 %v5004_v30 }
 0x987   :  { %14844 = vmatprep.subr.mxu0 %v15666_v51 }
 0x988   :  { %v5082_v17 = vand.u32 4294901760, %v5081_v31 }
 0x98a   :  { %v5083_v42 = vsub.f32 %v5081_v31, %v5082_v17 }
 0x98c   :  { %v5084_v34 = vand.u32 4294901760, %v5083_v42 }
 0x98d   :  { %v15550_v35 = vpop.eup %15549 }
 0x98e   :  { %14840 = vmatpush3.msra.mxu1 %v5084_v34  ;;  %v4966_v36 = vmul.f32 %v15550_v35, %v15548_v20  ;;  %v5873_v20 = vsel %vm1773_vm2, %v5870_v24, 0 }
 0x98f   :  { %14849 = vmatprep.subr.mxu1 %v15666_v51  ;;  %v5943_v28 = vand.u32 4294901760, %v5873_v20 }
 0x990   :  { %v4971_v37 = vsel %vm1773_vm2, %v4966_v36, 0 }
 0x991   :  { %v5039_v40 = vand.u32 4294901760, %v4971_v37 }
 0x993   :  { %v5040_v41 = vsub.f32 %v4971_v37, %v5039_v40  ;;  %14842 = vmatmul.mubr.f32.vlgmr.msra.gmra.mxu1 %v5039_v40 }
 0x994   :  { %14850 = vmatpush3.msra.mxu1 %v5004_v30  ;;  %14851 = vmatprep.mubr.msk.f32.mxu1 %vm15667_vm1, %v15666_v51 }
 0x995   :  { %14859 = vmatprep.subr.mxu1 %v15666_v51  ;;  %v5041_v43 = vand.u32 4294901760, %v5040_v41 }
 0x997   :  { %14852 = vmatmul.mubr.f32.vlgmr.msra.gmra.mxu1 %v5041_v43  ;;  %v5042_v44 = vsub.f32 %v5040_v41, %v5041_v43 }
 0x998   :  { %14860 = vmatpush3.msra.mxu1 %v5004_v30  ;;  %14861 = vmatprep.mubr.msk.f32.mxu1 %vm15667_vm1, %v15666_v51  ;;  %v5987_v30 = vsub.f32 %v5985_v21, %v5986_v27 }
 0x999   :  { %v5043_v46 = vand.u32 4294901760, %v5042_v44  ;;  %14869 = vmatprep.subr.mxu1 %v15666_v51 }
 0x99a   :  { %v5988_v34 = vand.u32 4294901760, %v5987_v30 }
 0x99b   :  { %14837 = vmatmul.mubr.f32.vlgmr.msra.gmra.mxu0 %v5043_v46  ;;  %14862 = vmatmul.mubr.f32.vlgmr.msra.gmra.mxu1 %v5039_v40 }
 0x99c   :  { %14845 = vmatpush3.msra.mxu0 %v5081_v31  ;;  %14846 = vmatprep.mubr.msk.f32.mxu0 %vm15667_vm1, %v15666_v51 }
 0x99d   :  { %14854 = vmatprep.subr.mxu0 %v15666_v51  ;;  %14871 = vmatprep.mubr.msk.f32.mxu1 %vm15667_vm1, %v15666_v51 }
 0x99e   :  { %14870 = vmatpush3.msra.mxu1 %v16426_v54 }
 0x99f   :  { %14847 = vmatmul.mubr.f32.vlgmr.msra.gmra.mxu0 %v5040_v41  ;;  %14879 = vmatprep.subr.mxu1 %v15666_v51 }
 0x9a0   :  { %14855 = vmatpush3.msra.mxu0 %v5082_v17  ;;  %14856 = vmatprep.mubr.msk.f32.mxu0 %vm15667_vm1, %v15666_v51  ;;  %v5944_v17 = vsub.f32 %v5873_v20, %v5943_v28 }
 0x9a1   :  { %14864 = vmatprep.subr.mxu0 %v15666_v51 }
 0x9a2   :  { %v5945_v35 = vand.u32 4294901760, %v5944_v17 }
 0x9a3   :  { %14857 = vmatmul.mubr.f32.vlgmr.msra.gmra.mxu0 %v5039_v40 }
 0x9a4   :  { %14866 = vmatprep.mubr.msk.f32.mxu0 %vm15667_vm1, %v15666_v51  ;;  %14865 = vmatpush3.msra.mxu0 %v16414_v48  ;;  %v5946_v36 = vsub.f32 %v5944_v17, %v5945_v35 }
 0x9a5   :  { %14874 = vmatprep.subr.mxu0 %v15666_v51 }
 0x9a6   :  { %v5947_v37 = vand.u32 4294901760, %v5946_v36 }
 0xa53   :  { %v5121_v33 = vpop.f32.mrf.mxu1 }
 0xa55   :  { %v14843_v56 = vpop.f32.mrf.mxu1 }
 0xa57   :  { %v5269_v57 = vpop.f32.mrf.mxu1 }
 0xa59   :  { %v14853_v59 = vpop.f32.mrf.mxu1 }
 0xa5b   :  { %v5045_v60 = vpop.f32.mrf.mxu0  ;;  %v5415_v61 = vpop.f32.mrf.mxu1 }
 0xa5c   :  { %v5122_v2 = vadd.f32 %v5121_v33, %v5045_v60 }
 0xa5d   :  { %v14838_v63 = vpop.f32.mrf.mxu0  ;;  %v14863_v1 = vpop.f32.mrf.mxu1 }
 0xa5f   :  { %v5195_v4 = vpop.f32.mrf.mxu0 }
 0xa60   :  { %v5196_v5 = vadd.f32 %v5195_v4, %v5122_v2 }
 0xa61   :  { %v14848_v7 = vpop.f32.mrf.mxu0 }
 0xa62   :  { %v5270_v9 = vadd.f32 %v5269_v57, %v5196_v5 }
 0xa63   :  { %v5343_v10 = vpop.f32.mrf.mxu0 }
 0xa64   :  { %v5344_v19 = vadd.f32 %v5343_v10, %v5270_v9 }
 0xa65   :  { %v14858_v23 = vpop.f32.mrf.mxu0 }
 0xa66   :  { %v5416_v18 = vadd.f32 %v5415_v61, %v5344_v19 }
 0xa68   :  { %v5420_v22 = vsel %vm1773_vm2, %v5416_v18, 0 }
 0xa69   :  { %v5488_v26 = vand.u32 4294901760, %v5420_v22 }
 0xa6b   :  { %v5489_v25 = vsub.f32 %v5420_v22, %v5488_v26  ;;  %14872 = vmatmul.mubr.f32.vlgmr.msra.gmra.mxu1 %v5488_v26 }
 0xa6c   :  { %14880 = vmatpush3.msra.mxu1 %v16414_v48  ;;  %14881 = vmatprep.mubr.msk.f32.mxu1 %vm15667_vm1, %v15666_v51 }
 0xa6d   :  { %v5490_v29 = vand.u32 4294901760, %v5489_v25  ;;  %14889 = vmatprep.subr.mxu1 %v15666_v51 }
 0xa6f   :  { %14882 = vmatmul.mubr.f32.vlgmr.msra.gmra.mxu1 %v5490_v29  ;;  %v5491_v31 = vsub.f32 %v5489_v25, %v5490_v29 }
 0xa70   :  { %14890 = vmatpush3.msra.mxu1 %v16414_v48  ;;  %14891 = vmatprep.mubr.msk.f32.mxu1 %vm15667_vm1, %v15666_v51 }
 0xa71   :  { %14899 = vmatprep.subr.mxu1 %v15666_v51  ;;  %v5492_v42 = vand.u32 4294901760, %v5491_v31 }
 0xa73   :  { %14867 = vmatmul.mubr.f32.vlgmr.msra.gmra.mxu0 %v5492_v42  ;;  %14892 = vmatmul.mubr.f32.vlgmr.msra.gmra.mxu1 %v5488_v26 }
 0xa74   :  { %14900 = vmatpush3.xpose.msra.mxu1 %v5988_v34  ;;  %14875 = vmatpush3.msra.mxu0 %v16417_v49 }
 0xa75   :  { %14876 = vmatprep.mubr.msk.f32.mxu0 %vm15667_vm1, %v15666_v51  ;;  %14901 = vmatprep.mubr.msk.f32.mxu1 %vm15667_vm1, %v15666_v51 }
 0xa76   :  { %14909 = vmatprep.subr.mxu1 %v15666_v51  ;;  %14884 = vmatprep.subr.mxu0 %v15666_v51 }
 0xa77   :  { %14877 = vmatmul.mubr.f32.vlgmr.msra.gmra.mxu0 %v5489_v25  ;;  %14902 = vmatmul.mubr.f32.vlgmr.msra.gmra.mxu1 %v5943_v28 }
 0xa78   :  { %14910 = vmatpush3.xpose.msra.mxu1 %v5908_v8  ;;  %14885 = vmatpush3.msra.mxu0 %v16422_v52 }
 0xa79   :  { %14886 = vmatprep.mubr.msk.f32.mxu0 %vm15667_vm1, %v15666_v51  ;;  %14894 = vmatprep.subr.mxu0 %v15666_v51 }
 0xa7a   :  { %14911 = vmatprep.mubr.msk.f32.mxu1 %vm15667_vm1, %v15666_v51  ;;  %14919 = vmatprep.subr.mxu1 %v15666_v51 }
 0xa7b   :  { %14887 = vmatmul.mubr.f32.vlgmr.msra.gmra.mxu0 %v5488_v26  ;;  %14912 = vmatmul.mubr.f32.vlgmr.msra.gmra.mxu1 %v5945_v35 }
 0xa7c   :  { %14895 = vmatpush3.xpose.msra.mxu0 %v5908_v8  ;;  %14920 = vmatpush3.xpose.msra.mxu1 %v5908_v8 }
 0xa7d   :  { %14896 = vmatprep.mubr.msk.f32.mxu0 %vm15667_vm1, %v15666_v51  ;;  %14904 = vmatprep.subr.mxu0 %v15666_v51 }
 0xa7e   :  { %14921 = vmatprep.mubr.msk.f32.mxu1 %vm15667_vm1, %v15666_v51  ;;  %14929 = vmatprep.subr.mxu1 %v15666_v51 }
 0xa7f   :  { %14897 = vmatmul.mubr.f32.vlgmr.msra.gmra.mxu0 %v5947_v37  ;;  %14922 = vmatmul.mubr.f32.vlgmr.msra.gmra.mxu1 %v5943_v28 }
 0xa80   :  { %14905 = vmatpush3.xpose.msra.mxu0 %v5985_v21  ;;  %14906 = vmatprep.mubr.msk.f32.mxu0 %vm15667_vm1, %v15666_v51 }
 0xa81   :  { %14914 = vmatprep.subr.mxu0 %v15666_v51  ;;  %14931 = vmatprep.mubr.msk.f32.mxu1 %vm15667_vm1, %v15666_v51 }
 0xa83   :  { %14907 = vmatmul.mubr.f32.vlgmr.msra.gmra.mxu0 %v5944_v17 }
 0xa84   :  { %14915 = vmatpush3.xpose.msra.mxu0 %v5986_v27  ;;  %14916 = vmatprep.mubr.msk.f32.mxu0 %vm15667_vm1, %v15666_v51 }
 0xa85   :  { %14924 = vmatprep.subr.mxu0 %v15666_v51 }
 0xa87   :  { %14917 = vmatmul.mubr.f32.vlgmr.msra.gmra.mxu0 %v5943_v28 }
 0xa88   :  { %14926 = vmatprep.mubr.msk.f32.mxu0 %vm15667_vm1, %v15666_v51 }
 0xb2b   :  { %v5570_v40 = vpop.f32.mrf.mxu1 }
 0xb2d   :  { %v14873_v41 = vpop.f32.mrf.mxu1 }
 0xb2f   :  { %v5718_v43 = vpop.f32.mrf.mxu1 }
 0xb31   :  { %v14883_v44 = vpop.f32.mrf.mxu1 }
 0xb33   :  { %v5494_v46 = vpop.f32.mrf.mxu0  ;;  %v5864_v47 = vpop.f32.mrf.mxu1 }
 0xb34   :  { %v5571_v53 = vadd.f32 %v5570_v40, %v5494_v46 }
 0xb35   :  { %v14868_v33 = vpop.f32.mrf.mxu0  ;;  %v14893_v56 = vpop.f32.mrf.mxu1 }
 0xb37   :  { %v5644_v57 = vpop.f32.mrf.mxu0  ;;  %v6025_v59 = vpop.f32.mrf.mxu1 }
 0xb38   :  { %v5645_v60 = vadd.f32 %v5644_v57, %v5571_v53 }
 0xb39   :  { %v14878_v61 = vpop.f32.mrf.mxu0  ;;  %v14903_v62 = vpop.f32.mrf.mxu1 }
 0xb3a   :  { %v5719_v63 = vadd.f32 %v5718_v43, %v5645_v60 }
 0xb3b   :  { %v5792_v1 = vpop.f32.mrf.mxu0  ;;  %v6173_v2 = vpop.f32.mrf.mxu1 }
 0xb3c   :  { %v5793_v3 = vadd.f32 %v5792_v1, %v5719_v63 }
 0xb3d   :  { %v14888_v4 = vpop.f32.mrf.mxu0  ;;  %v14913_v5 = vpop.f32.mrf.mxu1 }
 0xb3e   :  { %v5865_v7 = vadd.f32 %v5864_v47, %v5793_v3 }
 0xb3f   :  { %v5949_v8 = vpop.f32.mrf.mxu0  ;;  %v6319_v9 = vpop.f32.mrf.mxu1 }
 0xb40   :  { %v16472_v10 = vadd.f32 %v5865_v7, %v16385_v0  ;;  %v6026_v21 = vadd.f32 %v6025_v59, %v5949_v8  ;;  %v1772_v59 = vld [vmem:[#allocation5 + $0x18] sm:$0xff] }
 0xb41   :  { %v14898_v19 = vpop.f32.mrf.mxu0  ;;  %v14923_v23 = vpop.f32.mrf.mxu1  ;;  %v16499_v60 = vand.u32 4294901760, %v1772_v59 }
 0xb43   :  { %v6099_v18 = vpop.f32.mrf.mxu0  ;;  %v16502_v61 = vsub.f32 %v1772_v59, %v16499_v60 }
 0xb44   :  { %v6100_v24 = vadd.f32 %v6099_v18, %v6026_v21  ;;  %v7240_v21 = vsel %vm1773_vm2, %v16157_v38, 0 }
 0xb45   :  { %v14908_v22 = vpop.f32.mrf.mxu0  ;;  %v16507_v62 = vand.u32 4294901760, %v16502_v61 }
 0xb46   :  { %v6174_v26 = vadd.f32 %v6173_v2, %v6100_v24 }
 0xb47   :  { %v6247_v27 = vpop.f32.mrf.mxu0  ;;  %v6899_v63 = vsub.f32 %v16502_v61, %v16507_v62 }
 0xb48   :  { %v6248_v20 = vadd.f32 %v6247_v27, %v6174_v26  ;;  %v7273_v26 = vand.u32 4294901760, %v7240_v21 }
 0xb49   :  { %v14918_v25 = vpop.f32.mrf.mxu0  ;;  %v16511_v1 = vand.u32 4294901760, %v6899_v63 }
 0xb4a   :  { %v6320_v28 = vadd.f32 %v6319_v9, %v6248_v20 }
 0xb4c   :  { %v6323_v29 = vsel %vm1773_vm2, %v6320_v28, -inf }
 0xb4d   :  { %6324 = vmax.xlane.f32.xlu0 %v6323_v29  ;;  %v16517_v29 = vsub.f32 %v7240_v21, %v7273_v26 }
 0xb63   :  { %6334 = vrot.lane.b32.xlu0 %v16186_v16, %s15670_s9 }
 0xb67   :  { %8148 = vrot.lane.b32.xlu0 %v16148_v6, %s15668_s8 }
 0xbd6   :  { %v6325_v0 = vpop.xlane.xlu0 %6324 }
 0xbd7   :  { %v6326_v30 = vsub.f32 %v6320_v28, %v6325_v0 }
 0xbd9   :  { %v6327_v31 = vmul.f32 1.442695, %v6326_v30 }
 0xbda   :  { %v6335_v17 = vpop.permute.xlu0 %6334 }
 0xbdb   :  { %15551 = vpow2.f32 %v6327_v31  ;;  %v6371_v42 = vand.u32 4294901760, %v6335_v17 }
 0xbdd   :  { %v6448_v34 = vsub.f32 %v6335_v17, %v6371_v42  ;;  %14925 = vmatpush3.msra.mxu0 %v6371_v42  ;;  %v7351_v17 = vand.u32 4294901760, %v16517_v29 }
 0xbde   :  { %14934 = vmatprep.subr.mxu0 %v15666_v51 }
 0xbdf   :  { %v6449_v35 = vand.u32 4294901760, %v6448_v34 }
 0xbe1   :  { %v6450_v36 = vsub.f32 %v6448_v34, %v6449_v35 }
 0xbe3   :  { %v6451_v37 = vand.u32 4294901760, %v6450_v36 }
 0xbe5   :  { %14930 = vmatpush3.msra.mxu1 %v6451_v37  ;;  %v16528_v37 = vand.u32 4294901760, %v16184_v12 }
 0xbe6   :  { %14939 = vmatprep.subr.mxu1 %v15666_v51 }
 0xbe8   :  { %v15552_v16 = vpop.eup %15551 }
 0xbe9   :  { %v6329_v40 = vsel %vm1773_vm2, %v15552_v16, 0.0 }
 0xbea   :  { %6330 = vadd.xlane.f32.xlu1 %v6329_v40 }
 0xc73   :  { %v6331_v41 = vpop.xlane.xlu1 %6330 }
 0xc74   :  { %15553 = vrcp.f32 %v6331_v41 }
 0xc81   :  { %v15554_v43 = vpop.eup %15553 }
 0xc82   :  { %v6333_v44 = vmul.f32 %v15554_v43, %v15552_v16  ;;  %v7352_v16 = vsub.f32 %v16517_v29, %v7351_v17 }
 0xc84   :  { %v6338_v46 = vsel %vm1773_vm2, %v6333_v44, 0  ;;  %v7353_v44 = vand.u32 4294901760, %v7352_v16 }
 0xc85   :  { %v6406_v47 = vand.u32 4294901760, %v6338_v46 }
 0xc87   :  { %v6407_v53 = vsub.f32 %v6338_v46, %v6406_v47  ;;  %14932 = vmatmul.mubr.f32.vlgmr.msra.gmra.mxu1 %v6406_v47  ;;  %v16537_v46 = vsub.f32 %v16184_v12, %v16528_v37 }
 0xc88   :  { %14940 = vmatpush3.msra.mxu1 %v6371_v42  ;;  %14941 = vmatprep.mubr.msk.f32.mxu1 %vm15667_vm1, %v15666_v51 }
 0xc89   :  { %14949 = vmatprep.subr.mxu1 %v15666_v51  ;;  %v6408_v33 = vand.u32 4294901760, %v6407_v53 }
 0xc8b   :  { %14942 = vmatmul.mubr.f32.vlgmr.msra.gmra.mxu1 %v6408_v33  ;;  %v6409_v56 = vsub.f32 %v6407_v53, %v6408_v33 }
 0xc8c   :  { %14950 = vmatpush3.msra.mxu1 %v6371_v42  ;;  %14951 = vmatprep.mubr.msk.f32.mxu1 %vm15667_vm1, %v15666_v51  ;;  %v7237_v42 = vsel %vm1773_vm2, %v16148_v6, 0 }
 0xc8d   :  { %v6410_v57 = vand.u32 4294901760, %v6409_v56  ;;  %14959 = vmatprep.subr.mxu1 %v15666_v51  ;;  %v7308_v36 = vand.u32 4294901760, %v7237_v42 }
 0xc8f   :  { %14927 = vmatmul.mubr.f32.vlgmr.msra.gmra.mxu0 %v6410_v57  ;;  %14952 = vmatmul.mubr.f32.vlgmr.msra.gmra.mxu1 %v6406_v47  ;;  %v7309_v43 = vsub.f32 %v7237_v42, %v7308_v36 }
 0xc90   :  { %14935 = vmatpush3.msra.mxu0 %v6448_v34  ;;  %14936 = vmatprep.mubr.msk.f32.mxu0 %vm15667_vm1, %v15666_v51 }
 0xc91   :  { %14944 = vmatprep.subr.mxu0 %v15666_v51  ;;  %14961 = vmatprep.mubr.msk.f32.mxu1 %vm15667_vm1, %v15666_v51 }
 0xc92   :  { %14960 = vmatpush3.msra.mxu1 %v16511_v1 }
 0xc93   :  { %14937 = vmatmul.mubr.f32.vlgmr.msra.gmra.mxu0 %v6407_v53  ;;  %14969 = vmatprep.subr.mxu1 %v15666_v51  ;;  %v7811_v53 = vand.u32 4294901760, %v16537_v46 }
 0xc94   :  { %14945 = vmatpush3.msra.mxu0 %v6449_v35  ;;  %14946 = vmatprep.mubr.msk.f32.mxu0 %vm15667_vm1, %v15666_v51 }
 0xc95   :  { %14954 = vmatprep.subr.mxu0 %v15666_v51  ;;  %v7812_v56 = vsub.f32 %v16537_v46, %v7811_v53 }
 0xc97   :  { %14947 = vmatmul.mubr.f32.vlgmr.msra.gmra.mxu0 %v6406_v47  ;;  %v7310_v47 = vand.u32 4294901760, %v7309_v43  ;;  %v7813_v59 = vand.u32 4294901760, %v7812_v56 }
 0xc98   :  { %14956 = vmatprep.mubr.msk.f32.mxu0 %vm15667_vm1, %v15666_v51  ;;  %14955 = vmatpush3.msra.mxu0 %v16499_v60 }
 0xc99   :  { %14964 = vmatprep.subr.mxu0 %v15666_v51  ;;  %v7311_v33 = vsub.f32 %v7309_v43, %v7310_v47 }
 0xc9b   :  { %v7312_v57 = vand.u32 4294901760, %v7311_v33 }
 0xd47   :  { %v6488_v2 = vpop.f32.mrf.mxu1 }
 0xd49   :  { %v14933_v3 = vpop.f32.mrf.mxu1 }
 0xd4b   :  { %v6636_v4 = vpop.f32.mrf.mxu1 }
 0xd4d   :  { %v14943_v5 = vpop.f32.mrf.mxu1 }
 0xd4f   :  { %v6412_v7 = vpop.f32.mrf.mxu0  ;;  %v6782_v8 = vpop.f32.mrf.mxu1 }
 0xd50   :  { %v6489_v23 = vadd.f32 %v6488_v2, %v6412_v7 }
 0xd51   :  { %v14928_v9 = vpop.f32.mrf.mxu0  ;;  %v14953_v19 = vpop.f32.mrf.mxu1 }
 0xd53   :  { %v6562_v18 = vpop.f32.mrf.mxu0 }
 0xd54   :  { %v6563_v24 = vadd.f32 %v6562_v18, %v6489_v23 }
 0xd55   :  { %v14938_v22 = vpop.f32.mrf.mxu0 }
 0xd56   :  { %v6637_v27 = vadd.f32 %v6636_v4, %v6563_v24 }
 0xd57   :  { %v6710_v20 = vpop.f32.mrf.mxu0 }
 0xd58   :  { %v6711_v25 = vadd.f32 %v6710_v20, %v6637_v27 }
 0xd59   :  { %v14948_v28 = vpop.f32.mrf.mxu0 }
 0xd5a   :  { %v6783_v0 = vadd.f32 %v6782_v8, %v6711_v25 }
 0xd5c   :  { %v6787_v30 = vsel %vm1773_vm2, %v6783_v0, 0 }
 0xd5d   :  { %v6855_v31 = vand.u32 4294901760, %v6787_v30 }
 0xd5f   :  { %v6856_v34 = vsub.f32 %v6787_v30, %v6855_v31  ;;  %14962 = vmatmul.mubr.f32.vlgmr.msra.gmra.mxu1 %v6855_v31 }
 0xd60   :  { %14970 = vmatpush3.msra.mxu1 %v16499_v60  ;;  %14971 = vmatprep.mubr.msk.f32.mxu1 %vm15667_vm1, %v15666_v51 }
 0xd61   :  { %v6857_v35 = vand.u32 4294901760, %v6856_v34  ;;  %14979 = vmatprep.subr.mxu1 %v15666_v51 }
 0xd63   :  { %14972 = vmatmul.mubr.f32.vlgmr.msra.gmra.mxu1 %v6857_v35  ;;  %v6858_v40 = vsub.f32 %v6856_v34, %v6857_v35 }
 0xd64   :  { %14980 = vmatpush3.msra.mxu1 %v16499_v60  ;;  %14981 = vmatprep.mubr.msk.f32.mxu1 %vm15667_vm1, %v15666_v51 }
 0xd65   :  { %14989 = vmatprep.subr.mxu1 %v15666_v51  ;;  %v6859_v41 = vand.u32 4294901760, %v6858_v40 }
 0xd67   :  { %14957 = vmatmul.mubr.f32.vlgmr.msra.gmra.mxu0 %v6859_v41  ;;  %14982 = vmatmul.mubr.f32.vlgmr.msra.gmra.mxu1 %v6855_v31 }
 0xd68   :  { %14990 = vmatpush3.xpose.msra.mxu1 %v7353_v44  ;;  %14965 = vmatpush3.msra.mxu0 %v16502_v61 }
 0xd69   :  { %14966 = vmatprep.mubr.msk.f32.mxu0 %vm15667_vm1, %v15666_v51  ;;  %14991 = vmatprep.mubr.msk.f32.mxu1 %vm15667_vm1, %v15666_v51 }
 0xd6a   :  { %14999 = vmatprep.subr.mxu1 %v15666_v51  ;;  %14974 = vmatprep.subr.mxu0 %v15666_v51 }
 0xd6b   :  { %14967 = vmatmul.mubr.f32.vlgmr.msra.gmra.mxu0 %v6856_v34  ;;  %14992 = vmatmul.mubr.f32.vlgmr.msra.gmra.mxu1 %v7308_v36 }
 0xd6c   :  { %15000 = vmatpush3.xpose.msra.mxu1 %v7273_v26  ;;  %14975 = vmatpush3.msra.mxu0 %v16507_v62 }
 0xd6d   :  { %14976 = vmatprep.mubr.msk.f32.mxu0 %vm15667_vm1, %v15666_v51  ;;  %14984 = vmatprep.subr.mxu0 %v15666_v51 }
 0xd6e   :  { %15001 = vmatprep.mubr.msk.f32.mxu1 %vm15667_vm1, %v15666_v51  ;;  %15009 = vmatprep.subr.mxu1 %v15666_v51 }
 0xd6f   :  { %14977 = vmatmul.mubr.f32.vlgmr.msra.gmra.mxu0 %v6855_v31  ;;  %15002 = vmatmul.mubr.f32.vlgmr.msra.gmra.mxu1 %v7310_v47 }
 0xd70   :  { %14985 = vmatpush3.xpose.msra.mxu0 %v7273_v26  ;;  %15010 = vmatpush3.xpose.msra.mxu1 %v7273_v26 }
 0xd71   :  { %14986 = vmatprep.mubr.msk.f32.mxu0 %vm15667_vm1, %v15666_v51  ;;  %14994 = vmatprep.subr.mxu0 %v15666_v51 }
 0xd72   :  { %15011 = vmatprep.mubr.msk.f32.mxu1 %vm15667_vm1, %v15666_v51  ;;  %15019 = vmatprep.subr.mxu1 %v15666_v51 }
 0xd73   :  { %14987 = vmatmul.mubr.f32.vlgmr.msra.gmra.mxu0 %v7312_v57  ;;  %15012 = vmatmul.mubr.f32.vlgmr.msra.gmra.mxu1 %v7308_v36 }
 0xd74   :  { %14995 = vmatpush3.xpose.msra.mxu0 %v16517_v29  ;;  %15020 = vmatpush3.msra.mxu1 %v7813_v59 }
 0xd75   :  { %14996 = vmatprep.mubr.msk.f32.mxu0 %vm15667_vm1, %v15666_v51  ;;  %15004 = vmatprep.subr.mxu0 %v15666_v51 }
 0xd76   :  { %15021 = vmatprep.mubr.msk.f32.mxu1 %vm15667_vm1, %v15666_v51  ;;  %15029 = vmatprep.subr.mxu1 %v15666_v51 }
 0xd77   :  { %14997 = vmatmul.mubr.f32.vlgmr.msra.gmra.mxu0 %v7309_v43 }
 0xd78   :  { %15005 = vmatpush3.xpose.msra.mxu0 %v7351_v17  ;;  %15006 = vmatprep.mubr.msk.f32.mxu0 %vm15667_vm1, %v15666_v51 }
 0xd79   :  { %15014 = vmatprep.subr.mxu0 %v15666_v51 }
 0xd7b   :  { %15007 = vmatmul.mubr.f32.vlgmr.msra.gmra.mxu0 %v7308_v36 }
 0xd7c   :  { %15015 = vmatpush3.msra.mxu0 %v16528_v37  ;;  %15016 = vmatprep.mubr.msk.f32.mxu0 %vm15667_vm1, %v15666_v51 }
 0xd7d   :  { %15024 = vmatprep.subr.mxu0 %v15666_v51 }
 0xe1f   :  { %v6937_v63 = vpop.f32.mrf.mxu1 }
 0xe21   :  { %v14963_v2 = vpop.f32.mrf.mxu1 }
 0xe23   :  { %v7085_v3 = vpop.f32.mrf.mxu1 }
 0xe25   :  { %v14973_v4 = vpop.f32.mrf.mxu1 }
 0xe27   :  { %v6861_v5 = vpop.f32.mrf.mxu0  ;;  %v7231_v7 = vpop.f32.mrf.mxu1 }
 0xe28   :  { %v6938_v8 = vadd.f32 %v6937_v63, %v6861_v5 }
 0xe29   :  { %v14958_v9 = vpop.f32.mrf.mxu0  ;;  %v14983_v19 = vpop.f32.mrf.mxu1 }
 0xe2b   :  { %v7011_v23 = vpop.f32.mrf.mxu0  ;;  %v7390_v21 = vpop.f32.mrf.mxu1 }
 0xe2c   :  { %v7012_v18 = vadd.f32 %v7011_v23, %v6938_v8  ;;  %v8149_v23 = vpop.permute.xlu0 %8148 }
 0xe2d   :  { %v14968_v24 = vpop.f32.mrf.mxu0  ;;  %v14993_v22 = vpop.f32.mrf.mxu1 }
 0xe2e   :  { %v7086_v26 = vadd.f32 %v7085_v3, %v7012_v18  ;;  %v8152_v24 = vsel %vm1773_vm2, %v8149_v23, 0 }
 0xe2f   :  { %v7159_v27 = vpop.f32.mrf.mxu0  ;;  %v7538_v20 = vpop.f32.mrf.mxu1 }
 0xe30   :  { %v7160_v25 = vadd.f32 %v7159_v27, %v7086_v26  ;;  %v8222_v27 = vand.u32 4294901760, %v8152_v24 }
 0xe31   :  { %v14978_v28 = vpop.f32.mrf.mxu0  ;;  %v15003_v29 = vpop.f32.mrf.mxu1 }
 0xe32   :  { %v7232_v0 = vadd.f32 %v7231_v7, %v7160_v25  ;;  %v8223_v29 = vsub.f32 %v8152_v24, %v8222_v27 }
 0xe33   :  { %v7314_v30 = vpop.f32.mrf.mxu0  ;;  %v7684_v31 = vpop.f32.mrf.mxu1 }
 0xe34   :  { %v16578_v17 = vadd.f32 %v7232_v0, %v16472_v10  ;;  %v7391_v35 = vadd.f32 %v7390_v21, %v7314_v30 }
 0xe35   :  { %v14988_v42 = vpop.f32.mrf.mxu0  ;;  %v15013_v34 = vpop.f32.mrf.mxu1 }
 0xe37   :  { %v7464_v36 = vpop.f32.mrf.mxu0 }
 0xe38   :  { %v7465_v16 = vadd.f32 %v7464_v36, %v7391_v35 }
 0xe39   :  { %v14998_v40 = vpop.f32.mrf.mxu0 }
 0xe3a   :  { %v7539_v41 = vadd.f32 %v7538_v20, %v7465_v16 }
 0xe3b   :  { %v7612_v43 = vpop.f32.mrf.mxu0 }
 0xe3c   :  { %v7613_v44 = vadd.f32 %v7612_v43, %v7539_v41 }
 0xe3d   :  { %v15008_v47 = vpop.f32.mrf.mxu0 }
 0xe3e   :  { %v7685_v33 = vadd.f32 %v7684_v31, %v7613_v44  ;;  %v8224_v31 = vand.u32 4294901760, %v8223_v29 }
 0xe40   :  { %v7688_v56 = vsel %vm1773_vm2, %v7685_v33, -inf }
 0xe41   :  { %7689 = vmax.xlane.f32.xlu1 %v7688_v56 }
 0xeca   :  { %v7690_v57 = vpop.xlane.xlu1 %7689 }
 0xecb   :  { %v7691_v59 = vsub.f32 %v7685_v33, %v7690_v57 }
 0xecd   :  { %v7692_v63 = vmul.f32 1.442695, %v7691_v59 }
 0xecf   :  { %15555 = vpow2.f32 %v7692_v63 }
 0xedc   :  { %v15556_v10 = vpop.eup %15555 }
 0xedd   :  { %v7694_v2 = vsel %vm1773_vm2, %v15556_v10, 0.0 }
 0xede   :  { %7695 = vadd.xlane.f32.xlu1 %v7694_v2 }
 0xeef   :  { %8150 = vrot.lane.b32.xlu1 %v16157_v38, %s15668_s8 }
 0xf67   :  { %v7696_v3 = vpop.xlane.xlu1 %7695 }
 0xf68   :  { %15557 = vrcp.f32 %v7696_v3 }
 0xf6b   :  { %v8151_v4 = vpop.permute.xlu1 %8150 }
 0xf6c   :  { %v8154_v5 = vsel %vm1773_vm2, %v8151_v4, 0 }
 0xf6d   :  { %v8187_v7 = vand.u32 4294901760, %v8154_v5 }
 0xf6f   :  { %v8264_v9 = vsub.f32 %v8154_v5, %v8187_v7 }
 0xf71   :  { %v8265_v22 = vand.u32 4294901760, %v8264_v9 }
 0xf73   :  { %v8266_v25 = vsub.f32 %v8264_v9, %v8265_v22 }
 0xf75   :  { %v15558_v8 = vpop.eup %15557  ;;  %v8267_v30 = vand.u32 4294901760, %v8266_v25 }
 0xf76   :  { %v7698_v19 = vmul.f32 %v15558_v8, %v15556_v10 }
 0xf78   :  { %v7700_v21 = vsel %vm1773_vm2, %v7698_v19, 0 }
 0xf79   :  { %v7768_v18 = vand.u32 4294901760, %v7700_v21 }
 0xf7b   :  { %v7769_v26 = vsub.f32 %v7700_v21, %v7768_v18  ;;  %15022 = vmatmul.mubr.f32.vlgmr.msra.gmra.mxu1 %v7768_v18 }
 0xf7c   :  { %15030 = vmatpush3.msra.mxu1 %v16528_v37  ;;  %15031 = vmatprep.mubr.msk.f32.mxu1 %vm15667_vm1, %v15666_v51 }
 0xf7d   :  { %15039 = vmatprep.subr.mxu1 %v15666_v51  ;;  %v7770_v20 = vand.u32 4294901760, %v7769_v26 }
 0xf7f   :  { %15032 = vmatmul.mubr.f32.vlgmr.msra.gmra.mxu1 %v7770_v20  ;;  %v7771_v28 = vsub.f32 %v7769_v26, %v7770_v20 }
 0xf80   :  { %15040 = vmatpush3.msra.mxu1 %v16528_v37  ;;  %15041 = vmatprep.mubr.msk.f32.mxu1 %vm15667_vm1, %v15666_v51  ;;  %v8225_v37 = vsub.f32 %v8223_v29, %v8224_v31 }
 0xf81   :  { %15049 = vmatprep.subr.mxu1 %v15666_v51  ;;  %v7772_v0 = vand.u32 4294901760, %v7771_v28 }
 0xf82   :  { %v8226_v42 = vand.u32 4294901760, %v8225_v37 }
 0xf83   :  { %15017 = vmatmul.mubr.f32.vlgmr.msra.gmra.mxu0 %v7772_v0  ;;  %15042 = vmatmul.mubr.f32.vlgmr.msra.gmra.mxu1 %v7768_v18 }
 0xf84   :  { %15025 = vmatpush3.msra.mxu0 %v16537_v46  ;;  %15050 = vmatpush3.xpose.msra.mxu1 %v8267_v30 }
 0xf85   :  { %15026 = vmatprep.mubr.msk.f32.mxu0 %vm15667_vm1, %v15666_v51  ;;  %15034 = vmatprep.subr.mxu0 %v15666_v51 }
 0xf86   :  { %15051 = vmatprep.mubr.msk.f32.mxu1 %vm15667_vm1, %v15666_v51  ;;  %15059 = vmatprep.subr.mxu1 %v15666_v51 }
 0xf87   :  { %15027 = vmatmul.mubr.f32.vlgmr.msra.gmra.mxu0 %v7769_v26  ;;  %15052 = vmatmul.mubr.f32.vlgmr.msra.gmra.mxu1 %v8222_v27 }
 0xf88   :  { %15035 = vmatpush3.msra.mxu0 %v7811_v53  ;;  %15060 = vmatpush3.xpose.msra.mxu1 %v8187_v7 }
 0xf89   :  { %15036 = vmatprep.mubr.msk.f32.mxu0 %vm15667_vm1, %v15666_v51  ;;  %15044 = vmatprep.subr.mxu0 %v15666_v51 }
 0xf8a   :  { %15061 = vmatprep.mubr.msk.f32.mxu1 %vm15667_vm1, %v15666_v51  ;;  %15069 = vmatprep.subr.mxu1 %v15666_v51 }
 0xf8b   :  { %15037 = vmatmul.mubr.f32.vlgmr.msra.gmra.mxu0 %v7768_v18  ;;  %15062 = vmatmul.mubr.f32.vlgmr.msra.gmra.mxu1 %v8224_v31 }
 0xf8c   :  { %15045 = vmatpush3.xpose.msra.mxu0 %v8187_v7  ;;  %15070 = vmatpush3.xpose.msra.mxu1 %v8187_v7 }
 0xf8d   :  { %15046 = vmatprep.mubr.msk.f32.mxu0 %vm15667_vm1, %v15666_v51  ;;  %15054 = vmatprep.subr.mxu0 %v15666_v51 }
 0xf8e   :  { %15071 = vmatprep.mubr.msk.f32.mxu1 %vm15667_vm1, %v15666_v51  ;;  %15079 = vmatprep.subr.mxu1 %v15666_v51 }
 0xf8f   :  { %15047 = vmatmul.mubr.f32.vlgmr.msra.gmra.mxu0 %v8226_v42  ;;  %15072 = vmatmul.mubr.f32.vlgmr.msra.gmra.mxu1 %v8222_v27 }
 0xf90   :  { %15055 = vmatpush3.xpose.msra.mxu0 %v8264_v9  ;;  %15056 = vmatprep.mubr.msk.f32.mxu0 %vm15667_vm1, %v15666_v51 }
 0xf91   :  { %15064 = vmatprep.subr.mxu0 %v15666_v51  ;;  %15081 = vmatprep.mubr.msk.f32.mxu1 %vm15667_vm1, %v15666_v51 }
 0xf93   :  { %15057 = vmatmul.mubr.f32.vlgmr.msra.gmra.mxu0 %v8223_v29 }
 0xf94   :  { %15065 = vmatpush3.xpose.msra.mxu0 %v8265_v22  ;;  %15066 = vmatprep.mubr.msk.f32.mxu0 %vm15667_vm1, %v15666_v51 }
 0xf95   :  { %15074 = vmatprep.subr.mxu0 %v15666_v51 }
 0xf97   :  { %15067 = vmatmul.mubr.f32.vlgmr.msra.gmra.mxu0 %v8222_v27 }
 0xf98   :  { %15076 = vmatprep.mubr.msk.f32.mxu0 %vm15667_vm1, %v15666_v51 }
0x103b   :  { %v7850_v46 = vpop.f32.mrf.mxu1 }
0x103d   :  { %v15023_v53 = vpop.f32.mrf.mxu1 }
0x103f   :  { %v7998_v34 = vpop.f32.mrf.mxu1 }
0x1041   :  { %v15033_v35 = vpop.f32.mrf.mxu1 }
0x1043   :  { %v7774_v36 = vpop.f32.mrf.mxu0  ;;  %v8144_v16 = vpop.f32.mrf.mxu1 }
0x1044   :  { %v7851_v40 = vadd.f32 %v7850_v46, %v7774_v36 }
0x1045   :  { %v15018_v41 = vpop.f32.mrf.mxu0  ;;  %v15043_v43 = vpop.f32.mrf.mxu1 }
0x1047   :  { %v7924_v44 = vpop.f32.mrf.mxu0  ;;  %v8304_v47 = vpop.f32.mrf.mxu1 }
0x1048   :  { %v7925_v33 = vadd.f32 %v7924_v44, %v7851_v40 }
0x1049   :  { %v15028_v56 = vpop.f32.mrf.mxu0  ;;  %v15053_v57 = vpop.f32.mrf.mxu1 }
0x104a   :  { %v7999_v59 = vadd.f32 %v7998_v34, %v7925_v33 }
0x104b   :  { %v8072_v63 = vpop.f32.mrf.mxu0  ;;  %v8452_v10 = vpop.f32.mrf.mxu1 }
0x104c   :  { %v8073_v2 = vadd.f32 %v8072_v63, %v7999_v59 }
0x104d   :  { %v15038_v3 = vpop.f32.mrf.mxu0  ;;  %v15063_v4 = vpop.f32.mrf.mxu1 }
0x104e   :  { %v16626_v5 = vadd.f32 %v8144_v16, %v8073_v2 }
0x104f   :  { %v8228_v7 = vpop.f32.mrf.mxu0  ;;  %v8598_v8 = vpop.f32.mrf.mxu1 }
0x1050   :  { %v8305_v23 = vadd.f32 %v8304_v47, %v8228_v7 }
0x1051   :  { %v15048_v9 = vpop.f32.mrf.mxu0  ;;  %v15073_v19 = vpop.f32.mrf.mxu1 }
0x1053   :  { %v8378_v21 = vpop.f32.mrf.mxu0 }
0x1054   :  { %v8379_v18 = vadd.f32 %v8378_v21, %v8305_v23 }
0x1055   :  { %v15058_v24 = vpop.f32.mrf.mxu0 }
0x1056   :  { %v8453_v22 = vadd.f32 %v8452_v10, %v8379_v18 }
0x1057   :  { %v8526_v26 = vpop.f32.mrf.mxu0 }
0x1058   :  { %v8527_v27 = vadd.f32 %v8526_v26, %v8453_v22 }
0x1059   :  { %v15068_v20 = vpop.f32.mrf.mxu0 }
0x105a   :  { %v8599_v25 = vadd.f32 %v8598_v8, %v8527_v27 }
0x105c   :  { %v8602_v28 = vsel %vm1773_vm2, %v8599_v25, -inf }
0x105d   :  { %8603 = vmax.xlane.f32.xlu0 %v8602_v28  ;;  %v9516_v28 = vsel %vm1773_vm2, %v16626_v5, 0 }
0x1073   :  { %8614 = vrot.lane.b32.xlu0 %v16184_v12, %s15668_s8 }
0x1077   :  { %9964 = vrot.lane.b32.xlu0 %v16148_v6, %s15669_s24 }
0x10e6   :  { %v8604_v29 = vpop.xlane.xlu0 %8603 }
0x10e7   :  { %v8605_v0 = vsub.f32 %v8599_v25, %v8604_v29 }
0x10e9   :  { %v8606_v30 = vmul.f32 1.442695, %v8605_v0 }
0x10ea   :  { %v8615_v31 = vpop.permute.xlu0 %8614 }
0x10eb   :  { %15559 = vpow2.f32 %v8606_v30  ;;  %v8651_v37 = vand.u32 4294901760, %v8615_v31  ;;  %v16666_v30 = vand.u32 4294901760, %v9516_v28 }
0x10ed   :  { %v8728_v42 = vsub.f32 %v8615_v31, %v8651_v37  ;;  %15075 = vmatpush3.msra.mxu0 %v8651_v37  ;;  %v9585_v5 = vsub.f32 %v9516_v28, %v16666_v30 }
0x10ee   :  { %15084 = vmatprep.subr.mxu0 %v15666_v51 }
0x10ef   :  { %v8729_v46 = vand.u32 4294901760, %v8728_v42 }
0x10f1   :  { %v8730_v53 = vsub.f32 %v8728_v42, %v8729_v46 }
0x10f3   :  { %v8731_v34 = vand.u32 4294901760, %v8730_v53 }
0x10f5   :  { %15080 = vmatpush3.msra.mxu1 %v8731_v34  ;;  %v9965_v34 = vpop.permute.xlu0 %9964 }
0x10f6   :  { %15089 = vmatprep.subr.mxu1 %v15666_v51 }
0x10f8   :  { %v15560_v35 = vpop.eup %15559 }
0x10f9   :  { %v8608_v36 = vsel %vm1773_vm2, %v15560_v35, 0.0 }
0x10fa   :  { %8609 = vadd.xlane.f32.xlu1 %v8608_v36 }
0x110b   :  { %9966 = vrot.lane.b32.xlu1 %v16157_v38, %s15669_s24 }
0x1183   :  { %v8610_v16 = vpop.xlane.xlu1 %8609 }
0x1184   :  { %15561 = vrcp.f32 %v8610_v16 }
0x1187   :  { %v9967_v27 = vpop.permute.xlu1 %9966 }
0x1188   :  { %v9970_v29 = vsel %vm1773_vm2, %v9967_v27, 0 }
0x1191   :  { %v15562_v40 = vpop.eup %15561 }
0x1192   :  { %v8612_v41 = vmul.f32 %v15562_v40, %v15560_v35  ;;  %v9968_v35 = vsel %vm1773_vm2, %v9965_v34, 0 }
0x1194   :  { %v8618_v43 = vsel %vm1773_vm2, %v8612_v41, 0 }
0x1195   :  { %v8686_v44 = vand.u32 4294901760, %v8618_v43 }
0x1197   :  { %v8687_v47 = vsub.f32 %v8618_v43, %v8686_v44  ;;  %15082 = vmatmul.mubr.f32.vlgmr.msra.gmra.mxu1 %v8686_v44 }
0x1198   :  { %15090 = vmatpush3.msra.mxu1 %v8651_v37  ;;  %15091 = vmatprep.mubr.msk.f32.mxu1 %vm15667_vm1, %v15666_v51 }
0x1199   :  { %15099 = vmatprep.subr.mxu1 %v15666_v51  ;;  %v8688_v33 = vand.u32 4294901760, %v8687_v47 }
0x119b   :  { %15092 = vmatmul.mubr.f32.vlgmr.msra.gmra.mxu1 %v8688_v33  ;;  %v8689_v56 = vsub.f32 %v8687_v47, %v8688_v33 }
0x119c   :  { %15100 = vmatpush3.msra.mxu1 %v8651_v37  ;;  %15101 = vmatprep.mubr.msk.f32.mxu1 %vm15667_vm1, %v15666_v51  ;;  %v16669_v37 = vand.u32 4294901760, %v9970_v29 }
0x119d   :  { %v8690_v57 = vand.u32 4294901760, %v8689_v56  ;;  %15109 = vmatprep.subr.mxu1 %v15666_v51 }
0x119e   :  { %v16677_v53 = vsub.f32 %v9970_v29, %v16669_v37 }
0x119f   :  { %15077 = vmatmul.mubr.f32.vlgmr.msra.gmra.mxu0 %v8690_v57  ;;  %15102 = vmatmul.mubr.f32.vlgmr.msra.gmra.mxu1 %v8686_v44 }
0x11a0   :  { %15085 = vmatpush3.msra.mxu0 %v8728_v42  ;;  %15086 = vmatprep.mubr.msk.f32.mxu0 %vm15667_vm1, %v15666_v51  ;;  %v10081_v36 = vand.u32 4294901760, %v16677_v53 }
0x11a1   :  { %15094 = vmatprep.subr.mxu0 %v15666_v51  ;;  %15110 = vmatpush3.msra.mxu1 %v16285_v15 }
0x11a2   :  { %15111 = vmatprep.mubr.msk.f32.mxu1 %vm15667_vm1, %v15666_v51  ;;  %15119 = vmatprep.subr.mxu1 %v15666_v51  ;;  %v10082_v16 = vsub.f32 %v16677_v53, %v10081_v36 }
0x11a3   :  { %15087 = vmatmul.mubr.f32.vlgmr.msra.gmra.mxu0 %v8687_v47 }
0x11a4   :  { %15095 = vmatpush3.msra.mxu0 %v8729_v46  ;;  %15096 = vmatprep.mubr.msk.f32.mxu0 %vm15667_vm1, %v15666_v51  ;;  %v10083_v41 = vand.u32 4294901760, %v10082_v16 }
0x11a5   :  { %15104 = vmatprep.subr.mxu0 %v15666_v51 }
0x11a7   :  { %15097 = vmatmul.mubr.f32.vlgmr.msra.gmra.mxu0 %v8686_v44 }
0x11a8   :  { %15105 = vmatpush3.msra.mxu0 %v16273_v11  ;;  %15106 = vmatprep.mubr.msk.f32.mxu0 %vm15667_vm1, %v15666_v51 }
0x11a9   :  { %15114 = vmatprep.subr.mxu0 %v15666_v51 }
0x1257   :  { %v8768_v15 = vpop.f32.mrf.mxu1 }
0x1259   :  { %v15083_v59 = vpop.f32.mrf.mxu1 }
0x125b   :  { %v8916_v63 = vpop.f32.mrf.mxu1 }
0x125d   :  { %v15093_v10 = vpop.f32.mrf.mxu1 }
0x125f   :  { %v8692_v2 = vpop.f32.mrf.mxu0  ;;  %v9062_v3 = vpop.f32.mrf.mxu1 }
0x1260   :  { %v8769_v8 = vadd.f32 %v8768_v15, %v8692_v2 }
0x1261   :  { %v15078_v4 = vpop.f32.mrf.mxu0  ;;  %v15103_v7 = vpop.f32.mrf.mxu1 }
0x1263   :  { %v8842_v9 = vpop.f32.mrf.mxu0 }
0x1264   :  { %v8843_v19 = vadd.f32 %v8842_v9, %v8769_v8 }
0x1265   :  { %v15088_v23 = vpop.f32.mrf.mxu0 }
0x1266   :  { %v8917_v21 = vadd.f32 %v8916_v63, %v8843_v19 }
0x1267   :  { %v8990_v18 = vpop.f32.mrf.mxu0 }
0x1268   :  { %v8991_v24 = vadd.f32 %v8990_v18, %v8917_v21 }
0x1269   :  { %v15098_v22 = vpop.f32.mrf.mxu0 }
0x126a   :  { %v9063_v26 = vadd.f32 %v9062_v3, %v8991_v24 }
0x126c   :  { %v9067_v20 = vsel %vm1773_vm2, %v9063_v26, 0 }
0x126d   :  { %v9135_v25 = vand.u32 4294901760, %v9067_v20 }
0x126f   :  { %v9136_v0 = vsub.f32 %v9067_v20, %v9135_v25  ;;  %15112 = vmatmul.mubr.f32.vlgmr.msra.gmra.mxu1 %v9135_v25 }
0x1270   :  { %15120 = vmatpush3.msra.mxu1 %v16273_v11  ;;  %15121 = vmatprep.mubr.msk.f32.mxu1 %vm15667_vm1, %v15666_v51 }
0x1271   :  { %v9137_v31 = vand.u32 4294901760, %v9136_v0  ;;  %15129 = vmatprep.subr.mxu1 %v15666_v51 }
0x1273   :  { %v9138_v42 = vsub.f32 %v9136_v0, %v9137_v31  ;;  %15122 = vmatmul.mubr.f32.vlgmr.msra.gmra.mxu1 %v9137_v31 }
0x1274   :  { %15130 = vmatpush3.msra.mxu1 %v16273_v11  ;;  %15131 = vmatprep.mubr.msk.f32.mxu1 %vm15667_vm1, %v15666_v51  ;;  %v9586_v11 = vand.u32 4294901760, %v9585_v5 }
0x1275   :  { %v9139_v46 = vand.u32 4294901760, %v9138_v42  ;;  %15139 = vmatprep.subr.mxu1 %v15666_v51 }
0x1277   :  { %15107 = vmatmul.mubr.f32.vlgmr.msra.gmra.mxu0 %v9139_v46  ;;  %15132 = vmatmul.mubr.f32.vlgmr.msra.gmra.mxu1 %v9135_v25 }
0x1278   :  { %15115 = vmatpush3.msra.mxu0 %v16276_v13  ;;  %15116 = vmatprep.mubr.msk.f32.mxu0 %vm15667_vm1, %v15666_v51  ;;  %v9587_v13 = vsub.f32 %v9585_v5, %v9586_v11 }
0x1279   :  { %15140 = vmatpush3.msra.mxu1 %v16316_v58  ;;  %15141 = vmatprep.mubr.msk.f32.mxu1 %vm15667_vm1, %v15666_v51  ;;  %v10038_v58 = vand.u32 4294901760, %v9968_v35 }
0x127a   :  { %15124 = vmatprep.subr.mxu0 %v15666_v51  ;;  %15149 = vmatprep.subr.mxu1 %v15666_v51 }
0x127b   :  { %15117 = vmatmul.mubr.f32.vlgmr.msra.gmra.mxu0 %v9136_v0  ;;  %15142 = vmatmul.mubr.f32.vlgmr.msra.gmra.mxu1 %v16666_v30  ;;  %v10039_v40 = vsub.f32 %v9968_v35, %v10038_v58 }
0x127c   :  { %15125 = vmatpush3.msra.mxu0 %v16281_v14  ;;  %15126 = vmatprep.mubr.msk.f32.mxu0 %vm15667_vm1, %v15666_v51  ;;  %v9588_v14 = vand.u32 4294901760, %v9587_v13 }
0x127d   :  { %15150 = vmatpush3.msra.mxu1 %v16289_v32  ;;  %15151 = vmatprep.mubr.msk.f32.mxu1 %vm15667_vm1, %v15666_v51 }
0x127e   :  { %15134 = vmatprep.subr.mxu0 %v15666_v51  ;;  %15159 = vmatprep.subr.mxu1 %v15666_v51 }
0x127f   :  { %15127 = vmatmul.mubr.f32.vlgmr.msra.gmra.mxu0 %v9135_v25  ;;  %15152 = vmatmul.mubr.f32.vlgmr.msra.gmra.mxu1 %v9586_v11 }
0x1280   :  { %15135 = vmatpush3.msra.mxu0 %v16289_v32  ;;  %15160 = vmatpush3.msra.mxu1 %v16289_v32  ;;  %v10040_v32 = vand.u32 4294901760, %v10039_v40 }
0x1281   :  { %15136 = vmatprep.mubr.msk.f32.mxu0 %vm15667_vm1, %v15666_v51  ;;  %15161 = vmatprep.mubr.msk.f32.mxu1 %vm15667_vm1, %v15666_v51 }
0x1282   :  { %15169 = vmatprep.subr.mxu1 %v15666_v51  ;;  %15144 = vmatprep.subr.mxu0 %v15666_v51  ;;  %v10041_v43 = vsub.f32 %v10039_v40, %v10040_v32 }
0x1283   :  { %15137 = vmatmul.mubr.f32.vlgmr.msra.gmra.mxu0 %v9588_v14  ;;  %15162 = vmatmul.mubr.f32.vlgmr.msra.gmra.mxu1 %v16666_v30 }
0x1284   :  { %15170 = vmatpush3.xpose.msra.mxu1 %v10083_v41  ;;  %15145 = vmatpush3.msra.mxu0 %v16292_v39  ;;  %v10042_v39 = vand.u32 4294901760, %v10041_v43 }
0x1285   :  { %15146 = vmatprep.mubr.msk.f32.mxu0 %vm15667_vm1, %v15666_v51  ;;  %15171 = vmatprep.mubr.msk.f32.mxu1 %vm15667_vm1, %v15666_v51 }
0x1286   :  { %15179 = vmatprep.subr.mxu1 %v15666_v51  ;;  %15154 = vmatprep.subr.mxu0 %v15666_v51 }
0x1287   :  { %15147 = vmatmul.mubr.f32.vlgmr.msra.gmra.mxu0 %v9585_v5  ;;  %15172 = vmatmul.mubr.f32.vlgmr.msra.gmra.mxu1 %v10038_v58 }
0x1288   :  { %15180 = vmatpush3.xpose.msra.mxu1 %v16669_v37  ;;  %15155 = vmatpush3.msra.mxu0 %v16296_v45 }
0x1289   :  { %15156 = vmatprep.mubr.msk.f32.mxu0 %vm15667_vm1, %v15666_v51  ;;  %15164 = vmatprep.subr.mxu0 %v15666_v51 }
0x128a   :  { %15181 = vmatprep.mubr.msk.f32.mxu1 %vm15667_vm1, %v15666_v51  ;;  %15189 = vmatprep.subr.mxu1 %v15666_v51 }
0x128b   :  { %15157 = vmatmul.mubr.f32.vlgmr.msra.gmra.mxu0 %v16666_v30  ;;  %15182 = vmatmul.mubr.f32.vlgmr.msra.gmra.mxu1 %v10040_v32 }
0x128c   :  { %15165 = vmatpush3.xpose.msra.mxu0 %v16669_v37  ;;  %15190 = vmatpush3.xpose.msra.mxu1 %v16669_v37 }
0x128d   :  { %15166 = vmatprep.mubr.msk.f32.mxu0 %vm15667_vm1, %v15666_v51  ;;  %15174 = vmatprep.subr.mxu0 %v15666_v51 }
0x128e   :  { %15191 = vmatprep.mubr.msk.f32.mxu1 %vm15667_vm1, %v15666_v51  ;;  %15199 = vmatprep.subr.mxu1 %v15666_v51 }
0x128f   :  { %15167 = vmatmul.mubr.f32.vlgmr.msra.gmra.mxu0 %v10042_v39  ;;  %15192 = vmatmul.mubr.f32.vlgmr.msra.gmra.mxu1 %v10038_v58 }
0x1290   :  { %15175 = vmatpush3.xpose.msra.mxu0 %v16677_v53  ;;  %15176 = vmatprep.mubr.msk.f32.mxu0 %vm15667_vm1, %v15666_v51 }
0x1291   :  { %15184 = vmatprep.subr.mxu0 %v15666_v51  ;;  %15201 = vmatprep.mubr.msk.f32.mxu1 %vm15667_vm1, %v15666_v51 }
0x1293   :  { %15177 = vmatmul.mubr.f32.vlgmr.msra.gmra.mxu0 %v10039_v40 }
0x1294   :  { %15185 = vmatpush3.xpose.msra.mxu0 %v10081_v36  ;;  %15186 = vmatprep.mubr.msk.f32.mxu0 %vm15667_vm1, %v15666_v51 }
0x1295   :  { %15194 = vmatprep.subr.mxu0 %v15666_v51 }
0x1297   :  { %15187 = vmatmul.mubr.f32.vlgmr.msra.gmra.mxu0 %v10038_v58 }
0x1298   :  { %15196 = vmatprep.mubr.msk.f32.mxu0 %vm15667_vm1, %v15666_v51 }
0x132f   :  { %v9217_v45 = vpop.f32.mrf.mxu1 }
0x1331   :  { %v15113_v44 = vpop.f32.mrf.mxu1 }
0x1333   :  { %v9365_v47 = vpop.f32.mrf.mxu1 }
0x1335   :  { %v15123_v33 = vpop.f32.mrf.mxu1 }
0x1337   :  { %v9141_v56 = vpop.f32.mrf.mxu0  ;;  %v9511_v57 = vpop.f32.mrf.mxu1 }
0x1338   :  { %v9218_v15 = vadd.f32 %v9217_v45, %v9141_v56 }
0x1339   :  { %v15108_v59 = vpop.f32.mrf.mxu0  ;;  %v15133_v63 = vpop.f32.mrf.mxu1 }
0x133b   :  { %v9291_v10 = vpop.f32.mrf.mxu0  ;;  %v9666_v2 = vpop.f32.mrf.mxu1 }
0x133c   :  { %v9292_v3 = vadd.f32 %v9291_v10, %v9218_v15 }
0x133d   :  { %v15118_v4 = vpop.f32.mrf.mxu0  ;;  %v15143_v7 = vpop.f32.mrf.mxu1 }
0x133e   :  { %v9366_v8 = vadd.f32 %v9365_v47, %v9292_v3 }
0x133f   :  { %v9439_v9 = vpop.f32.mrf.mxu0  ;;  %v9814_v19 = vpop.f32.mrf.mxu1 }
0x1340   :  { %v9440_v23 = vadd.f32 %v9439_v9, %v9366_v8 }
0x1341   :  { %v15128_v21 = vpop.f32.mrf.mxu0  ;;  %v15153_v18 = vpop.f32.mrf.mxu1 }
0x1342   :  { %v9512_v24 = vadd.f32 %v9511_v57, %v9440_v23 }
0x1343   :  { %v9590_v22 = vpop.f32.mrf.mxu0  ;;  %v9960_v26 = vpop.f32.mrf.mxu1 }
0x1344   :  { %v9591_v27 = vadd.f32 %v9590_v22, %v9512_v24 }
0x1345   :  { %v15138_v20 = vpop.f32.mrf.mxu0  ;;  %v15163_v25 = vpop.f32.mrf.mxu1 }
0x1346   :  { %v9667_v28 = vadd.f32 %v9666_v2, %v9591_v27 }
0x1347   :  { %v9740_v29 = vpop.f32.mrf.mxu0  ;;  %v10120_v0 = vpop.f32.mrf.mxu1 }
0x1348   :  { %v9741_v30 = vadd.f32 %v9740_v29, %v9667_v28 }
0x1349   :  { %v15148_v31 = vpop.f32.mrf.mxu0  ;;  %v15173_v37 = vpop.f32.mrf.mxu1 }
0x134a   :  { %v9815_v42 = vadd.f32 %v9814_v19, %v9741_v30 }
0x134b   :  { %v9888_v5 = vpop.f32.mrf.mxu0  ;;  %v10268_v46 = vpop.f32.mrf.mxu1 }
0x134c   :  { %v9889_v53 = vadd.f32 %v9888_v5, %v9815_v42 }
0x134d   :  { %v15158_v34 = vpop.f32.mrf.mxu0  ;;  %v15183_v11 = vpop.f32.mrf.mxu1 }
0x134e   :  { %v16743_v35 = vadd.f32 %v9960_v26, %v9889_v53 }
0x134f   :  { %v10044_v36 = vpop.f32.mrf.mxu0  ;;  %v10414_v13 = vpop.f32.mrf.mxu1 }
0x1350   :  { %v10121_v14 = vadd.f32 %v10120_v0, %v10044_v36 }
0x1351   :  { %v15168_v58 = vpop.f32.mrf.mxu0  ;;  %v15193_v16 = vpop.f32.mrf.mxu1 }
0x1353   :  { %v10194_v40 = vpop.f32.mrf.mxu0 }
0x1354   :  { %v10195_v41 = vadd.f32 %v10194_v40, %v10121_v14 }
0x1355   :  { %v15178_v32 = vpop.f32.mrf.mxu0 }
0x1356   :  { %v10269_v43 = vadd.f32 %v10268_v46, %v10195_v41 }
0x1357   :  { %v10342_v39 = vpop.f32.mrf.mxu0 }
0x1358   :  { %v10343_v45 = vadd.f32 %v10342_v39, %v10269_v43 }
0x1359   :  { %v15188_v44 = vpop.f32.mrf.mxu0 }
0x135a   :  { %v10415_v47 = vadd.f32 %v10414_v13, %v10343_v45 }
0x135c   :  { %v10418_v33 = vsel %vm1773_vm2, %v10415_v47, -inf }
0x135d   :  { %10419 = vmax.xlane.f32.xlu0 %v10418_v33 }
0x1373   :  { %10429 = vrot.lane.b32.xlu0 %v16184_v12, %s15669_s24 }
0x1377   :  { %11331 = vrot.lane.b32.xlu0 %v16148_v6, %s15670_s9 }
0x13e6   :  { %v10420_v56 = vpop.xlane.xlu0 %10419 }
0x13e7   :  { %v10421_v57 = vsub.f32 %v10415_v47, %v10420_v56 }
0x13e9   :  { %v10422_v15 = vmul.f32 1.442695, %v10421_v57 }
0x13ea   :  { %v10430_v59 = vpop.permute.xlu0 %10429 }
0x13eb   :  { %15563 = vpow2.f32 %v10422_v15  ;;  %v10466_v63 = vand.u32 4294901760, %v10430_v59 }
0x13ed   :  { %v10543_v10 = vsub.f32 %v10430_v59, %v10466_v63  ;;  %15195 = vmatpush3.msra.mxu0 %v10466_v63 }
0x13ee   :  { %15204 = vmatprep.subr.mxu0 %v15666_v51  ;;  %v11332_v14 = vpop.permute.xlu0 %11331 }
0x13ef   :  { %v10544_v2 = vand.u32 4294901760, %v10543_v10  ;;  %v11335_v32 = vsel %vm1773_vm2, %v11332_v14, 0 }
0x13f0   :  { %v11405_v45 = vand.u32 4294901760, %v11335_v32 }
0x13f1   :  { %v10545_v3 = vsub.f32 %v10543_v10, %v10544_v2 }
0x13f2   :  { %v11406_v56 = vsub.f32 %v11335_v32, %v11405_v45 }
0x13f3   :  { %v10546_v4 = vand.u32 4294901760, %v10545_v3 }
0x13f4   :  { %v11407_v59 = vand.u32 4294901760, %v11406_v56 }
0x13f5   :  { %15200 = vmatpush3.msra.mxu1 %v10546_v4 }
0x13f6   :  { %15209 = vmatprep.subr.mxu1 %v15666_v51 }
0x13f8   :  { %v15564_v7 = vpop.eup %15563 }
0x13f9   :  { %v10424_v8 = vsel %vm1773_vm2, %v15564_v7, 0.0 }
0x13fa   :  { %10425 = vadd.xlane.f32.xlu1 %v10424_v8 }
0x140b   :  { %11333 = vrot.lane.b32.xlu1 %v16157_v38, %s15670_s9 }
0x1483   :  { %v10426_v6 = vpop.xlane.xlu1 %10425 }
0x1484   :  { %15565 = vrcp.f32 %v10426_v6 }
0x1487   :  { %v11334_v29 = vpop.permute.xlu1 %11333 }
0x1488   :  { %v11337_v37 = vsel %vm1773_vm2, %v11334_v29, 0 }
0x1489   :  { %v11370_v53 = vand.u32 4294901760, %v11337_v37 }
0x148b   :  { %v11447_v58 = vsub.f32 %v11337_v37, %v11370_v53 }
0x148d   :  { %v11448_v43 = vand.u32 4294901760, %v11447_v58 }
0x148f   :  { %v11449_v47 = vsub.f32 %v11447_v58, %v11448_v43 }
0x1491   :  { %v15566_v9 = vpop.eup %15565  ;;  %v11450_v15 = vand.u32 4294901760, %v11449_v47 }
0x1492   :  { %v10428_v19 = vmul.f32 %v15566_v9, %v15564_v7 }
0x1494   :  { %v10433_v23 = vsel %vm1773_vm2, %v10428_v19, 0 }
0x1495   :  { %v10501_v21 = vand.u32 4294901760, %v10433_v23 }
0x1497   :  { %v10502_v18 = vsub.f32 %v10433_v23, %v10501_v21  ;;  %15202 = vmatmul.mubr.f32.vlgmr.msra.gmra.mxu1 %v10501_v21 }
0x1498   :  { %15210 = vmatpush3.msra.mxu1 %v10466_v63  ;;  %15211 = vmatprep.mubr.msk.f32.mxu1 %vm15667_vm1, %v15666_v51 }
0x1499   :  { %15219 = vmatprep.subr.mxu1 %v15666_v51  ;;  %v10503_v24 = vand.u32 4294901760, %v10502_v18 }
0x149b   :  { %15212 = vmatmul.mubr.f32.vlgmr.msra.gmra.mxu1 %v10503_v24  ;;  %v10504_v22 = vsub.f32 %v10502_v18, %v10503_v24 }
0x149c   :  { %15220 = vmatpush3.msra.mxu1 %v10466_v63  ;;  %15221 = vmatprep.mubr.msk.f32.mxu1 %vm15667_vm1, %v15666_v51 }
0x149d   :  { %v10505_v38 = vand.u32 4294901760, %v10504_v22  ;;  %15229 = vmatprep.subr.mxu1 %v15666_v51 }
0x149f   :  { %15197 = vmatmul.mubr.f32.vlgmr.msra.gmra.mxu0 %v10505_v38  ;;  %15222 = vmatmul.mubr.f32.vlgmr.msra.gmra.mxu1 %v10501_v21 }
0x14a0   :  { %15205 = vmatpush3.msra.mxu0 %v10543_v10  ;;  %15206 = vmatprep.mubr.msk.f32.mxu0 %vm15667_vm1, %v15666_v51 }
0x14a1   :  { %15214 = vmatprep.subr.mxu0 %v15666_v51  ;;  %15230 = vmatpush3.msra.mxu1 %v16426_v54 }
0x14a2   :  { %15231 = vmatprep.mubr.msk.f32.mxu1 %vm15667_vm1, %v15666_v51  ;;  %15239 = vmatprep.subr.mxu1 %v15666_v51 }
0x14a3   :  { %15207 = vmatmul.mubr.f32.vlgmr.msra.gmra.mxu0 %v10502_v18 }
0x14a4   :  { %15215 = vmatpush3.msra.mxu0 %v10544_v2  ;;  %15216 = vmatprep.mubr.msk.f32.mxu0 %vm15667_vm1, %v15666_v51 }
0x14a5   :  { %15224 = vmatprep.subr.mxu0 %v15666_v51 }
0x14a7   :  { %15217 = vmatmul.mubr.f32.vlgmr.msra.gmra.mxu0 %v10501_v21 }
0x14a8   :  { %15225 = vmatpush3.msra.mxu0 %v16414_v48  ;;  %15226 = vmatprep.mubr.msk.f32.mxu0 %vm15667_vm1, %v15666_v51 }
0x14a9   :  { %15234 = vmatprep.subr.mxu0 %v15666_v51 }
0x1557   :  { %v10583_v54 = vpop.f32.mrf.mxu1 }
0x1559   :  { %v15203_v26 = vpop.f32.mrf.mxu1 }
0x155b   :  { %v10731_v27 = vpop.f32.mrf.mxu1 }
0x155d   :  { %v15213_v20 = vpop.f32.mrf.mxu1 }
0x155f   :  { %v10507_v25 = vpop.f32.mrf.mxu0  ;;  %v10877_v28 = vpop.f32.mrf.mxu1 }
0x1560   :  { %v10584_v31 = vadd.f32 %v10583_v54, %v10507_v25 }
0x1561   :  { %v15198_v0 = vpop.f32.mrf.mxu0  ;;  %v15223_v30 = vpop.f32.mrf.mxu1 }
0x1563   :  { %v10657_v42 = vpop.f32.mrf.mxu0 }
0x1564   :  { %v10658_v5 = vadd.f32 %v10657_v42, %v10584_v31 }
0x1565   :  { %v15208_v46 = vpop.f32.mrf.mxu0 }
0x1566   :  { %v10732_v34 = vadd.f32 %v10731_v27, %v10658_v5  ;;  %v16823_v46 = vld [vmem:[%s17201_s10] ss:$0 sm:$0xff] }
0x1567   :  { %v10805_v11 = vpop.f32.mrf.mxu0 }
0x1568   :  { %v10806_v36 = vadd.f32 %v10805_v11, %v10732_v34 }
0x1569   :  { %v15218_v13 = vpop.f32.mrf.mxu0 }
0x156a   :  { %v10878_v16 = vadd.f32 %v10877_v28, %v10806_v36  ;;  %v12705_v36 = vadd.f32 %v16823_v46, %v16578_v17 }
0x156c   :  { %v10882_v40 = vsel %vm1773_vm2, %v10878_v16, 0  ;;  %v16829_v16 = vadd.f32 %v12705_v36, %v15856_v50 }
0x156d   :  { %v10950_v41 = vand.u32 4294901760, %v10882_v40 }
0x156e   :  { %v12711_v14 = vsel %vm102_vm0, %v16829_v16, 0.0 }
0x156f   :  { %v10951_v39 = vsub.f32 %v10882_v40, %v10950_v41  ;;  %15232 = vmatmul.mubr.f32.vlgmr.msra.gmra.mxu1 %v10950_v41 }
0x1570   :  { %15240 = vmatpush3.msra.mxu1 %v16414_v48  ;;  %15241 = vmatprep.mubr.msk.f32.mxu1 %vm15667_vm1, %v15666_v51 }
0x1571   :  { %v10952_v44 = vand.u32 4294901760, %v10951_v39  ;;  %15249 = vmatprep.subr.mxu1 %v15666_v51 }
0x1573   :  { %v10953_v33 = vsub.f32 %v10951_v39, %v10952_v44  ;;  %15242 = vmatmul.mubr.f32.vlgmr.msra.gmra.mxu1 %v10952_v44 }
0x1574   :  { %15250 = vmatpush3.msra.mxu1 %v16414_v48  ;;  %15251 = vmatprep.mubr.msk.f32.mxu1 %vm15667_vm1, %v15666_v51  ;;  %v11408_v48 = vsub.f32 %v11406_v56, %v11407_v59 }
0x1575   :  { %v10954_v57 = vand.u32 4294901760, %v10953_v33  ;;  %15259 = vmatprep.subr.mxu1 %v15666_v51 }
0x1577   :  { %15227 = vmatmul.mubr.f32.vlgmr.msra.gmra.mxu0 %v10954_v57  ;;  %15252 = vmatmul.mubr.f32.vlgmr.msra.gmra.mxu1 %v10950_v41 }
0x1578   :  { %15260 = vmatpush3.xpose.msra.mxu1 %v11450_v15  ;;  %15235 = vmatpush3.msra.mxu0 %v16417_v49  ;;  %v11409_v49 = vand.u32 4294901760, %v11408_v48 }
0x1579   :  { %15236 = vmatprep.mubr.msk.f32.mxu0 %vm15667_vm1, %v15666_v51  ;;  %15261 = vmatprep.mubr.msk.f32.mxu1 %vm15667_vm1, %v15666_v51 }
0x157a   :  { %15269 = vmatprep.subr.mxu1 %v15666_v51  ;;  %15244 = vmatprep.subr.mxu0 %v15666_v51 }
0x157b   :  { %15237 = vmatmul.mubr.f32.vlgmr.msra.gmra.mxu0 %v10951_v39  ;;  %15262 = vmatmul.mubr.f32.vlgmr.msra.gmra.mxu1 %v11405_v45 }
0x157c   :  { %15270 = vmatpush3.xpose.msra.mxu1 %v11370_v53  ;;  %15245 = vmatpush3.msra.mxu0 %v16422_v52 }
0x157d   :  { %15246 = vmatprep.mubr.msk.f32.mxu0 %vm15667_vm1, %v15666_v51  ;;  %15254 = vmatprep.subr.mxu0 %v15666_v51 }
0x157e   :  { %15271 = vmatprep.mubr.msk.f32.mxu1 %vm15667_vm1, %v15666_v51  ;;  %15279 = vmatprep.subr.mxu1 %v15666_v51 }
0x157f   :  { %15247 = vmatmul.mubr.f32.vlgmr.msra.gmra.mxu0 %v10950_v41  ;;  %15272 = vmatmul.mubr.f32.vlgmr.msra.gmra.mxu1 %v11407_v59 }
0x1580   :  { %15255 = vmatpush3.xpose.msra.mxu0 %v11370_v53  ;;  %15280 = vmatpush3.xpose.msra.mxu1 %v11370_v53 }
0x1581   :  { %15256 = vmatprep.mubr.msk.f32.mxu0 %vm15667_vm1, %v15666_v51  ;;  %15264 = vmatprep.subr.mxu0 %v15666_v51 }
0x1582   :  { %15281 = vmatprep.mubr.msk.f32.mxu1 %vm15667_vm1, %v15666_v51  ;;  %15289 = vmatprep.subr.mxu1 %v15666_v51 }
0x1583   :  { %15257 = vmatmul.mubr.f32.vlgmr.msra.gmra.mxu0 %v11409_v49  ;;  %15282 = vmatmul.mubr.f32.vlgmr.msra.gmra.mxu1 %v11405_v45 }
0x1584   :  { %15265 = vmatpush3.xpose.msra.mxu0 %v11447_v58  ;;  %15266 = vmatprep.mubr.msk.f32.mxu0 %vm15667_vm1, %v15666_v51 }
0x1585   :  { %15274 = vmatprep.subr.mxu0 %v15666_v51  ;;  %15291 = vmatprep.mubr.msk.f32.mxu1 %vm15667_vm1, %v15666_v51 }
0x1587   :  { %15267 = vmatmul.mubr.f32.vlgmr.msra.gmra.mxu0 %v11406_v56 }
0x1588   :  { %15275 = vmatpush3.xpose.msra.mxu0 %v11448_v43  ;;  %15276 = vmatprep.mubr.msk.f32.mxu0 %vm15667_vm1, %v15666_v51 }
0x1589   :  { %15284 = vmatprep.subr.mxu0 %v15666_v51 }
0x158b   :  { %15277 = vmatmul.mubr.f32.vlgmr.msra.gmra.mxu0 %v11405_v45 }
0x158c   :  { %15286 = vmatprep.mubr.msk.f32.mxu0 %vm15667_vm1, %v15666_v51 }
0x162f   :  { %v11032_v52 = vpop.f32.mrf.mxu1 }
0x1631   :  { %v15233_v63 = vpop.f32.mrf.mxu1 }
0x1633   :  { %v11180_v10 = vpop.f32.mrf.mxu1 }
0x1635   :  { %v15243_v2 = vpop.f32.mrf.mxu1 }
0x1637   :  { %v10956_v3 = vpop.f32.mrf.mxu0  ;;  %v11326_v4 = vpop.f32.mrf.mxu1 }
0x1638   :  { %v11033_v7 = vadd.f32 %v11032_v52, %v10956_v3 }
0x1639   :  { %v15228_v8 = vpop.f32.mrf.mxu0  ;;  %v15253_v6 = vpop.f32.mrf.mxu1 }
0x163b   :  { %v11106_v9 = vpop.f32.mrf.mxu0  ;;  %v11487_v19 = vpop.f32.mrf.mxu1 }
0x163c   :  { %v11107_v23 = vadd.f32 %v11106_v9, %v11033_v7 }
0x163d   :  { %v15238_v21 = vpop.f32.mrf.mxu0  ;;  %v15263_v18 = vpop.f32.mrf.mxu1 }
0x163e   :  { %v11181_v24 = vadd.f32 %v11180_v10, %v11107_v23 }
0x163f   :  { %v11254_v22 = vpop.f32.mrf.mxu0  ;;  %v11635_v38 = vpop.f32.mrf.mxu1 }
0x1640   :  { %v11255_v54 = vadd.f32 %v11254_v22, %v11181_v24 }
0x1641   :  { %v15248_v26 = vpop.f32.mrf.mxu0  ;;  %v15273_v27 = vpop.f32.mrf.mxu1 }
0x1642   :  { %v11327_v20 = vadd.f32 %v11326_v4, %v11255_v54 }
0x1643   :  { %v11411_v25 = vpop.f32.mrf.mxu0  ;;  %v11781_v28 = vpop.f32.mrf.mxu1 }
0x1644   :  { %v16818_v29 = vadd.f32 %v11327_v20, %v16743_v35  ;;  %v11488_v31 = vadd.f32 %v11487_v19, %v11411_v25 }
0x1645   :  { %v15258_v0 = vpop.f32.mrf.mxu0  ;;  %v15283_v30 = vpop.f32.mrf.mxu1 }
0x1647   :  { %v11561_v37 = vpop.f32.mrf.mxu0 }
0x1648   :  { %v11562_v42 = vadd.f32 %v11561_v37, %v11488_v31 }
0x1649   :  { %v15268_v5 = vpop.f32.mrf.mxu0 }
0x164a   :  { %v11636_v53 = vadd.f32 %v11635_v38, %v11562_v42 }
0x164b   :  { %v11709_v34 = vpop.f32.mrf.mxu0 }
0x164c   :  { %v11710_v11 = vadd.f32 %v11709_v34, %v11636_v53 }
0x164d   :  { %v15278_v13 = vpop.f32.mrf.mxu0 }
0x164e   :  { %v11782_v35 = vadd.f32 %v11781_v28, %v11710_v11 }
0x1650   :  { %v11785_v58 = vsel %vm1773_vm2, %v11782_v35, -inf }
0x1651   :  { %11786 = vmax.xlane.f32.xlu1 %v11785_v58 }
0x1655   :  { %12712 = vadd.xlane.f32.xlu1 %v12711_v14 }
0x16da   :  { %v11787_v40 = vpop.xlane.xlu1 %11786 }
0x16db   :  { %v11788_v41 = vsub.f32 %v11782_v35, %v11787_v40 }
0x16dd   :  { %v11789_v32 = vmul.f32 1.442695, %v11788_v41 }
0x16de   :  { %v12713_v58 = vpop.xlane.xlu1 %12712 }
0x16df   :  { %15567 = vpow2.f32 %v11789_v32  ;;  %v12717_v41 = vmul.f32 0.03125, %v12713_v58 }
0x16ec   :  { %v15568_v43 = vpop.eup %15567 }
0x16ed   :  { %v11791_v39 = vsel %vm1773_vm2, %v15568_v43, 0.0 }
0x16ee   :  { %11792 = vadd.xlane.f32.xlu0 %v11791_v39 }
0x1704   :  { %11796 = vrot.lane.b32.xlu0 %v16184_v12, %s15670_s9 }
0x1777   :  { %v11793_v17 = vpop.xlane.xlu0 %11792 }
0x1778   :  { %15569 = vrcp.f32 %v11793_v17 }
0x177b   :  { %v11797_v50 = vpop.permute.xlu0 %11796 }
0x177c   :  { %v11833_v45 = vand.u32 4294901760, %v11797_v50 }
0x177e   :  { %v11910_v44 = vsub.f32 %v11797_v50, %v11833_v45  ;;  %15285 = vmatpush3.msra.mxu0 %v11833_v45 }
0x177f   :  { %15294 = vmatprep.subr.mxu0 %v15666_v51 }
0x1780   :  { %v11911_v47 = vand.u32 4294901760, %v11910_v44 }
0x1782   :  { %v11912_v33 = vsub.f32 %v11910_v44, %v11911_v47 }
0x1784   :  { %v11913_v56 = vand.u32 4294901760, %v11912_v33 }
0x1785   :  { %v15570_v57 = vpop.eup %15569 }
0x1786   :  { %v11795_v15 = vmul.f32 %v15570_v57, %v15568_v43  ;;  %15290 = vmatpush3.msra.mxu1 %v11913_v56  ;;  %v12719_v43 = vsub.f32 %v16829_v16, %v12717_v41 }
0x1787   :  { %15299 = vmatprep.subr.mxu1 %v15666_v51 }
0x1788   :  { %v11800_v59 = vsel %vm1773_vm2, %v11795_v15, 0 }
0x1789   :  { %v11868_v48 = vand.u32 4294901760, %v11800_v59 }
0x178b   :  { %v11869_v12 = vsub.f32 %v11800_v59, %v11868_v48  ;;  %15292 = vmatmul.mubr.f32.vlgmr.msra.gmra.mxu1 %v11868_v48  ;;  %v13930_v59 = vld [vmem:[%s17202_s11] ss:$0 sm:$0xff] }
0x178c   :  { %15300 = vmatpush3.msra.mxu1 %v11833_v45  ;;  %15301 = vmatprep.mubr.msk.f32.mxu1 %vm15667_vm1, %v15666_v51 }
0x178d   :  { %15309 = vmatprep.subr.mxu1 %v15666_v51  ;;  %v11870_v49 = vand.u32 4294901760, %v11869_v12 }
0x178f   :  { %15302 = vmatmul.mubr.f32.vlgmr.msra.gmra.mxu1 %v11870_v49  ;;  %v11871_v52 = vsub.f32 %v11869_v12, %v11870_v49 }
0x1790   :  { %15310 = vmatpush3.msra.mxu1 %v11833_v45  ;;  %15311 = vmatprep.mubr.msk.f32.mxu1 %vm15667_vm1, %v15666_v51  ;;  %v12721_v45 = vmul.f32 %v12719_v43, %v12719_v43 }
0x1791   :  { %v11872_v63 = vand.u32 4294901760, %v11871_v52  ;;  %15319 = vmatprep.subr.mxu1 %v15666_v51 }
0x1793   :  { %15287 = vmatmul.mubr.f32.vlgmr.msra.gmra.mxu0 %v11872_v63  ;;  %15312 = vmatmul.mubr.f32.vlgmr.msra.gmra.mxu1 %v11868_v48 }
0x1794   :  { %15295 = vmatpush3.msra.mxu0 %v11910_v44  ;;  %15296 = vmatprep.mubr.msk.f32.mxu0 %vm15667_vm1, %v15666_v51  ;;  %v12723_v44 = vsel %vm102_vm0, %v12721_v45, 0.0  ;;  %v13305_v45 = vld [vmem:[%s17206_s15 + $0x28] sm:$0xff] }
0x1795   :  { %15304 = vmatprep.subr.mxu0 %v15666_v51  ;;  %15320 = vmatpush3.msra.mxu1 %v16511_v1 }
0x1796   :  { %15321 = vmatprep.mubr.msk.f32.mxu1 %vm15667_vm1, %v15666_v51  ;;  %15329 = vmatprep.subr.mxu1 %v15666_v51 }
0x1797   :  { %15297 = vmatmul.mubr.f32.vlgmr.msra.gmra.mxu0 %v11869_v12  ;;  %v13931_v12 = vld [vmem:[%s17203_s12] ss:$0 sm:$0xff] }
0x1798   :  { %15305 = vmatpush3.msra.mxu0 %v11911_v47  ;;  %15306 = vmatprep.mubr.msk.f32.mxu0 %vm15667_vm1, %v15666_v51 }
0x1799   :  { %15314 = vmatprep.subr.mxu0 %v15666_v51 }
0x179b   :  { %15307 = vmatmul.mubr.f32.vlgmr.msra.gmra.mxu0 %v11868_v48 }
0x179c   :  { %15315 = vmatpush3.msra.mxu0 %v16499_v60  ;;  %15316 = vmatprep.mubr.msk.f32.mxu0 %vm15667_vm1, %v15666_v51 }
0x179d   :  { %15324 = vmatprep.subr.mxu0 %v15666_v51 }
0x184b   :  { %v11950_v1 = vpop.f32.mrf.mxu1 }
0x184d   :  { %v15293_v10 = vpop.f32.mrf.mxu1 }
0x184e   :  { %v12756_v10 = vld [vmem:[#allocation7 + $0x18] sm:$0xff] }
0x184f   :  { %v12098_v2 = vpop.f32.mrf.mxu1 }
0x1851   :  { %v15303_v3 = vpop.f32.mrf.mxu1 }
0x1853   :  { %v11874_v4 = vpop.f32.mrf.mxu0  ;;  %v12244_v7 = vpop.f32.mrf.mxu1 }
0x1854   :  { %v11951_v9 = vadd.f32 %v11950_v1, %v11874_v4  ;;  %v12755_v4 = vld [vmem:[#allocation7 + $0x10] sm:$0xff] }
0x1855   :  { %v15288_v8 = vpop.f32.mrf.mxu0  ;;  %v15313_v6 = vpop.f32.mrf.mxu1 }
0x1856   :  { %v16906_v8 = vand.u32 4294901760, %v12755_v4 }
0x1857   :  { %v12024_v19 = vpop.f32.mrf.mxu0 }
0x1858   :  { %v12025_v23 = vadd.f32 %v12024_v19, %v11951_v9  ;;  %v12754_v9 = vld [vmem:[#allocation7 + $0x8] sm:$0xff] }
0x1859   :  { %v15298_v21 = vpop.f32.mrf.mxu0 }
0x185a   :  { %v12099_v18 = vadd.f32 %v12098_v2, %v12025_v23  ;;  %v16897_v2 = vand.u32 4294901760, %v12756_v10  ;;  %v16915_v23 = vsub.f32 %v12755_v4, %v16906_v8  ;;  %v16917_v21 = vand.u32 4294901760, %v12754_v9 }
0x185b   :  { %v12172_v24 = vpop.f32.mrf.mxu0 }
0x185c   :  { %v12173_v22 = vadd.f32 %v12172_v24, %v12099_v18  ;;  %v12753_v24 = vld [vmem:[#allocation7] sm:$0xff] }
0x185d   :  { %v15308_v38 = vpop.f32.mrf.mxu0 }
0x185e   :  { %v12245_v54 = vadd.f32 %v12244_v7, %v12173_v22  ;;  %v16904_v7 = vsub.f32 %v12756_v10, %v16897_v2  ;;  %v16925_v38 = vand.u32 4294901760, %v16915_v23 }
0x1860   :  { %v12249_v26 = vsel %vm1773_vm2, %v12245_v54, 0  ;;  %v16912_v19 = vand.u32 4294901760, %v16904_v7  ;;  %v16928_v54 = vsub.f32 %v12754_v9, %v16917_v21 }
0x1861   :  { %v12317_v27 = vand.u32 4294901760, %v12249_v26 }
0x1862   :  { %v12887_v22 = vsub.f32 %v16904_v7, %v16912_v19 }
0x1863   :  { %v12318_v20 = vsub.f32 %v12249_v26, %v12317_v27  ;;  %15322 = vmatmul.mubr.f32.vlgmr.msra.gmra.mxu1 %v12317_v27  ;;  %v16930_v26 = vand.u32 4294901760, %v12753_v24 }
0x1864   :  { %15330 = vmatpush3.msra.mxu1 %v16499_v60  ;;  %15331 = vmatprep.mubr.msk.f32.mxu1 %vm15667_vm1, %v15666_v51 }
0x1865   :  { %v12319_v25 = vand.u32 4294901760, %v12318_v20  ;;  %15339 = vmatprep.subr.mxu1 %v15666_v51 }
0x1867   :  { %v12320_v28 = vsub.f32 %v12318_v20, %v12319_v25  ;;  %15332 = vmatmul.mubr.f32.vlgmr.msra.gmra.mxu1 %v12319_v25  ;;  %v12894_v25 = vsub.f32 %v16915_v23, %v16925_v38 }
0x1868   :  { %15340 = vmatpush3.msra.mxu1 %v16499_v60  ;;  %15341 = vmatprep.mubr.msk.f32.mxu1 %vm15667_vm1, %v15666_v51 }
0x1869   :  { %v12321_v0 = vand.u32 4294901760, %v12320_v28  ;;  %v16937_v28 = vand.u32 4294901760, %v16928_v54 }
0x186b   :  { %15317 = vmatmul.mubr.f32.vlgmr.msra.gmra.mxu0 %v12321_v0  ;;  %15342 = vmatmul.mubr.f32.vlgmr.msra.gmra.mxu1 %v12317_v27  ;;  %v12906_v0 = vsub.f32 %v12753_v24, %v16930_v26 }
0x186c   :  { %15325 = vmatpush3.msra.mxu0 %v16502_v61  ;;  %15326 = vmatprep.mubr.msk.f32.mxu0 %vm15667_vm1, %v15666_v51 }
0x186d   :  { %15334 = vmatprep.subr.mxu0 %v15666_v51 }
0x186f   :  { %15327 = vmatmul.mubr.f32.vlgmr.msra.gmra.mxu0 %v12318_v20  ;;  %v12888_v20 = vand.u32 4294901760, %v12887_v22 }
0x1870   :  { %15335 = vmatpush3.msra.mxu0 %v16507_v62  ;;  %15336 = vmatprep.mubr.msk.f32.mxu0 %vm15667_vm1, %v15666_v51 }
0x1871   :  { %15344 = vmatprep.subr.mxu0 %v16897_v2  ;;  %15355 = vmatprep.subr.mxu1 %v12888_v20 }
0x1872   :  { %15356 = vmatpush3.msra.mxu1 %v12888_v20 }
0x1873   :  { %15337 = vmatmul.mubr.f32.vlgmr.msra.gmra.mxu0 %v12317_v27 }
0x1874   :  { %15345 = vmatpush3.msra.mxu0 %v16897_v2 }
0x1875   :  { %15346 = vmatprep.subr.mxu0 %v16906_v8 }
0x1876   :  { %15347 = vmatpush3.msra.mxu0 %v16906_v8 }
0x1877   :  { %15348 = vmatprep.subr.mxu0 %v16917_v21 }
0x1878   :  { %15349 = vmatpush3.msra.mxu0 %v16917_v21 }
0x1879   :  { %15350 = vmatprep.subr.mxu0 %v16930_v26 }
0x187a   :  { %15351 = vmatpush3.msra.mxu0 %v16930_v26 }
0x187b   :  { %15366 = vmatprep.subr.mxu0 %v16904_v7 }
0x1923   :  { %v12399_v60 = vpop.f32.mrf.mxu1 }
0x1925   :  { %v15323_v30 = vpop.f32.mrf.mxu1 }
0x1926   :  { %v12901_v30 = vsub.f32 %v16928_v54, %v16937_v28 }
0x1927   :  { %v12547_v31 = vpop.f32.mrf.mxu1 }
0x1929   :  { %v15333_v37 = vpop.f32.mrf.mxu1 }
0x192a   :  { %v12902_v37 = vand.u32 4294901760, %v12901_v30 }
0x192b   :  { %v12323_v42 = vpop.f32.mrf.mxu0  ;;  %v12693_v5 = vpop.f32.mrf.mxu1 }
0x192c   :  { %v12400_v34 = vadd.f32 %v12399_v60, %v12323_v42  ;;  %v12895_v60 = vand.u32 4294901760, %v12894_v25 }
0x192d   :  { %v15318_v53 = vpop.f32.mrf.mxu0  ;;  %v15343_v61 = vpop.f32.mrf.mxu1 }
0x192e   :  { %15357 = vmatprep.subr.mxu1 %v12895_v60 }
0x192f   :  { %v12473_v11 = vpop.f32.mrf.mxu0  ;;  %15358 = vmatpush3.msra.mxu1 %v12895_v60 }
0x1930   :  { %v12474_v36 = vadd.f32 %v12473_v11, %v12400_v34  ;;  %15359 = vmatprep.subr.mxu1 %v12902_v37 }
0x1931   :  { %v15328_v13 = vpop.f32.mrf.mxu0  ;;  %15360 = vmatpush3.msra.mxu1 %v12902_v37 }
0x1932   :  { %v12548_v35 = vadd.f32 %v12547_v31, %v12474_v36  ;;  %v16944_v31 = vand.u32 4294901760, %v12906_v0 }
0x1933   :  { %v12621_v14 = vpop.f32.mrf.mxu0 }
0x1934   :  { %v12622_v62 = vadd.f32 %v12621_v14, %v12548_v35  ;;  %v12908_v42 = vsub.f32 %v12906_v0, %v16944_v31 }
0x1935   :  { %v15338_v40 = vpop.f32.mrf.mxu0 }
0x1936   :  { %v12694_v51 = vadd.f32 %v12693_v5, %v12622_v62  ;;  %v12909_v5 = vand.u32 4294901760, %v12908_v42 }
0x1938   :  { %v12697_v32 = vadd.f32 %v12694_v51, %v16818_v29  ;;  %15361 = vmatprep.subr.mxu1 %v12909_v5 }
0x1939   :  { %15362 = vmatpush3.msra.mxu1 %v12909_v5  ;;  %v13932_v5 = vld [vmem:[%s17205_s14] ss:$0 sm:$0xff] }
0x193a   :  { %v12706_v39 = vadd.f32 %v16823_v46, %v12697_v32  ;;  %15377 = vmatprep.subr.mxu1 %v16897_v2  ;;  %v13307_v32 = vld [vmem:[%s17206_s15 + $0x38] sm:$0xff] }
0x193c   :  { %v12708_v17 = vadd.f32 %v12706_v39, %v15863_v55  ;;  %v13306_v39 = vld [vmem:[%s17206_s15 + $0x30] sm:$0xff] }
0x193e   :  { %v12714_v50 = vsel %vm102_vm0, %v12708_v17, 0.0 }
0x193f   :  { %12715 = vadd.xlane.f32.xlu1 %v12714_v50  ;;  %v16996_v50 = vand.u32 4294901760, %v13306_v39 }
0x1943   :  { %12724 = vadd.xlane.f32.xlu1 %v12723_v44 }
0x19c8   :  { %v12716_v47 = vpop.xlane.xlu1 %12715 }
0x19c9   :  { %v12718_v33 = vmul.f32 0.03125, %v12716_v47  ;;  %v17007_v47 = vsub.f32 %v13306_v39, %v16996_v50 }
0x19cb   :  { %v16880_v56 = vsub.f32 %v12708_v17, %v12718_v33  ;;  %v17009_v33 = vand.u32 4294901760, %v13305_v45 }
0x19cc   :  { %v12725_v57 = vpop.xlane.xlu1 %12724 }
0x19cd   :  { %v12729_v15 = vmul.f32 0.03125, %v12725_v57  ;;  %v12722_v29 = vmul.f32 %v16880_v56, %v16880_v56 }
0x19cf   :  { %v12731_v16 = vadd.f32 1e-05, %v12729_v15  ;;  %v12726_v46 = vsel %vm102_vm0, %v12722_v29, 0.0  ;;  %v17019_v15 = vand.u32 4294901760, %v17007_v47  ;;  %v17022_v29 = vsub.f32 %v13305_v45, %v17009_v33 }
0x19d0   :  { %12727 = vadd.xlane.f32.xlu1 %v12726_v46  ;;  %v13303_v46 = vld [vmem:[%s17206_s15 + $0x18] sm:$0xff] }
0x19d1   :  { %15571 = vrsqrt.f32 %v12731_v16 }
0x19de   :  { %v15572_v55 = vpop.eup %15571 }
0x19df   :  { %v12735_v48 = vmul.f32 %v15572_v55, %v12719_v43  ;;  %v16988_v43 = vand.u32 4294901760, %v13307_v32 }
0x19e1   :  { %v12743_v49 = vmul.f32 %v13930_v59, %v12735_v48  ;;  %v16994_v17 = vsub.f32 %v13307_v32, %v16988_v43  ;;  %v17034_v48 = vand.u32 4294901760, %v17022_v29 }
0x19e3   :  { %v16891_v52 = vadd.f32 %v13931_v12, %v12743_v49  ;;  %v17004_v44 = vand.u32 4294901760, %v16994_v17  ;;  %v17040_v49 = vand.u32 4294901760, %v13303_v46  ;;  %v13449_v10 = vsub.f32 %v17022_v29, %v17034_v48 }
0x19e5   :  { %v12765_v63 = vsel %vm102_vm0, %v16891_v52, 0  ;;  %v13435_v57 = vsub.f32 %v16994_v17, %v17004_v44  ;;  %v17054_v4 = vsub.f32 %v13303_v46, %v17040_v49 }
0x19e6   :  { %v16895_v1 = vand.u32 4294901760, %v12765_v63 }
0x19e7   :  { %v13436_v55 = vand.u32 4294901760, %v13435_v57 }
0x19e8   :  { %15363 = vmatprep.mubr.f32.mxu1 %v16895_v1  ;;  %v16901_v3 = vsub.f32 %v12765_v63, %v16895_v1  ;;  %v13302_v63 = vld [vmem:[%s17206_s15 + $0x10] sm:$0xff] }
0x19ea   :  { %v12841_v6 = vand.u32 4294901760, %v16901_v3 }
0x19ec   :  { %v12842_v18 = vsub.f32 %v16901_v3, %v12841_v6 }
0x19ee   :  { %v12843_v27 = vand.u32 4294901760, %v12842_v18 }
0x19f0   :  { %15352 = vmatprep.mubr.f32.mxu0 %v12843_v27 }
0x1a59   :  { %v12728_v53 = vpop.xlane.xlu1 %12727 }
0x1a5a   :  { %v12730_v61 = vmul.f32 0.03125, %v12728_v53 }
0x1a5c   :  { %v12732_v34 = vadd.f32 1e-05, %v12730_v61 }
0x1a5e   :  { %15573 = vrsqrt.f32 %v12732_v34 }
0x1a6b   :  { %v15574_v11 = vpop.eup %15573 }
0x1a6c   :  { %v12736_v36 = vmul.f32 %v15574_v11, %v16880_v56  ;;  %v13304_v56 = vld [vmem:[%s17206_s15 + $0x20] sm:$0xff] }
0x1a6d   :  { %v17024_v16 = vand.u32 4294901760, %v13304_v56 }
0x1a6e   :  { %v12744_v13 = vmul.f32 %v13930_v59, %v12736_v36  ;;  %v13442_v59 = vsub.f32 %v17007_v47, %v17019_v15 }
0x1a70   :  { %v16950_v35 = vadd.f32 %v13931_v12, %v12744_v13  ;;  %v17037_v12 = vsub.f32 %v13304_v56, %v17024_v16 }
0x1a72   :  { %v12768_v58 = vsel %vm102_vm0, %v16950_v35, 0 }
0x1a73   :  { %v12849_v14 = vand.u32 4294901760, %v12768_v58 }
0x1a75   :  { %v12850_v62 = vsub.f32 %v12768_v58, %v12849_v14  ;;  %15364 = vmatmul.mubr.f32.vlgmr.msra.gmra.mxu1 %v12849_v14 }
0x1a76   :  { %15378 = vmatpush3.msra.mxu1 %v16897_v2  ;;  %15385 = vmatprep.mubr.f32.mxu1 %v12841_v6 }
0x1a77   :  { %15379 = vmatprep.subr.mxu1 %v16906_v8  ;;  %v12851_v40 = vand.u32 4294901760, %v12850_v62 }
0x1a78   :  { %15380 = vmatpush3.msra.mxu1 %v16906_v8 }
0x1a79   :  { %15381 = vmatprep.subr.mxu1 %v16917_v21  ;;  %v12852_v41 = vsub.f32 %v12850_v62, %v12851_v40 }
0x1a7a   :  { %15382 = vmatpush3.msra.mxu1 %v16917_v21 }
0x1a7b   :  { %15383 = vmatprep.subr.mxu1 %v16930_v26  ;;  %v12853_v51 = vand.u32 4294901760, %v12852_v41 }
0x1a7c   :  { %15384 = vmatpush3.msra.mxu1 %v16930_v26 }
0x1a7d   :  { %15386 = vmatmul.mubr.f32.vlgmr.msra.gmra.mxu1 %v12851_v40  ;;  %15399 = vmatprep.subr.mxu1 %v16897_v2 }
0x1a7e   :  { %15353 = vmatmul.mubr.f32.vlgmr.msra.gmra.mxu0 %v12853_v51  ;;  %15400 = vmatpush3.msra.mxu1 %v16897_v2  ;;  %v17049_v2 = vand.u32 4294901760, %v17037_v12 }
0x1a7f   :  { %15367 = vmatpush3.msra.mxu0 %v16904_v7  ;;  %15407 = vmatprep.mubr.f32.mxu1 %v16895_v1  ;;  %v13301_v7 = vld [vmem:[%s17206_s15 + $0x8] sm:$0xff] }
0x1a80   :  { %15368 = vmatprep.subr.mxu0 %v16915_v23  ;;  %15374 = vmatprep.mubr.f32.mxu0 %v16901_v3  ;;  %v17051_v3 = vand.u32 4294901760, %v13302_v63  ;;  %v13456_v6 = vsub.f32 %v17037_v12, %v17049_v2 }
0x1a81   :  { %15401 = vmatprep.subr.mxu1 %v16906_v8  ;;  %15369 = vmatpush3.msra.mxu0 %v16915_v23  ;;  %v17069_v23 = vand.u32 4294901760, %v17054_v4 }
0x1a82   :  { %15402 = vmatpush3.msra.mxu1 %v16906_v8  ;;  %15370 = vmatprep.subr.mxu0 %v16928_v54  ;;  %v13450_v8 = vand.u32 4294901760, %v13449_v10  ;;  %v17063_v9 = vsub.f32 %v13302_v63, %v17051_v3  ;;  %v13457_v18 = vand.u32 4294901760, %v13456_v6 }
0x1a83   :  { %15403 = vmatprep.subr.mxu1 %v16917_v21  ;;  %15371 = vmatpush3.msra.mxu0 %v16928_v54  ;;  %v13463_v54 = vsub.f32 %v17054_v4, %v17069_v23 }
0x1a84   :  { %15404 = vmatpush3.msra.mxu1 %v16917_v21  ;;  %15372 = vmatprep.subr.mxu0 %v12906_v0  ;;  %v13300_v21 = vld [vmem:[%s17206_s15] sm:$0xff]  ;;  %v17076_v24 = vand.u32 4294901760, %v17063_v9 }
0x1a85   :  { %15405 = vmatprep.subr.mxu1 %v16930_v26  ;;  %15373 = vmatpush3.msra.mxu0 %v12906_v0  ;;  %v13464_v25 = vand.u32 4294901760, %v13463_v54 }
0x1a86   :  { %15406 = vmatpush3.msra.mxu1 %v16930_v26  ;;  %15375 = vmatmul.mubr.f32.vlgmr.msra.gmra.mxu0 %v12850_v62  ;;  %v13470_v26 = vsub.f32 %v17063_v9, %v17076_v24 }
0x1a87   :  { %15388 = vmatprep.subr.mxu0 %v16912_v19  ;;  %15408 = vmatmul.mubr.f32.vlgmr.msra.gmra.mxu1 %v12849_v14 }
0x1a88   :  { %15389 = vmatpush3.msra.mxu0 %v16912_v19  ;;  %15396 = vmatprep.mubr.f32.mxu0 %v16895_v1  ;;  %v13443_v1 = vand.u32 4294901760, %v13442_v59  ;;  %v17065_v19 = vand.u32 4294901760, %v13301_v7 }
0x1a89   :  { %15390 = vmatprep.subr.mxu0 %v16925_v38  ;;  %15429 = vmatprep.subr.mxu1 %v13436_v55 }
0x1a8a   :  { %15391 = vmatpush3.msra.mxu0 %v16925_v38  ;;  %15430 = vmatpush3.msra.mxu1 %v13436_v55  ;;  %v17079_v22 = vsub.f32 %v13301_v7, %v17065_v19  ;;  %v17081_v38 = vand.u32 4294901760, %v13300_v21 }
0x1a8b   :  { %15392 = vmatprep.subr.mxu0 %v16937_v28  ;;  %15431 = vmatprep.subr.mxu1 %v13443_v1 }
0x1a8c   :  { %15393 = vmatpush3.msra.mxu0 %v16937_v28  ;;  %15432 = vmatpush3.msra.mxu1 %v13443_v1  ;;  %v17090_v27 = vand.u32 4294901760, %v17079_v22  ;;  %v17093_v20 = vsub.f32 %v13300_v21, %v17081_v38  ;;  %v13471_v28 = vand.u32 4294901760, %v13470_v26 }
0x1a8d   :  { %15394 = vmatprep.subr.mxu0 %v16944_v31  ;;  %15433 = vmatprep.subr.mxu1 %v13450_v8 }
0x1a8e   :  { %15395 = vmatpush3.msra.mxu0 %v16944_v31  ;;  %15434 = vmatpush3.msra.mxu1 %v13450_v8  ;;  %v13477_v0 = vsub.f32 %v17079_v22, %v17090_v27  ;;  %v17100_v60 = vand.u32 4294901760, %v17093_v20 }
0x1a8f   :  { %15397 = vmatmul.mubr.f32.vlgmr.msra.gmra.mxu0 %v12849_v14  ;;  %15410 = vmatprep.subr.mxu0 %v16988_v43 }
0x1a90   :  { %15411 = vmatpush3.msra.mxu0 %v16988_v43  ;;  %15435 = vmatprep.subr.mxu1 %v13457_v18  ;;  %v13478_v30 = vand.u32 4294901760, %v13477_v0  ;;  %v13484_v31 = vsub.f32 %v17093_v20, %v17100_v60 }
0x1a91   :  { %15412 = vmatprep.subr.mxu0 %v16996_v50  ;;  %15436 = vmatpush3.msra.mxu1 %v13457_v18 }
0x1a92   :  { %15413 = vmatpush3.msra.mxu0 %v16996_v50  ;;  %15437 = vmatprep.subr.mxu1 %v13464_v25  ;;  %v13485_v37 = vand.u32 4294901760, %v13484_v31 }
0x1a93   :  { %15414 = vmatprep.subr.mxu0 %v17009_v33  ;;  %15438 = vmatpush3.msra.mxu1 %v13464_v25 }
0x1a94   :  { %15415 = vmatpush3.msra.mxu0 %v17009_v33  ;;  %15439 = vmatprep.subr.mxu1 %v13471_v28 }
0x1a95   :  { %15416 = vmatprep.subr.mxu0 %v17024_v16  ;;  %15440 = vmatpush3.msra.mxu1 %v13471_v28 }
0x1a96   :  { %15417 = vmatpush3.msra.mxu0 %v17024_v16  ;;  %15441 = vmatprep.subr.mxu1 %v13478_v30 }
0x1a97   :  { %15418 = vmatprep.subr.mxu0 %v17040_v49  ;;  %15442 = vmatpush3.msra.mxu1 %v13478_v30 }
0x1a98   :  { %15419 = vmatpush3.msra.mxu0 %v17040_v49  ;;  %15443 = vmatprep.subr.mxu1 %v13485_v37 }
0x1a99   :  { %15420 = vmatprep.subr.mxu0 %v17051_v3  ;;  %15444 = vmatpush3.msra.mxu1 %v13485_v37 }
0x1a9a   :  { %15421 = vmatpush3.msra.mxu0 %v17051_v3  ;;  %15467 = vmatprep.subr.mxu1 %v16988_v43 }
0x1a9b   :  { %15422 = vmatprep.subr.mxu0 %v17065_v19 }
0x1a9c   :  { %15423 = vmatpush3.msra.mxu0 %v17065_v19 }
0x1a9d   :  { %15424 = vmatprep.subr.mxu0 %v17081_v38 }
0x1a9e   :  { %15425 = vmatpush3.msra.mxu0 %v17081_v38 }
0x1a9f   :  { %15448 = vmatprep.subr.mxu0 %v16994_v17 }
0x1b35   :  { %v15365_v53 = vpop.f32.mrf.mxu1 }
0x1b37   :  { %v12946_v13 = vpop.f32.mrf.mxu1 }
0x1b3d   :  { %v15387_v14 = vpop.f32.mrf.mxu1 }
0x1b3e   :  { %v15354_v42 = vpop.f32.mrf.mxu0 }
0x1b3f   :  { %v12856_v34 = vadd.f32 %v15354_v42, %v13932_v5  ;;  %v13116_v32 = vpop.f32.mrf.mxu1 }
0x1b40   :  { %v12845_v61 = vpop.f32.mrf.mxu0 }
0x1b41   :  { %v12846_v11 = vadd.f32 %v13932_v5, %v12845_v61  ;;  %v12953_v58 = vadd.f32 %v15365_v53, %v12856_v34 }
0x1b43   :  { %v12947_v41 = vadd.f32 %v12946_v13, %v12846_v11 }
0x1b46   :  { %v15376_v36 = vpop.f32.mrf.mxu0 }
0x1b47   :  { %v13040_v40 = vadd.f32 %v15376_v36, %v12953_v58  ;;  %v15409_v45 = vpop.f32.mrf.mxu1 }
0x1b48   :  { %v13032_v62 = vpop.f32.mrf.mxu0 }
0x1b49   :  { %v13033_v51 = vadd.f32 %v13032_v62, %v12947_v41  ;;  %v13125_v39 = vadd.f32 %v15387_v14, %v13040_v40  ;;  %v13288_v1 = vpop.f32.mrf.mxu1 }
0x1b4b   :  { %v13117_v46 = vadd.f32 %v13116_v32, %v13033_v51 }
0x1b4f   :  { %v15398_v56 = vpop.f32.mrf.mxu0 }
0x1b50   :  { %v13214_v57 = vadd.f32 %v15398_v56, %v13125_v39 }
0x1b51   :  { %v13207_v55 = vpop.f32.mrf.mxu0 }
0x1b52   :  { %v13295_v59 = vadd.f32 %v15409_v45, %v13214_v57  ;;  %v13208_v63 = vadd.f32 %v13207_v55, %v13117_v46 }
0x1b54   :  { %v13299_v10 = vmax.f32 %v13295_v59, 0.0  ;;  %v13289_v7 = vadd.f32 %v13288_v1, %v13208_v63 }
0x1b56   :  { %v13320_v8 = vsel %vm13315_vm3, %v13299_v10, 0  ;;  %v13298_v6 = vmax.f32 %v13289_v7, 0.0 }
0x1b57   :  { %v17110_v21 = vand.u32 4294901760, %v13320_v8 }
0x1b58   :  { %v13317_v18 = vsel %vm13315_vm3, %v13298_v6, 0 }
0x1b59   :  { %v13406_v54 = vsub.f32 %v13320_v8, %v17110_v21  ;;  %v13395_v26 = vand.u32 4294901760, %v13317_v18 }
0x1b5b   :  { %v13407_v25 = vand.u32 4294901760, %v13406_v54  ;;  %v13396_v28 = vsub.f32 %v13317_v18, %v13395_v26  ;;  %15445 = vmatprep.mubr.f32.mxu1 %v13395_v26 }
0x1b5c   :  { %15446 = vmatmul.mubr.f32.vlgmr.msra.gmra.mxu1 %v17110_v21 }
0x1b5d   :  { %15468 = vmatpush3.msra.mxu1 %v16988_v43  ;;  %v13397_v0 = vand.u32 4294901760, %v13396_v28  ;;  %v13408_v30 = vsub.f32 %v13406_v54, %v13407_v25 }
0x1b5e   :  { %15469 = vmatprep.subr.mxu1 %v16996_v50 }
0x1b5f   :  { %15470 = vmatpush3.msra.mxu1 %v16996_v50  ;;  %15483 = vmatprep.mubr.f32.mxu1 %v13397_v0  ;;  %v13398_v31 = vsub.f32 %v13396_v28, %v13397_v0  ;;  %v13409_v42 = vand.u32 4294901760, %v13408_v30 }
0x1b60   :  { %15471 = vmatprep.subr.mxu1 %v17009_v33 }
0x1b61   :  { %15472 = vmatpush3.msra.mxu1 %v17009_v33  ;;  %v13399_v37 = vand.u32 4294901760, %v13398_v31 }
0x1b62   :  { %15473 = vmatprep.subr.mxu1 %v17024_v16 }
0x1b63   :  { %15474 = vmatpush3.msra.mxu1 %v17024_v16  ;;  %15426 = vmatprep.mubr.f32.mxu0 %v13399_v37 }
0x1b64   :  { %15475 = vmatprep.subr.mxu1 %v17040_v49  ;;  %15427 = vmatmul.mubr.f32.vlgmr.msra.gmra.mxu0 %v13409_v42 }
0x1b65   :  { %15449 = vmatpush3.msra.mxu0 %v16994_v17  ;;  %15476 = vmatpush3.msra.mxu1 %v17040_v49  ;;  %v13933_v17 = vld [vmem:[%s17207_s16] ss:$0 sm:$0xff]  ;;  %s15671_s16 = smov [#allocation8]  }
0x1b66   :  { %15450 = vmatprep.subr.mxu0 %v17007_v47  ;;  %15464 = vmatprep.mubr.f32.mxu0 %v13396_v28  ;;  %s13911_s9 = sshll.u32 %s15671_s16, 4  ;;  %s13912_s9 = int_to_ptr.vmem [resolvable:$true] %s13911_s9 }
0x1b67   :  { %15477 = vmatprep.subr.mxu1 %v17051_v3  ;;  %15451 = vmatpush3.msra.mxu0 %v17007_v47  ;;  %s15635_s25 = scalar_lea.vmem %s13912_s9, 256  ;;  %p15640_p2 = scmp.lt.s32.totalorder %s13912_s9, %s13912_s9 }
0x1b68   :  { %15478 = vmatpush3.msra.mxu1 %v17051_v3  ;;  %15452 = vmatprep.subr.mxu0 %v17022_v29  ;;  %p15636_p1 = scmp.ne.s32.totalorder %s13912_s9, %s15635_s25  ;;  %p15641_p3 = scmp.lt.s32.totalorder %s15635_s25, %s15635_s25 }
0x1b69   :  { %15479 = vmatprep.subr.mxu1 %v17065_v19  ;;  %15453 = vmatpush3.msra.mxu0 %v17022_v29 }
0x1b6a   :  { %15480 = vmatpush3.msra.mxu1 %v17065_v19  ;;  %15454 = vmatprep.subr.mxu0 %v17037_v12  ;;  %p15642_p4 = por %p15641_p3, %p15640_p2 }
0x1b6b   :  { %15481 = vmatprep.subr.mxu1 %v17081_v38  ;;  %15455 = vmatpush3.msra.mxu0 %v17037_v12 }
0x1b6c   :  { %15482 = vmatpush3.msra.mxu1 %v17081_v38  ;;  %15456 = vmatprep.subr.mxu0 %v17054_v4  ;;  %p15643_p5 = pnand %p15642_p4, %p15636_p1 }
0x1b6d   :  { %15484 = vmatmul.mubr.f32.vlgmr.msra.gmra.mxu1 %v13407_v25  ;;  %15505 = vmatprep.subr.mxu1 %v16988_v43 }
0x1b6e   :  { %15457 = vmatpush3.msra.mxu0 %v17054_v4  ;;  %15506 = vmatpush3.msra.mxu1 %v16988_v43 }
0x1b6f   :  { %15521 = vmatprep.mubr.f32.mxu1 %v13395_v26  ;;  %15458 = vmatprep.subr.mxu0 %v17063_v9 }
0x1b70   :  { %15507 = vmatprep.subr.mxu1 %v16996_v50  ;;  %15459 = vmatpush3.msra.mxu0 %v17063_v9 }
0x1b71   :  { %15508 = vmatpush3.msra.mxu1 %v16996_v50  ;;  %15460 = vmatprep.subr.mxu0 %v17079_v22 }
0x1b72   :  { %15509 = vmatprep.subr.mxu1 %v17009_v33  ;;  %15461 = vmatpush3.msra.mxu0 %v17079_v22 }
0x1b73   :  { %15510 = vmatpush3.msra.mxu1 %v17009_v33  ;;  %15462 = vmatprep.subr.mxu0 %v17093_v20 }
0x1b74   :  { %15511 = vmatprep.subr.mxu1 %v17024_v16  ;;  %15463 = vmatpush3.msra.mxu0 %v17093_v20 }
0x1b75   :  { %15512 = vmatpush3.msra.mxu1 %v17024_v16  ;;  %15465 = vmatmul.mubr.f32.vlgmr.msra.gmra.mxu0 %v13406_v54 }
0x1b76   :  { %15486 = vmatprep.subr.mxu0 %v17004_v44  ;;  %15513 = vmatprep.subr.mxu1 %v17040_v49 }
0x1b77   :  { %15487 = vmatpush3.msra.mxu0 %v17004_v44  ;;  %15502 = vmatprep.mubr.f32.mxu0 %v13395_v26 }
0x1b78   :  { %15514 = vmatpush3.msra.mxu1 %v17040_v49  ;;  %15488 = vmatprep.subr.mxu0 %v17019_v15 }
0x1b79   :  { %15515 = vmatprep.subr.mxu1 %v17051_v3  ;;  %15489 = vmatpush3.msra.mxu0 %v17019_v15 }
0x1b7a   :  { %15516 = vmatpush3.msra.mxu1 %v17051_v3  ;;  %15490 = vmatprep.subr.mxu0 %v17034_v48 }
0x1b7b   :  { %15517 = vmatprep.subr.mxu1 %v17065_v19  ;;  %15491 = vmatpush3.msra.mxu0 %v17034_v48 }
0x1b7c   :  { %15518 = vmatpush3.msra.mxu1 %v17065_v19  ;;  %15492 = vmatprep.subr.mxu0 %v17049_v2 }
0x1b7d   :  { %15519 = vmatprep.subr.mxu1 %v17081_v38  ;;  %15493 = vmatpush3.msra.mxu0 %v17049_v2 }
0x1b7e   :  { %15520 = vmatpush3.msra.mxu1 %v17081_v38  ;;  %15494 = vmatprep.subr.mxu0 %v17069_v23 }
0x1b7f   :  { %15522 = vmatmul.mubr.f32.vlgmr.msra.gmra.mxu1 %v17110_v21  ;;  %15495 = vmatpush3.msra.mxu0 %v17069_v23 }
0x1b80   :  { %15496 = vmatprep.subr.mxu0 %v17076_v24 }
0x1b81   :  { %15497 = vmatpush3.msra.mxu0 %v17076_v24 }
0x1b82   :  { %15498 = vmatprep.subr.mxu0 %v17090_v27 }
0x1b83   :  { %15499 = vmatpush3.msra.mxu0 %v17090_v27 }
0x1b84   :  { %15500 = vmatprep.subr.mxu0 %v17100_v60 }
0x1b85   :  { %15501 = vmatpush3.msra.mxu0 %v17100_v60 }
0x1b86   :  { %15503 = vmatmul.mubr.f32.vlgmr.msra.gmra.mxu0 %v17110_v21 }
0x1c1c   :  { %v15447_v50 = vpop.f32.mrf.mxu1 }
0x1c1e   :  { %v13522_v29 = vpop.f32.mrf.mxu1 }
0x1c24   :  { %v15428_v43 = vpop.f32.mrf.mxu0 }
0x1c25   :  { %v13412_v47 = vadd.f32 %v15428_v43, %v13933_v17 }
0x1c26   :  { %v13401_v44 = vpop.f32.mrf.mxu0 }
0x1c27   :  { %v13402_v15 = vadd.f32 %v13933_v17, %v13401_v44  ;;  %v13529_v16 = vadd.f32 %v15447_v50, %v13412_v47 }
0x1c29   :  { %v13523_v2 = vadd.f32 %v13522_v29, %v13402_v15 }
0x1c2d   :  { %v15485_v48 = vpop.f32.mrf.mxu1 }
0x1c2f   :  { %v13704_v4 = vpop.f32.mrf.mxu1 }
0x1c35   :  { %v15466_v33 = vpop.f32.mrf.mxu0 }
0x1c36   :  { %v13624_v49 = vadd.f32 %v15466_v33, %v13529_v16 }
0x1c37   :  { %v13616_v12 = vpop.f32.mrf.mxu0 }
0x1c38   :  { %v13617_v3 = vadd.f32 %v13616_v12, %v13523_v2  ;;  %v13713_v9 = vadd.f32 %v15485_v48, %v13624_v49 }
0x1c3a   :  { %v13705_v22 = vadd.f32 %v13704_v4, %v13617_v3 }
0x1c3f   :  { %v15523_v19 = vpop.f32.mrf.mxu1 }
0x1c41   :  { %v13892_v60 = vpop.f32.mrf.mxu1 }
0x1c46   :  { %v15504_v23 = vpop.f32.mrf.mxu0 }
0x1c47   :  { %v13814_v24 = vadd.f32 %v15504_v23, %v13713_v9 }
0x1c48   :  { %v13807_v38 = vpop.f32.mrf.mxu0 }
0x1c49   :  { %v13899_v27 = vadd.f32 %v15523_v19, %v13814_v24  ;;  %v13808_v20 = vadd.f32 %v13807_v38, %v13705_v22 }
0x1c4b   :  { %v13903_v5 = vadd.f32 %v13899_v27, %v16950_v35  ;;  %v13893_v53 = vadd.f32 %v13892_v60, %v13808_v20 }
0x1c4d   :  { %13905 = vst.msk [vmem:[#allocation8 + $0x8] sm:$0xff] %vm102_vm0, %v13903_v5  ;;  %v13902_v61 = vadd.f32 %v13893_v53, %v16891_v52 }
0x1c4f   :  { %13904 = vst.msk [vmem:[#allocation8] sm:$0xff] %vm102_vm0, %v13902_v61 }
0x1c50   :  { %15646 = shalt.err (!%p15643_p5)
}
0x1c51   :  { %13917 = dma.vmem_to_hbm [thread:$0]  %s13912_s9, 256, %s17208_s17, [#allocation4], %s15663_s29, %s15663_s29, %s15664_s0  }
0x1c52   :  { %15659 = dma.done.wait [#allocation4], 256  }
0x1c53   :  { %15660 = vsyncadd [#allocation4], 4294967040 }
0x1c54   :  { %13921 = vsyncpa [#allocation3], 1 }
0x1c55   :  { %13922 = vsyncpa [#allocation6], 1 }
0x1c56   :  { %13923 = vsyncpa [#allocation4], 1 }

</bundles_post_ra>
